<compile_context>
chip_gen: v5e
topology: v5e:2x2
jax: 0.10.0
libtpu: 0.0.40
codegen_flags: <defaults>
</compile_context>

<pallas_src>
import functools

import jax
import jax.numpy as jnp
from jax.experimental import pallas as pl
from jax.experimental.pallas import tpu as pltpu

NEG_SLOPE = 0.01          # nn.LeakyReLU default
EPS = 1e-5                # InstanceNorm2d eps (ConvBlock and Block)


def _vmem_limit_bytes():
    # Generation-aware scoped-VMEM budget (v7x: 64 MiB physical, v5e/v6e:
    # 128 MiB); leave headroom for Mosaic-internal scratch.
    try:
        cap = int(pltpu.get_tpu_info().vmem_capacity_bytes)
    except Exception:
        cap = 64 * 1024 * 1024
    return max(32 * 1024 * 1024, min(cap * 3 // 4, 100 * 1024 * 1024))


# ----------------------------------------------------------------------------
# Fused kernel: per batch sample
#   x   = s + IN_affine(conv3x3_s2(reflect_pad(p)))        (from parity planes)
#   b1  = x  + IN(conv(pad(LeakyReLU(IN(conv(pad(x)))))))  (Block1, biases drop)
#   b2  = b1 + IN(conv(pad(LeakyReLU(IN(conv(pad(b1)))))))  (Block2)
#   out = x + b2
# Everything between the input DMA and the output DMA stays in VMEM/vregs.
# ----------------------------------------------------------------------------
def _fe_block_kernel(pph_ref, s_ref, wd_ref, g_ref, b_ref, wb_ref,
                     o_ref, pad_ref, *, Ho, Wo, C1, C2, mm_dtype):
    npix = Ho * Wo
    hh = Ho + 1                                  # parity-plane height

    def instance_norm(v):                        # v: (npix, C) f32
        # Two-pass form: mean first, then variance of the centered values.
        mean = jnp.mean(v, axis=0, keepdims=True)
        d = v - mean
        var = jnp.mean(d * d, axis=0, keepdims=True)
        return d * jax.lax.rsqrt(var + EPS)

    # ---- stage 0: x = s + IN_affine(dsc(p)) --------------------------------
    # pph holds the 4 parity planes of the reflection-padded p, stacked along
    # rows; tap (dy, dx) of the stride-2 conv is a contiguous Ref slice of
    # plane ((dy%2)*2 + dx%2).  Operands are already mm_dtype (cast on host).
    acc = jnp.zeros((npix, C2), jnp.float32)
    for dy in range(3):
        for dx in range(3):
            plane = (dy % 2) * 2 + (dx % 2)
            r0 = plane * hh + dy // 2
            c0 = dx // 2
            a = pph_ref[r0:r0 + Ho, c0:c0 + Wo, :].reshape(npix, C1)
            acc = acc + jnp.dot(a, wd_ref[dy * 3 + dx],
                                preferred_element_type=jnp.float32)
    x = (s_ref[...].reshape(npix, C2).astype(jnp.float32)
         + instance_norm(acc) * g_ref[...] + b_ref[...])

    # ---- ResnetBlock Blocks (conv biases cancelled by InstanceNorm) --------
    def reflect_pad_to_scratch(v):               # v: (npix, C2) f32
        img = v.reshape(Ho, Wo, C2).astype(mm_dtype)          # cast ONCE
        pad_ref[1:Ho + 1, 1:Wo + 1, :] = img                  # interior
        pad_ref[0:1, 1:Wo + 1, :] = img[1:2]                  # top
        pad_ref[Ho + 1:Ho + 2, 1:Wo + 1, :] = img[Ho - 2:Ho - 1]   # bottom
        pad_ref[:, 0:1, :] = pad_ref[:, 2:3, :]               # left + corners
        pad_ref[:, Wo + 1:Wo + 2, :] = pad_ref[:, Wo - 1:Wo, :]    # right

    def conv3x3(wi):                             # wi: conv index 0..3
        acc = jnp.zeros((npix, C2), jnp.float32)
        for dx in range(3):
            # one misaligned column slice per dx (3 relayouts/conv, not 9);
            # the dy taps below are major-axis views of `col`.
            col = pad_ref[:, dx:dx + Wo, :]      # (Ho+2, Wo, C2) mm_dtype
            for dy in range(3):
                a = col[dy:dy + Ho].reshape(npix, C2)
                acc = acc + jnp.dot(a, wb_ref[wi * 9 + dy * 3 + dx],
                                    preferred_element_type=jnp.float32)
        return acc

    def block(t, wi0, wi1):                      # t: (npix, C2) f32
        reflect_pad_to_scratch(t)
        h = instance_norm(conv3x3(wi0))
        h = jnp.where(h >= 0, h, NEG_SLOPE * h)  # LeakyReLU(0.01)
        reflect_pad_to_scratch(h)
        return t + instance_norm(conv3x3(wi1))

    b1 = block(x, 0, 1)
    b2 = block(b1, 2, 3)
    out = x + b2
    o_ref[...] = out.reshape(Ho, Wo, C2).astype(o_ref.dtype)


def _call_fused(phases, s, w_dsc, gamma, beta, w_blk, *, mm_dtype):
    n, ho, wo, c2 = s.shape
    _, prow, pcol, c1 = phases.shape
    kernel = functools.partial(_fe_block_kernel, Ho=ho, Wo=wo, C1=c1, C2=c2,
                               mm_dtype=mm_dtype)
    return pl.pallas_call(
        kernel,
        out_shape=jax.ShapeDtypeStruct((n, ho, wo, c2), jnp.float32),
        grid_spec=pltpu.PrefetchScalarGridSpec(
            num_scalar_prefetch=0,
            grid=(n,),
            in_specs=[
                # activations: real channel widths in HBM, per-sample blocks
                pl.BlockSpec((None, prow, pcol, c1), lambda i: (i, 0, 0, 0)),
                pl.BlockSpec((None, ho, wo, c2), lambda i: (i, 0, 0, 0)),
                # weights / IN affine params: grid-invariant (fetched once)
                pl.BlockSpec((9, c1, c2), lambda i: (0, 0, 0)),
                pl.BlockSpec((1, c2), lambda i: (0, 0)),
                pl.BlockSpec((1, c2), lambda i: (0, 0)),
                pl.BlockSpec((36, c2, c2), lambda i: (0, 0, 0)),
            ],
            out_specs=pl.BlockSpec((None, ho, wo, c2), lambda i: (i, 0, 0, 0)),
            scratch_shapes=[pltpu.VMEM((ho + 2, wo + 2, c2), mm_dtype)],
        ),
        compiler_params=pltpu.CompilerParams(
            dimension_semantics=("parallel",),
            vmem_limit_bytes=_vmem_limit_bytes()),
    )(phases, s, w_dsc, gamma, beta, w_blk)


# ----------------------------------------------------------------------------
# Parameter init (deterministic, synthetic; mirrors the torch module's params)
# ----------------------------------------------------------------------------
def init_fe_block_params(key, plane1, plane2):
    k_dsc, k_blk, k_bias, k_g, k_b = jax.random.split(key, 5)

    def conv_w(k, cin, cout):
        return jax.random.normal(k, (3, 3, cin, cout), jnp.float32) / jnp.sqrt(
            float(cin * 9))

    blk_keys = jax.random.split(k_blk, 4)
    return {
        "dsc_w": conv_w(k_dsc, plane1, plane2),                    # bias=False
        "dsc_gamma": 1.0 + 0.1 * jax.random.normal(k_g, (plane2,), jnp.float32),
        "dsc_beta": 0.1 * jax.random.normal(k_b, (plane2,), jnp.float32),
        "blk_w": jnp.stack([conv_w(kk, plane2, plane2) for kk in blk_keys]),
        # Conv biases of the Blocks: cancelled exactly by the following
        # InstanceNorm; kept in the reference but unused by the kernel.
        "blk_b": 0.1 * jax.random.normal(k_bias, (4, plane2), jnp.float32),
    }


# ----------------------------------------------------------------------------
# FE_Block forward (Pallas)
# ----------------------------------------------------------------------------
def fe_block_forward(params, p_nchw, s_nchw, *, mm_dtype=jnp.bfloat16):
    p = jnp.transpose(p_nchw, (0, 2, 3, 1)).astype(jnp.float32)   # NHWC
    s = jnp.transpose(s_nchw, (0, 2, 3, 1)).astype(jnp.float32)   # NHWC
    n, h, w, c1 = p.shape
    ns, ho, wo, c2 = s.shape
    assert ns == n
    assert h == 2 * ho and w == 2 * wo, "s must be the stride-2 map of p"
    assert ho >= 2 and wo >= 2

    # Reflection pad + parity decomposition of p at REAL channel width (pure
    # index shuffling, roughly the same bytes as p -- no im2col blow-up, no
    # channel inflation in HBM).  Cast to the matmul dtype here: phases are
    # only ever consumed as matmul operands.
    p_pad = jnp.pad(p, ((0, 0), (1, 1), (1, 1), (0, 0)), mode="reflect")
    phases = jnp.stack(
        [p_pad[:, ry::2, rx::2, :] for ry in (0, 1) for rx in (0, 1)], axis=1)
    phases = phases.reshape(n, 4 * (ho + 1), wo + 1, c1).astype(mm_dtype)

    w_dsc = params["dsc_w"].reshape(9, c1, c2).astype(mm_dtype)
    gamma = params["dsc_gamma"].reshape(1, c2).astype(jnp.float32)
    beta = params["dsc_beta"].reshape(1, c2).astype(jnp.float32)
    w_blk = params["blk_w"].reshape(36, c2, c2).astype(mm_dtype)

    out = _call_fused(phases, s, w_dsc, gamma, beta, w_blk, mm_dtype=mm_dtype)
    return jnp.transpose(out, (0, 3, 1, 2))                       # NCHW


# ----------------------------------------------------------------------------
# Plain-JAX reference (mirrors the PyTorch module; keeps the conv biases)
# ----------------------------------------------------------------------------
def _ref_conv3x3(x, w, stride, bias=None):
    xp = jnp.pad(x, ((0, 0), (1, 1), (1, 1), (0, 0)), mode="reflect")
    _, hp, wp, cin = xp.shape
    ho = (hp - 3) // stride + 1
    wo = (wp - 3) // stride + 1
    cols = []
    for dy in range(3):
        for dx in range(3):
            cols.append(xp[:, dy:dy + stride * (ho - 1) + 1:stride,
                           dx:dx + stride * (wo - 1) + 1:stride, :])
    patches = jnp.concatenate(cols, axis=-1)
    out = jnp.einsum("nhwk,kc->nhwc", patches, w.reshape(9 * cin, -1))
    if bias is not None:
        out = out + bias
    return out


def _ref_instance_norm(x, gamma=None, beta=None):
    mean = jnp.mean(x, axis=(1, 2), keepdims=True)
    var = jnp.mean((x - mean) ** 2, axis=(1, 2), keepdims=True)
    y = (x - mean) / jnp.sqrt(var + EPS)
    if gamma is not None:
        y = y * gamma + beta
    return y


def fe_block_reference(params, p_nchw, s_nchw):
    p = jnp.transpose(p_nchw, (0, 2, 3, 1)).astype(jnp.float32)
    s = jnp.transpose(s_nchw, (0, 2, 3, 1)).astype(jnp.float32)
    x = s + _ref_instance_norm(_ref_conv3x3(p, params["dsc_w"], 2),
                               params["dsc_gamma"], params["dsc_beta"])

    def block(t, w_a, b_a, w_b, b_b):
        hh = _ref_instance_norm(_ref_conv3x3(t, w_a, 1, b_a))
        hh = jnp.where(hh >= 0, hh, NEG_SLOPE * hh)
        return t + _ref_instance_norm(_ref_conv3x3(hh, w_b, 1, b_b))

    w, b = params["blk_w"], params["blk_b"]
    b1 = block(x, w[0], b[0], w[1], b[1])
    b2 = block(b1, w[2], b[2], w[3], b[3])
    out = x + b2
    return jnp.transpose(out, (0, 3, 1, 2))


if __name__ == "__main__":
    key = jax.random.PRNGKey(0)
    kp, ks, kw = jax.random.split(key, 3)

    plane1, plane2 = 4, 8
    N, H, W = 2, 16, 16

    p = jax.random.normal(kp, (N, plane1, H, W), jnp.float32)
    s = jax.random.normal(ks, (N, plane2, H // 2, W // 2), jnp.float32)
    params = init_fe_block_params(kw, plane1, plane2)

    fwd = jax.jit(fe_block_forward, static_argnames=("mm_dtype",))

    # All-f32 validation path (f32 matmuls, f32 pad scratch) against the
    # plain-JAX reference -- exercises identical math up to summation order.
    out_f32 = jax.block_until_ready(fwd(params, p, s, mm_dtype=jnp.float32))
    ref = jax.block_until_ready(fe_block_reference(params, p, s))
    assert out_f32.shape == (N, plane2, H // 2, W // 2), out_f32.shape
    err = float(jnp.max(jnp.abs(out_f32 - ref)))
    assert err < 2e-3, f"kernel/reference mismatch: {err}"

    # Default fast path: bf16 matmul operands + bf16 pad scratch, f32
    # accumulation / InstanceNorm / residuals.
    out = jax.block_until_ready(fwd(params, p, s))
    assert out.shape == (N, plane2, H // 2, W // 2), out.shape
    assert bool(jnp.all(jnp.isfinite(out)))
    print("KERNEL_OK")
</pallas_src>

<mosaic_0001>
module attributes {stable_mosaic.version = 11 : i64} {
  func.func @_fe_block_kernel(%arg0: i32, %arg1: memref<1x36x9x4xf32, #tpu.memory_space<vmem>>, %arg2: memref<1x8x8x8xf32, #tpu.memory_space<vmem>>, %arg3: memref<9x4x8xf32, #tpu.memory_space<vmem>>, %arg4: memref<1x8xf32, #tpu.memory_space<vmem>>, %arg5: memref<1x8xf32, #tpu.memory_space<vmem>>, %arg6: memref<36x8x8xf32, #tpu.memory_space<vmem>>, %arg7: memref<1x8x8x8xf32, #tpu.memory_space<vmem>>, %arg8: memref<10x10x8xf32, #tpu.memory_space<vmem>>) attributes {dimension_semantics = [#tpu.dimension_semantics<parallel>], iteration_bounds = array<i64: 2>, scalar_prefetch = 0 : i64, scratch_operands = 1 : i64, tpu.core_type = #tpu.core_type<tc>, window_params = [{transform_indices = @transform_0, window_bounds = array<i64: 1, 36, 9, 4>}, {transform_indices = @transform_1, window_bounds = array<i64: 1, 8, 8, 8>}, {pipeline_mode = #tpu.pipeline_mode<synchronous>, transform_indices = @transform_2, window_bounds = array<i64: 9, 4, 8>}, {pipeline_mode = #tpu.pipeline_mode<synchronous>, transform_indices = @transform_3, window_bounds = array<i64: 1, 8>}, {pipeline_mode = #tpu.pipeline_mode<synchronous>, transform_indices = @transform_4, window_bounds = array<i64: 1, 8>}, {pipeline_mode = #tpu.pipeline_mode<synchronous>, transform_indices = @transform_5, window_bounds = array<i64: 36, 8, 8>}, {transform_indices = @transform_6, window_bounds = array<i64: 1, 8, 8, 8>}]} {
    %cst = arith.constant 0.000000e+00 : f32
    %0 = vector.broadcast %cst : f32 to vector<64x8xf32>
    %c0 = arith.constant 0 : index
    %c0_0 = arith.constant 0 : index
    %c0_1 = arith.constant 0 : index
    %c0_2 = arith.constant 0 : index
    %1 = vector.load %arg1[%c0, %c0_0, %c0_1, %c0_2] : memref<1x36x9x4xf32, #tpu.memory_space<vmem>>, vector<1x8x8x4xf32>
    %2 = vector.shape_cast %1 : vector<1x8x8x4xf32> to vector<8x8x4xf32>
    %3 = vector.shape_cast %2 : vector<8x8x4xf32> to vector<64x4xf32>
    %c0_3 = arith.constant 0 : index
    %c0_4 = arith.constant 0 : index
    %c0_5 = arith.constant 0 : index
    %4 = vector.load %arg3[%c0_3, %c0_4, %c0_5] : memref<9x4x8xf32, #tpu.memory_space<vmem>>, vector<1x4x8xf32>
    %5 = vector.shape_cast %4 : vector<1x4x8xf32> to vector<4x8xf32>
    %cst_6 = arith.constant dense<0.000000e+00> : vector<64x8xf32>
    %6 = tpu.matmul %3, %5, %cst_6 {dimension_numbers = #tpu.dot_dimension_numbers<[1], [0], [0], [1], [0, 0, 1, 1], [], []>} : vector<64x4xf32>, vector<4x8xf32>, vector<64x8xf32> -> vector<64x8xf32>
    %7 = arith.addf %0, %6 : vector<64x8xf32>
    %c0_7 = arith.constant 0 : index
    %c9 = arith.constant 9 : index
    %c0_8 = arith.constant 0 : index
    %c0_9 = arith.constant 0 : index
    %8 = vector.load %arg1[%c0_7, %c9, %c0_8, %c0_9] : memref<1x36x9x4xf32, #tpu.memory_space<vmem>>, vector<1x8x8x4xf32>
    %9 = vector.shape_cast %8 : vector<1x8x8x4xf32> to vector<8x8x4xf32>
    %10 = vector.shape_cast %9 : vector<8x8x4xf32> to vector<64x4xf32>
    %c1 = arith.constant 1 : index
    %c0_10 = arith.constant 0 : index
    %c0_11 = arith.constant 0 : index
    %11 = vector.load %arg3[%c1, %c0_10, %c0_11] : memref<9x4x8xf32, #tpu.memory_space<vmem>>, vector<1x4x8xf32>
    %12 = vector.shape_cast %11 : vector<1x4x8xf32> to vector<4x8xf32>
    %cst_12 = arith.constant dense<0.000000e+00> : vector<64x8xf32>
    %13 = tpu.matmul %10, %12, %cst_12 {dimension_numbers = #tpu.dot_dimension_numbers<[1], [0], [0], [1], [0, 0, 1, 1], [], []>} : vector<64x4xf32>, vector<4x8xf32>, vector<64x8xf32> -> vector<64x8xf32>
    %14 = arith.addf %7, %13 : vector<64x8xf32>
    %c0_13 = arith.constant 0 : index
    %c0_14 = arith.constant 0 : index
    %c1_15 = arith.constant 1 : index
    %c0_16 = arith.constant 0 : index
    %15 = vector.load %arg1[%c0_13, %c0_14, %c1_15, %c0_16] : memref<1x36x9x4xf32, #tpu.memory_space<vmem>>, vector<1x8x8x4xf32>
    %16 = vector.shape_cast %15 : vector<1x8x8x4xf32> to vector<8x8x4xf32>
    %17 = vector.shape_cast %16 : vector<8x8x4xf32> to vector<64x4xf32>
    %c2 = arith.constant 2 : index
    %c0_17 = arith.constant 0 : index
    %c0_18 = arith.constant 0 : index
    %18 = vector.load %arg3[%c2, %c0_17, %c0_18] : memref<9x4x8xf32, #tpu.memory_space<vmem>>, vector<1x4x8xf32>
    %19 = vector.shape_cast %18 : vector<1x4x8xf32> to vector<4x8xf32>
    %cst_19 = arith.constant dense<0.000000e+00> : vector<64x8xf32>
    %20 = tpu.matmul %17, %19, %cst_19 {dimension_numbers = #tpu.dot_dimension_numbers<[1], [0], [0], [1], [0, 0, 1, 1], [], []>} : vector<64x4xf32>, vector<4x8xf32>, vector<64x8xf32> -> vector<64x8xf32>
    %21 = arith.addf %14, %20 : vector<64x8xf32>
    %c0_20 = arith.constant 0 : index
    %c18 = arith.constant 18 : index
    %c0_21 = arith.constant 0 : index
    %c0_22 = arith.constant 0 : index
    %22 = vector.load %arg1[%c0_20, %c18, %c0_21, %c0_22] : memref<1x36x9x4xf32, #tpu.memory_space<vmem>>, vector<1x8x8x4xf32>
    %23 = vector.shape_cast %22 : vector<1x8x8x4xf32> to vector<8x8x4xf32>
    %24 = vector.shape_cast %23 : vector<8x8x4xf32> to vector<64x4xf32>
    %c3 = arith.constant 3 : index
    %c0_23 = arith.constant 0 : index
    %c0_24 = arith.constant 0 : index
    %25 = vector.load %arg3[%c3, %c0_23, %c0_24] : memref<9x4x8xf32, #tpu.memory_space<vmem>>, vector<1x4x8xf32>
    %26 = vector.shape_cast %25 : vector<1x4x8xf32> to vector<4x8xf32>
    %cst_25 = arith.constant dense<0.000000e+00> : vector<64x8xf32>
    %27 = tpu.matmul %24, %26, %cst_25 {dimension_numbers = #tpu.dot_dimension_numbers<[1], [0], [0], [1], [0, 0, 1, 1], [], []>} : vector<64x4xf32>, vector<4x8xf32>, vector<64x8xf32> -> vector<64x8xf32>
    %28 = arith.addf %21, %27 : vector<64x8xf32>
    %c0_26 = arith.constant 0 : index
    %c27 = arith.constant 27 : index
    %c0_27 = arith.constant 0 : index
    %c0_28 = arith.constant 0 : index
    %29 = vector.load %arg1[%c0_26, %c27, %c0_27, %c0_28] : memref<1x36x9x4xf32, #tpu.memory_space<vmem>>, vector<1x8x8x4xf32>
    %30 = vector.shape_cast %29 : vector<1x8x8x4xf32> to vector<8x8x4xf32>
    %31 = vector.shape_cast %30 : vector<8x8x4xf32> to vector<64x4xf32>
    %c4 = arith.constant 4 : index
    %c0_29 = arith.constant 0 : index
    %c0_30 = arith.constant 0 : index
    %32 = vector.load %arg3[%c4, %c0_29, %c0_30] : memref<9x4x8xf32, #tpu.memory_space<vmem>>, vector<1x4x8xf32>
    %33 = vector.shape_cast %32 : vector<1x4x8xf32> to vector<4x8xf32>
    %cst_31 = arith.constant dense<0.000000e+00> : vector<64x8xf32>
    %34 = tpu.matmul %31, %33, %cst_31 {dimension_numbers = #tpu.dot_dimension_numbers<[1], [0], [0], [1], [0, 0, 1, 1], [], []>} : vector<64x4xf32>, vector<4x8xf32>, vector<64x8xf32> -> vector<64x8xf32>
    %35 = arith.addf %28, %34 : vector<64x8xf32>
    %c0_32 = arith.constant 0 : index
    %c18_33 = arith.constant 18 : index
    %c1_34 = arith.constant 1 : index
    %c0_35 = arith.constant 0 : index
    %36 = vector.load %arg1[%c0_32, %c18_33, %c1_34, %c0_35] : memref<1x36x9x4xf32, #tpu.memory_space<vmem>>, vector<1x8x8x4xf32>
    %37 = vector.shape_cast %36 : vector<1x8x8x4xf32> to vector<8x8x4xf32>
    %38 = vector.shape_cast %37 : vector<8x8x4xf32> to vector<64x4xf32>
    %c5 = arith.constant 5 : index
    %c0_36 = arith.constant 0 : index
    %c0_37 = arith.constant 0 : index
    %39 = vector.load %arg3[%c5, %c0_36, %c0_37] : memref<9x4x8xf32, #tpu.memory_space<vmem>>, vector<1x4x8xf32>
    %40 = vector.shape_cast %39 : vector<1x4x8xf32> to vector<4x8xf32>
    %cst_38 = arith.constant dense<0.000000e+00> : vector<64x8xf32>
    %41 = tpu.matmul %38, %40, %cst_38 {dimension_numbers = #tpu.dot_dimension_numbers<[1], [0], [0], [1], [0, 0, 1, 1], [], []>} : vector<64x4xf32>, vector<4x8xf32>, vector<64x8xf32> -> vector<64x8xf32>
    %42 = arith.addf %35, %41 : vector<64x8xf32>
    %c0_39 = arith.constant 0 : index
    %c1_40 = arith.constant 1 : index
    %c0_41 = arith.constant 0 : index
    %c0_42 = arith.constant 0 : index
    %43 = vector.load %arg1[%c0_39, %c1_40, %c0_41, %c0_42] : memref<1x36x9x4xf32, #tpu.memory_space<vmem>>, vector<1x8x8x4xf32>
    %44 = vector.shape_cast %43 : vector<1x8x8x4xf32> to vector<8x8x4xf32>
    %45 = vector.shape_cast %44 : vector<8x8x4xf32> to vector<64x4xf32>
    %c6 = arith.constant 6 : index
    %c0_43 = arith.constant 0 : index
    %c0_44 = arith.constant 0 : index
    %46 = vector.load %arg3[%c6, %c0_43, %c0_44] : memref<9x4x8xf32, #tpu.memory_space<vmem>>, vector<1x4x8xf32>
    %47 = vector.shape_cast %46 : vector<1x4x8xf32> to vector<4x8xf32>
    %cst_45 = arith.constant dense<0.000000e+00> : vector<64x8xf32>
    %48 = tpu.matmul %45, %47, %cst_45 {dimension_numbers = #tpu.dot_dimension_numbers<[1], [0], [0], [1], [0, 0, 1, 1], [], []>} : vector<64x4xf32>, vector<4x8xf32>, vector<64x8xf32> -> vector<64x8xf32>
    %49 = arith.addf %42, %48 : vector<64x8xf32>
    %c0_46 = arith.constant 0 : index
    %c10 = arith.constant 10 : index
    %c0_47 = arith.constant 0 : index
    %c0_48 = arith.constant 0 : index
    %50 = vector.load %arg1[%c0_46, %c10, %c0_47, %c0_48] : memref<1x36x9x4xf32, #tpu.memory_space<vmem>>, vector<1x8x8x4xf32>
    %51 = vector.shape_cast %50 : vector<1x8x8x4xf32> to vector<8x8x4xf32>
    %52 = vector.shape_cast %51 : vector<8x8x4xf32> to vector<64x4xf32>
    %c7 = arith.constant 7 : index
    %c0_49 = arith.constant 0 : index
    %c0_50 = arith.constant 0 : index
    %53 = vector.load %arg3[%c7, %c0_49, %c0_50] : memref<9x4x8xf32, #tpu.memory_space<vmem>>, vector<1x4x8xf32>
    %54 = vector.shape_cast %53 : vector<1x4x8xf32> to vector<4x8xf32>
    %cst_51 = arith.constant dense<0.000000e+00> : vector<64x8xf32>
    %55 = tpu.matmul %52, %54, %cst_51 {dimension_numbers = #tpu.dot_dimension_numbers<[1], [0], [0], [1], [0, 0, 1, 1], [], []>} : vector<64x4xf32>, vector<4x8xf32>, vector<64x8xf32> -> vector<64x8xf32>
    %56 = arith.addf %49, %55 : vector<64x8xf32>
    %c0_52 = arith.constant 0 : index
    %c1_53 = arith.constant 1 : index
    %c1_54 = arith.constant 1 : index
    %c0_55 = arith.constant 0 : index
    %57 = vector.load %arg1[%c0_52, %c1_53, %c1_54, %c0_55] : memref<1x36x9x4xf32, #tpu.memory_space<vmem>>, vector<1x8x8x4xf32>
    %58 = vector.shape_cast %57 : vector<1x8x8x4xf32> to vector<8x8x4xf32>
    %59 = vector.shape_cast %58 : vector<8x8x4xf32> to vector<64x4xf32>
    %c8 = arith.constant 8 : index
    %c0_56 = arith.constant 0 : index
    %c0_57 = arith.constant 0 : index
    %60 = vector.load %arg3[%c8, %c0_56, %c0_57] : memref<9x4x8xf32, #tpu.memory_space<vmem>>, vector<1x4x8xf32>
    %61 = vector.shape_cast %60 : vector<1x4x8xf32> to vector<4x8xf32>
    %cst_58 = arith.constant dense<0.000000e+00> : vector<64x8xf32>
    %62 = tpu.matmul %59, %61, %cst_58 {dimension_numbers = #tpu.dot_dimension_numbers<[1], [0], [0], [1], [0, 0, 1, 1], [], []>} : vector<64x4xf32>, vector<4x8xf32>, vector<64x8xf32> -> vector<64x8xf32>
    %63 = arith.addf %56, %62 : vector<64x8xf32>
    %c0_59 = arith.constant 0 : index
    %c0_60 = arith.constant 0 : index
    %c0_61 = arith.constant 0 : index
    %c0_62 = arith.constant 0 : index
    %64 = vector.load %arg2[%c0_59, %c0_60, %c0_61, %c0_62] : memref<1x8x8x8xf32, #tpu.memory_space<vmem>>, vector<1x8x8x8xf32>
    %65 = vector.shape_cast %64 : vector<1x8x8x8xf32> to vector<8x8x8xf32>
    %66 = vector.shape_cast %65 : vector<8x8x8xf32> to vector<64x8xf32>
    %cst_63 = arith.constant dense<0.000000e+00> : vector<8xf32>
    %67 = vector.multi_reduction <add>, %63, %cst_63 [0] : vector<64x8xf32> to vector<8xf32>
    %68 = vector.shape_cast %67 : vector<8xf32> to vector<1x8xf32>
    %cst_64 = arith.constant 6.400000e+01 : f32
    %69 = vector.broadcast %cst_64 : f32 to vector<1x8xf32>
    %70 = arith.divf %68, %69 : vector<1x8xf32>
    %71 = vector.broadcast %70 : vector<1x8xf32> to vector<64x8xf32>
    %72 = arith.subf %63, %71 : vector<64x8xf32>
    %73 = arith.mulf %72, %72 : vector<64x8xf32>
    %cst_65 = arith.constant dense<0.000000e+00> : vector<8xf32>
    %74 = vector.multi_reduction <add>, %73, %cst_65 [0] : vector<64x8xf32> to vector<8xf32>
    %75 = vector.shape_cast %74 : vector<8xf32> to vector<1x8xf32>
    %cst_66 = arith.constant 6.400000e+01 : f32
    %76 = vector.broadcast %cst_66 : f32 to vector<1x8xf32>
    %77 = arith.divf %75, %76 : vector<1x8xf32>
    %cst_67 = arith.constant 9.99999974E-6 : f32
    %78 = vector.broadcast %cst_67 : f32 to vector<1x8xf32>
    %79 = arith.addf %77, %78 : vector<1x8xf32>
    %80 = math.rsqrt %79 : vector<1x8xf32>
    %81 = vector.broadcast %80 : vector<1x8xf32> to vector<64x8xf32>
    %82 = arith.mulf %72, %81 : vector<64x8xf32>
    %c0_68 = arith.constant 0 : index
    %c0_69 = arith.constant 0 : index
    %83 = vector.load %arg4[%c0_68, %c0_69] : memref<1x8xf32, #tpu.memory_space<vmem>>, vector<1x8xf32>
    %84 = vector.broadcast %83 : vector<1x8xf32> to vector<64x8xf32>
    %85 = arith.mulf %82, %84 : vector<64x8xf32>
    %86 = arith.addf %66, %85 : vector<64x8xf32>
    %c0_70 = arith.constant 0 : index
    %c0_71 = arith.constant 0 : index
    %87 = vector.load %arg5[%c0_70, %c0_71] : memref<1x8xf32, #tpu.memory_space<vmem>>, vector<1x8xf32>
    %88 = vector.broadcast %87 : vector<1x8xf32> to vector<64x8xf32>
    %89 = arith.addf %86, %88 : vector<64x8xf32>
    %90 = vector.shape_cast %89 : vector<64x8xf32> to vector<8x8x8xf32>
    %c1_72 = arith.constant 1 : index
    %c1_73 = arith.constant 1 : index
    %c0_74 = arith.constant 0 : index
    %91 = vector.load %arg8[%c1_72, %c1_73, %c0_74] : memref<10x10x8xf32, #tpu.memory_space<vmem>>, vector<8x8x8xf32>
    tpu.vector_store %arg8[%c1_72, %c1_73, %c0_74], %90 {strides = array<i32>} : memref<10x10x8xf32, #tpu.memory_space<vmem>>, vector<8x8x8xf32>,
    %92 = vector.extract_strided_slice %90 {offsets = [1, 0, 0], sizes = [1, 8, 8], strides = [1, 1, 1]} : vector<8x8x8xf32> to vector<1x8x8xf32>
    %c0_75 = arith.constant 0 : index
    %c1_76 = arith.constant 1 : index
    %c0_77 = arith.constant 0 : index
    %93 = vector.load %arg8[%c0_75, %c1_76, %c0_77] : memref<10x10x8xf32, #tpu.memory_space<vmem>>, vector<1x8x8xf32>
    tpu.vector_store %arg8[%c0_75, %c1_76, %c0_77], %92 {strides = array<i32>} : memref<10x10x8xf32, #tpu.memory_space<vmem>>, vector<1x8x8xf32>,
    %94 = vector.extract_strided_slice %90 {offsets = [6, 0, 0], sizes = [1, 8, 8], strides = [1, 1, 1]} : vector<8x8x8xf32> to vector<1x8x8xf32>
    %c9_78 = arith.constant 9 : index
    %c1_79 = arith.constant 1 : index
    %c0_80 = arith.constant 0 : index
    %95 = vector.load %arg8[%c9_78, %c1_79, %c0_80] : memref<10x10x8xf32, #tpu.memory_space<vmem>>, vector<1x8x8xf32>
    tpu.vector_store %arg8[%c9_78, %c1_79, %c0_80], %94 {strides = array<i32>} : memref<10x10x8xf32, #tpu.memory_space<vmem>>, vector<1x8x8xf32>,
    %c0_81 = arith.constant 0 : index
    %c2_82 = arith.constant 2 : index
    %c0_83 = arith.constant 0 : index
    %96 = vector.load %arg8[%c0_81, %c2_82, %c0_83] : memref<10x10x8xf32, #tpu.memory_space<vmem>>, vector<10x1x8xf32>
    %c0_84 = arith.constant 0 : index
    %c0_85 = arith.constant 0 : index
    %c0_86 = arith.constant 0 : index
    %97 = vector.load %arg8[%c0_84, %c0_85, %c0_86] : memref<10x10x8xf32, #tpu.memory_space<vmem>>, vector<10x1x8xf32>
    tpu.vector_store %arg8[%c0_84, %c0_85, %c0_86], %96 {strides = array<i32>} : memref<10x10x8xf32, #tpu.memory_space<vmem>>, vector<10x1x8xf32>,
    %c0_87 = arith.constant 0 : index
    %c7_88 = arith.constant 7 : index
    %c0_89 = arith.constant 0 : index
    %98 = vector.load %arg8[%c0_87, %c7_88, %c0_89] : memref<10x10x8xf32, #tpu.memory_space<vmem>>, vector<10x1x8xf32>
    %c0_90 = arith.constant 0 : index
    %c9_91 = arith.constant 9 : index
    %c0_92 = arith.constant 0 : index
    %99 = vector.load %arg8[%c0_90, %c9_91, %c0_92] : memref<10x10x8xf32, #tpu.memory_space<vmem>>, vector<10x1x8xf32>
    tpu.vector_store %arg8[%c0_90, %c9_91, %c0_92], %98 {strides = array<i32>} : memref<10x10x8xf32, #tpu.memory_space<vmem>>, vector<10x1x8xf32>,
    %cst_93 = arith.constant 0.000000e+00 : f32
    %100 = vector.broadcast %cst_93 : f32 to vector<64x8xf32>
    %c0_94 = arith.constant 0 : index
    %c0_95 = arith.constant 0 : index
    %c0_96 = arith.constant 0 : index
    %101 = vector.load %arg8[%c0_94, %c0_95, %c0_96] : memref<10x10x8xf32, #tpu.memory_space<vmem>>, vector<10x8x8xf32>
    %102 = vector.extract_strided_slice %101 {offsets = [0, 0, 0], sizes = [8, 8, 8], strides = [1, 1, 1]} : vector<10x8x8xf32> to vector<8x8x8xf32>
    %103 = vector.shape_cast %102 : vector<8x8x8xf32> to vector<64x8xf32>
    %c0_97 = arith.constant 0 : index
    %c0_98 = arith.constant 0 : index
    %c0_99 = arith.constant 0 : index
    %104 = vector.load %arg6[%c0_97, %c0_98, %c0_99] : memref<36x8x8xf32, #tpu.memory_space<vmem>>, vector<1x8x8xf32>
    %105 = vector.shape_cast %104 : vector<1x8x8xf32> to vector<8x8xf32>
    %cst_100 = arith.constant dense<0.000000e+00> : vector<64x8xf32>
    %106 = tpu.matmul %103, %105, %cst_100 {dimension_numbers = #tpu.dot_dimension_numbers<[1], [0], [0], [1], [0, 0, 1, 1], [], []>} : vector<64x8xf32>, vector<8x8xf32>, vector<64x8xf32> -> vector<64x8xf32>
    %107 = arith.addf %100, %106 : vector<64x8xf32>
    %108 = vector.extract_strided_slice %101 {offsets = [1, 0, 0], sizes = [8, 8, 8], strides = [1, 1, 1]} : vector<10x8x8xf32> to vector<8x8x8xf32>
    %109 = vector.shape_cast %108 : vector<8x8x8xf32> to vector<64x8xf32>
    %c3_101 = arith.constant 3 : index
    %c0_102 = arith.constant 0 : index
    %c0_103 = arith.constant 0 : index
    %110 = vector.load %arg6[%c3_101, %c0_102, %c0_103] : memref<36x8x8xf32, #tpu.memory_space<vmem>>, vector<1x8x8xf32>
    %111 = vector.shape_cast %110 : vector<1x8x8xf32> to vector<8x8xf32>
    %cst_104 = arith.constant dense<0.000000e+00> : vector<64x8xf32>
    %112 = tpu.matmul %109, %111, %cst_104 {dimension_numbers = #tpu.dot_dimension_numbers<[1], [0], [0], [1], [0, 0, 1, 1], [], []>} : vector<64x8xf32>, vector<8x8xf32>, vector<64x8xf32> -> vector<64x8xf32>
    %113 = arith.addf %107, %112 : vector<64x8xf32>
    %114 = vector.extract_strided_slice %101 {offsets = [2, 0, 0], sizes = [8, 8, 8], strides = [1, 1, 1]} : vector<10x8x8xf32> to vector<8x8x8xf32>
    %115 = vector.shape_cast %114 : vector<8x8x8xf32> to vector<64x8xf32>
    %c6_105 = arith.constant 6 : index
    %c0_106 = arith.constant 0 : index
    %c0_107 = arith.constant 0 : index
    %116 = vector.load %arg6[%c6_105, %c0_106, %c0_107] : memref<36x8x8xf32, #tpu.memory_space<vmem>>, vector<1x8x8xf32>
    %117 = vector.shape_cast %116 : vector<1x8x8xf32> to vector<8x8xf32>
    %cst_108 = arith.constant dense<0.000000e+00> : vector<64x8xf32>
    %118 = tpu.matmul %115, %117, %cst_108 {dimension_numbers = #tpu.dot_dimension_numbers<[1], [0], [0], [1], [0, 0, 1, 1], [], []>} : vector<64x8xf32>, vector<8x8xf32>, vector<64x8xf32> -> vector<64x8xf32>
    %119 = arith.addf %113, %118 : vector<64x8xf32>
    %c0_109 = arith.constant 0 : index
    %c1_110 = arith.constant 1 : index
    %c0_111 = arith.constant 0 : index
    %120 = vector.load %arg8[%c0_109, %c1_110, %c0_111] : memref<10x10x8xf32, #tpu.memory_space<vmem>>, vector<10x8x8xf32>
    %121 = vector.extract_strided_slice %120 {offsets = [0, 0, 0], sizes = [8, 8, 8], strides = [1, 1, 1]} : vector<10x8x8xf32> to vector<8x8x8xf32>
    %122 = vector.shape_cast %121 : vector<8x8x8xf32> to vector<64x8xf32>
    %c1_112 = arith.constant 1 : index
    %c0_113 = arith.constant 0 : index
    %c0_114 = arith.constant 0 : index
    %123 = vector.load %arg6[%c1_112, %c0_113, %c0_114] : memref<36x8x8xf32, #tpu.memory_space<vmem>>, vector<1x8x8xf32>
    %124 = vector.shape_cast %123 : vector<1x8x8xf32> to vector<8x8xf32>
    %cst_115 = arith.constant dense<0.000000e+00> : vector<64x8xf32>
    %125 = tpu.matmul %122, %124, %cst_115 {dimension_numbers = #tpu.dot_dimension_numbers<[1], [0], [0], [1], [0, 0, 1, 1], [], []>} : vector<64x8xf32>, vector<8x8xf32>, vector<64x8xf32> -> vector<64x8xf32>
    %126 = arith.addf %119, %125 : vector<64x8xf32>
    %127 = vector.extract_strided_slice %120 {offsets = [1, 0, 0], sizes = [8, 8, 8], strides = [1, 1, 1]} : vector<10x8x8xf32> to vector<8x8x8xf32>
    %128 = vector.shape_cast %127 : vector<8x8x8xf32> to vector<64x8xf32>
    %c4_116 = arith.constant 4 : index
    %c0_117 = arith.constant 0 : index
    %c0_118 = arith.constant 0 : index
    %129 = vector.load %arg6[%c4_116, %c0_117, %c0_118] : memref<36x8x8xf32, #tpu.memory_space<vmem>>, vector<1x8x8xf32>
    %130 = vector.shape_cast %129 : vector<1x8x8xf32> to vector<8x8xf32>
    %cst_119 = arith.constant dense<0.000000e+00> : vector<64x8xf32>
    %131 = tpu.matmul %128, %130, %cst_119 {dimension_numbers = #tpu.dot_dimension_numbers<[1], [0], [0], [1], [0, 0, 1, 1], [], []>} : vector<64x8xf32>, vector<8x8xf32>, vector<64x8xf32> -> vector<64x8xf32>
    %132 = arith.addf %126, %131 : vector<64x8xf32>
    %133 = vector.extract_strided_slice %120 {offsets = [2, 0, 0], sizes = [8, 8, 8], strides = [1, 1, 1]} : vector<10x8x8xf32> to vector<8x8x8xf32>
    %134 = vector.shape_cast %133 : vector<8x8x8xf32> to vector<64x8xf32>
    %c7_120 = arith.constant 7 : index
    %c0_121 = arith.constant 0 : index
    %c0_122 = arith.constant 0 : index
    %135 = vector.load %arg6[%c7_120, %c0_121, %c0_122] : memref<36x8x8xf32, #tpu.memory_space<vmem>>, vector<1x8x8xf32>
    %136 = vector.shape_cast %135 : vector<1x8x8xf32> to vector<8x8xf32>
    %cst_123 = arith.constant dense<0.000000e+00> : vector<64x8xf32>
    %137 = tpu.matmul %134, %136, %cst_123 {dimension_numbers = #tpu.dot_dimension_numbers<[1], [0], [0], [1], [0, 0, 1, 1], [], []>} : vector<64x8xf32>, vector<8x8xf32>, vector<64x8xf32> -> vector<64x8xf32>
    %138 = arith.addf %132, %137 : vector<64x8xf32>
    %c0_124 = arith.constant 0 : index
    %c2_125 = arith.constant 2 : index
    %c0_126 = arith.constant 0 : index
    %139 = vector.load %arg8[%c0_124, %c2_125, %c0_126] : memref<10x10x8xf32, #tpu.memory_space<vmem>>, vector<10x8x8xf32>
    %140 = vector.extract_strided_slice %139 {offsets = [0, 0, 0], sizes = [8, 8, 8], strides = [1, 1, 1]} : vector<10x8x8xf32> to vector<8x8x8xf32>
    %141 = vector.shape_cast %140 : vector<8x8x8xf32> to vector<64x8xf32>
    %c2_127 = arith.constant 2 : index
    %c0_128 = arith.constant 0 : index
    %c0_129 = arith.constant 0 : index
    %142 = vector.load %arg6[%c2_127, %c0_128, %c0_129] : memref<36x8x8xf32, #tpu.memory_space<vmem>>, vector<1x8x8xf32>
    %143 = vector.shape_cast %142 : vector<1x8x8xf32> to vector<8x8xf32>
    %cst_130 = arith.constant dense<0.000000e+00> : vector<64x8xf32>
    %144 = tpu.matmul %141, %143, %cst_130 {dimension_numbers = #tpu.dot_dimension_numbers<[1], [0], [0], [1], [0, 0, 1, 1], [], []>} : vector<64x8xf32>, vector<8x8xf32>, vector<64x8xf32> -> vector<64x8xf32>
    %145 = arith.addf %138, %144 : vector<64x8xf32>
    %146 = vector.extract_strided_slice %139 {offsets = [1, 0, 0], sizes = [8, 8, 8], strides = [1, 1, 1]} : vector<10x8x8xf32> to vector<8x8x8xf32>
    %147 = vector.shape_cast %146 : vector<8x8x8xf32> to vector<64x8xf32>
    %c5_131 = arith.constant 5 : index
    %c0_132 = arith.constant 0 : index
    %c0_133 = arith.constant 0 : index
    %148 = vector.load %arg6[%c5_131, %c0_132, %c0_133] : memref<36x8x8xf32, #tpu.memory_space<vmem>>, vector<1x8x8xf32>
    %149 = vector.shape_cast %148 : vector<1x8x8xf32> to vector<8x8xf32>
    %cst_134 = arith.constant dense<0.000000e+00> : vector<64x8xf32>
    %150 = tpu.matmul %147, %149, %cst_134 {dimension_numbers = #tpu.dot_dimension_numbers<[1], [0], [0], [1], [0, 0, 1, 1], [], []>} : vector<64x8xf32>, vector<8x8xf32>, vector<64x8xf32> -> vector<64x8xf32>
    %151 = arith.addf %145, %150 : vector<64x8xf32>
    %152 = vector.extract_strided_slice %139 {offsets = [2, 0, 0], sizes = [8, 8, 8], strides = [1, 1, 1]} : vector<10x8x8xf32> to vector<8x8x8xf32>
    %153 = vector.shape_cast %152 : vector<8x8x8xf32> to vector<64x8xf32>
    %c8_135 = arith.constant 8 : index
    %c0_136 = arith.constant 0 : index
    %c0_137 = arith.constant 0 : index
    %154 = vector.load %arg6[%c8_135, %c0_136, %c0_137] : memref<36x8x8xf32, #tpu.memory_space<vmem>>, vector<1x8x8xf32>
    %155 = vector.shape_cast %154 : vector<1x8x8xf32> to vector<8x8xf32>
    %cst_138 = arith.constant dense<0.000000e+00> : vector<64x8xf32>
    %156 = tpu.matmul %153, %155, %cst_138 {dimension_numbers = #tpu.dot_dimension_numbers<[1], [0], [0], [1], [0, 0, 1, 1], [], []>} : vector<64x8xf32>, vector<8x8xf32>, vector<64x8xf32> -> vector<64x8xf32>
    %157 = arith.addf %151, %156 : vector<64x8xf32>
    %cst_139 = arith.constant dense<0.000000e+00> : vector<8xf32>
    %158 = vector.multi_reduction <add>, %157, %cst_139 [0] : vector<64x8xf32> to vector<8xf32>
    %159 = vector.shape_cast %158 : vector<8xf32> to vector<1x8xf32>
    %cst_140 = arith.constant 6.400000e+01 : f32
    %160 = vector.broadcast %cst_140 : f32 to vector<1x8xf32>
    %161 = arith.divf %159, %160 : vector<1x8xf32>
    %162 = vector.broadcast %161 : vector<1x8xf32> to vector<64x8xf32>
    %163 = arith.subf %157, %162 : vector<64x8xf32>
    %164 = arith.mulf %163, %163 : vector<64x8xf32>
    %cst_141 = arith.constant dense<0.000000e+00> : vector<8xf32>
    %165 = vector.multi_reduction <add>, %164, %cst_141 [0] : vector<64x8xf32> to vector<8xf32>
    %166 = vector.shape_cast %165 : vector<8xf32> to vector<1x8xf32>
    %cst_142 = arith.constant 6.400000e+01 : f32
    %167 = vector.broadcast %cst_142 : f32 to vector<1x8xf32>
    %168 = arith.divf %166, %167 : vector<1x8xf32>
    %cst_143 = arith.constant 9.99999974E-6 : f32
    %169 = vector.broadcast %cst_143 : f32 to vector<1x8xf32>
    %170 = arith.addf %168, %169 : vector<1x8xf32>
    %171 = math.rsqrt %170 : vector<1x8xf32>
    %172 = vector.broadcast %171 : vector<1x8xf32> to vector<64x8xf32>
    %173 = arith.mulf %163, %172 : vector<64x8xf32>
    %cst_144 = arith.constant 0.000000e+00 : f32
    %174 = vector.broadcast %cst_144 : f32 to vector<64x8xf32>
    %175 = arith.cmpf oge, %173, %174 : vector<64x8xf32>
    %cst_145 = arith.constant 0.00999999977 : f32
    %176 = vector.broadcast %cst_145 : f32 to vector<64x8xf32>
    %177 = arith.mulf %176, %173 : vector<64x8xf32>
    %178 = arith.select %175, %173, %177 : vector<64x8xi1>, vector<64x8xf32>
    %179 = vector.shape_cast %178 : vector<64x8xf32> to vector<8x8x8xf32>
    %c1_146 = arith.constant 1 : index
    %c1_147 = arith.constant 1 : index
    %c0_148 = arith.constant 0 : index
    %180 = vector.load %arg8[%c1_146, %c1_147, %c0_148] : memref<10x10x8xf32, #tpu.memory_space<vmem>>, vector<8x8x8xf32>
    tpu.vector_store %arg8[%c1_146, %c1_147, %c0_148], %179 {strides = array<i32>} : memref<10x10x8xf32, #tpu.memory_space<vmem>>, vector<8x8x8xf32>,
    %181 = vector.extract_strided_slice %179 {offsets = [1, 0, 0], sizes = [1, 8, 8], strides = [1, 1, 1]} : vector<8x8x8xf32> to vector<1x8x8xf32>
    %c0_149 = arith.constant 0 : index
    %c1_150 = arith.constant 1 : index
    %c0_151 = arith.constant 0 : index
    %182 = vector.load %arg8[%c0_149, %c1_150, %c0_151] : memref<10x10x8xf32, #tpu.memory_space<vmem>>, vector<1x8x8xf32>
    tpu.vector_store %arg8[%c0_149, %c1_150, %c0_151], %181 {strides = array<i32>} : memref<10x10x8xf32, #tpu.memory_space<vmem>>, vector<1x8x8xf32>,
    %183 = vector.extract_strided_slice %179 {offsets = [6, 0, 0], sizes = [1, 8, 8], strides = [1, 1, 1]} : vector<8x8x8xf32> to vector<1x8x8xf32>
    %c9_152 = arith.constant 9 : index
    %c1_153 = arith.constant 1 : index
    %c0_154 = arith.constant 0 : index
    %184 = vector.load %arg8[%c9_152, %c1_153, %c0_154] : memref<10x10x8xf32, #tpu.memory_space<vmem>>, vector<1x8x8xf32>
    tpu.vector_store %arg8[%c9_152, %c1_153, %c0_154], %183 {strides = array<i32>} : memref<10x10x8xf32, #tpu.memory_space<vmem>>, vector<1x8x8xf32>,
    %c0_155 = arith.constant 0 : index
    %c2_156 = arith.constant 2 : index
    %c0_157 = arith.constant 0 : index
    %185 = vector.load %arg8[%c0_155, %c2_156, %c0_157] : memref<10x10x8xf32, #tpu.memory_space<vmem>>, vector<10x1x8xf32>
    %c0_158 = arith.constant 0 : index
    %c0_159 = arith.constant 0 : index
    %c0_160 = arith.constant 0 : index
    %186 = vector.load %arg8[%c0_158, %c0_159, %c0_160] : memref<10x10x8xf32, #tpu.memory_space<vmem>>, vector<10x1x8xf32>
    tpu.vector_store %arg8[%c0_158, %c0_159, %c0_160], %185 {strides = array<i32>} : memref<10x10x8xf32, #tpu.memory_space<vmem>>, vector<10x1x8xf32>,
    %c0_161 = arith.constant 0 : index
    %c7_162 = arith.constant 7 : index
    %c0_163 = arith.constant 0 : index
    %187 = vector.load %arg8[%c0_161, %c7_162, %c0_163] : memref<10x10x8xf32, #tpu.memory_space<vmem>>, vector<10x1x8xf32>
    %c0_164 = arith.constant 0 : index
    %c9_165 = arith.constant 9 : index
    %c0_166 = arith.constant 0 : index
    %188 = vector.load %arg8[%c0_164, %c9_165, %c0_166] : memref<10x10x8xf32, #tpu.memory_space<vmem>>, vector<10x1x8xf32>
    tpu.vector_store %arg8[%c0_164, %c9_165, %c0_166], %187 {strides = array<i32>} : memref<10x10x8xf32, #tpu.memory_space<vmem>>, vector<10x1x8xf32>,
    %cst_167 = arith.constant 0.000000e+00 : f32
    %189 = vector.broadcast %cst_167 : f32 to vector<64x8xf32>
    %c0_168 = arith.constant 0 : index
    %c0_169 = arith.constant 0 : index
    %c0_170 = arith.constant 0 : index
    %190 = vector.load %arg8[%c0_168, %c0_169, %c0_170] : memref<10x10x8xf32, #tpu.memory_space<vmem>>, vector<10x8x8xf32>
    %191 = vector.extract_strided_slice %190 {offsets = [0, 0, 0], sizes = [8, 8, 8], strides = [1, 1, 1]} : vector<10x8x8xf32> to vector<8x8x8xf32>
    %192 = vector.shape_cast %191 : vector<8x8x8xf32> to vector<64x8xf32>
    %c9_171 = arith.constant 9 : index
    %c0_172 = arith.constant 0 : index
    %c0_173 = arith.constant 0 : index
    %193 = vector.load %arg6[%c9_171, %c0_172, %c0_173] : memref<36x8x8xf32, #tpu.memory_space<vmem>>, vector<1x8x8xf32>
    %194 = vector.shape_cast %193 : vector<1x8x8xf32> to vector<8x8xf32>
    %cst_174 = arith.constant dense<0.000000e+00> : vector<64x8xf32>
    %195 = tpu.matmul %192, %194, %cst_174 {dimension_numbers = #tpu.dot_dimension_numbers<[1], [0], [0], [1], [0, 0, 1, 1], [], []>} : vector<64x8xf32>, vector<8x8xf32>, vector<64x8xf32> -> vector<64x8xf32>
    %196 = arith.addf %189, %195 : vector<64x8xf32>
    %197 = vector.extract_strided_slice %190 {offsets = [1, 0, 0], sizes = [8, 8, 8], strides = [1, 1, 1]} : vector<10x8x8xf32> to vector<8x8x8xf32>
    %198 = vector.shape_cast %197 : vector<8x8x8xf32> to vector<64x8xf32>
    %c12 = arith.constant 12 : index
    %c0_175 = arith.constant 0 : index
    %c0_176 = arith.constant 0 : index
    %199 = vector.load %arg6[%c12, %c0_175, %c0_176] : memref<36x8x8xf32, #tpu.memory_space<vmem>>, vector<1x8x8xf32>
    %200 = vector.shape_cast %199 : vector<1x8x8xf32> to vector<8x8xf32>
    %cst_177 = arith.constant dense<0.000000e+00> : vector<64x8xf32>
    %201 = tpu.matmul %198, %200, %cst_177 {dimension_numbers = #tpu.dot_dimension_numbers<[1], [0], [0], [1], [0, 0, 1, 1], [], []>} : vector<64x8xf32>, vector<8x8xf32>, vector<64x8xf32> -> vector<64x8xf32>
    %202 = arith.addf %196, %201 : vector<64x8xf32>
    %203 = vector.extract_strided_slice %190 {offsets = [2, 0, 0], sizes = [8, 8, 8], strides = [1, 1, 1]} : vector<10x8x8xf32> to vector<8x8x8xf32>
    %204 = vector.shape_cast %203 : vector<8x8x8xf32> to vector<64x8xf32>
    %c15 = arith.constant 15 : index
    %c0_178 = arith.constant 0 : index
    %c0_179 = arith.constant 0 : index
    %205 = vector.load %arg6[%c15, %c0_178, %c0_179] : memref<36x8x8xf32, #tpu.memory_space<vmem>>, vector<1x8x8xf32>
    %206 = vector.shape_cast %205 : vector<1x8x8xf32> to vector<8x8xf32>
    %cst_180 = arith.constant dense<0.000000e+00> : vector<64x8xf32>
    %207 = tpu.matmul %204, %206, %cst_180 {dimension_numbers = #tpu.dot_dimension_numbers<[1], [0], [0], [1], [0, 0, 1, 1], [], []>} : vector<64x8xf32>, vector<8x8xf32>, vector<64x8xf32> -> vector<64x8xf32>
    %208 = arith.addf %202, %207 : vector<64x8xf32>
    %c0_181 = arith.constant 0 : index
    %c1_182 = arith.constant 1 : index
    %c0_183 = arith.constant 0 : index
    %209 = vector.load %arg8[%c0_181, %c1_182, %c0_183] : memref<10x10x8xf32, #tpu.memory_space<vmem>>, vector<10x8x8xf32>
    %210 = vector.extract_strided_slice %209 {offsets = [0, 0, 0], sizes = [8, 8, 8], strides = [1, 1, 1]} : vector<10x8x8xf32> to vector<8x8x8xf32>
    %211 = vector.shape_cast %210 : vector<8x8x8xf32> to vector<64x8xf32>
    %c10_184 = arith.constant 10 : index
    %c0_185 = arith.constant 0 : index
    %c0_186 = arith.constant 0 : index
    %212 = vector.load %arg6[%c10_184, %c0_185, %c0_186] : memref<36x8x8xf32, #tpu.memory_space<vmem>>, vector<1x8x8xf32>
    %213 = vector.shape_cast %212 : vector<1x8x8xf32> to vector<8x8xf32>
    %cst_187 = arith.constant dense<0.000000e+00> : vector<64x8xf32>
    %214 = tpu.matmul %211, %213, %cst_187 {dimension_numbers = #tpu.dot_dimension_numbers<[1], [0], [0], [1], [0, 0, 1, 1], [], []>} : vector<64x8xf32>, vector<8x8xf32>, vector<64x8xf32> -> vector<64x8xf32>
    %215 = arith.addf %208, %214 : vector<64x8xf32>
    %216 = vector.extract_strided_slice %209 {offsets = [1, 0, 0], sizes = [8, 8, 8], strides = [1, 1, 1]} : vector<10x8x8xf32> to vector<8x8x8xf32>
    %217 = vector.shape_cast %216 : vector<8x8x8xf32> to vector<64x8xf32>
    %c13 = arith.constant 13 : index
    %c0_188 = arith.constant 0 : index
    %c0_189 = arith.constant 0 : index
    %218 = vector.load %arg6[%c13, %c0_188, %c0_189] : memref<36x8x8xf32, #tpu.memory_space<vmem>>, vector<1x8x8xf32>
    %219 = vector.shape_cast %218 : vector<1x8x8xf32> to vector<8x8xf32>
    %cst_190 = arith.constant dense<0.000000e+00> : vector<64x8xf32>
    %220 = tpu.matmul %217, %219, %cst_190 {dimension_numbers = #tpu.dot_dimension_numbers<[1], [0], [0], [1], [0, 0, 1, 1], [], []>} : vector<64x8xf32>, vector<8x8xf32>, vector<64x8xf32> -> vector<64x8xf32>
    %221 = arith.addf %215, %220 : vector<64x8xf32>
    %222 = vector.extract_strided_slice %209 {offsets = [2, 0, 0], sizes = [8, 8, 8], strides = [1, 1, 1]} : vector<10x8x8xf32> to vector<8x8x8xf32>
    %223 = vector.shape_cast %222 : vector<8x8x8xf32> to vector<64x8xf32>
    %c16 = arith.constant 16 : index
    %c0_191 = arith.constant 0 : index
    %c0_192 = arith.constant 0 : index
    %224 = vector.load %arg6[%c16, %c0_191, %c0_192] : memref<36x8x8xf32, #tpu.memory_space<vmem>>, vector<1x8x8xf32>
    %225 = vector.shape_cast %224 : vector<1x8x8xf32> to vector<8x8xf32>
    %cst_193 = arith.constant dense<0.000000e+00> : vector<64x8xf32>
    %226 = tpu.matmul %223, %225, %cst_193 {dimension_numbers = #tpu.dot_dimension_numbers<[1], [0], [0], [1], [0, 0, 1, 1], [], []>} : vector<64x8xf32>, vector<8x8xf32>, vector<64x8xf32> -> vector<64x8xf32>
    %227 = arith.addf %221, %226 : vector<64x8xf32>
    %c0_194 = arith.constant 0 : index
    %c2_195 = arith.constant 2 : index
    %c0_196 = arith.constant 0 : index
    %228 = vector.load %arg8[%c0_194, %c2_195, %c0_196] : memref<10x10x8xf32, #tpu.memory_space<vmem>>, vector<10x8x8xf32>
    %229 = vector.extract_strided_slice %228 {offsets = [0, 0, 0], sizes = [8, 8, 8], strides = [1, 1, 1]} : vector<10x8x8xf32> to vector<8x8x8xf32>
    %230 = vector.shape_cast %229 : vector<8x8x8xf32> to vector<64x8xf32>
    %c11 = arith.constant 11 : index
    %c0_197 = arith.constant 0 : index
    %c0_198 = arith.constant 0 : index
    %231 = vector.load %arg6[%c11, %c0_197, %c0_198] : memref<36x8x8xf32, #tpu.memory_space<vmem>>, vector<1x8x8xf32>
    %232 = vector.shape_cast %231 : vector<1x8x8xf32> to vector<8x8xf32>
    %cst_199 = arith.constant dense<0.000000e+00> : vector<64x8xf32>
    %233 = tpu.matmul %230, %232, %cst_199 {dimension_numbers = #tpu.dot_dimension_numbers<[1], [0], [0], [1], [0, 0, 1, 1], [], []>} : vector<64x8xf32>, vector<8x8xf32>, vector<64x8xf32> -> vector<64x8xf32>
    %234 = arith.addf %227, %233 : vector<64x8xf32>
    %235 = vector.extract_strided_slice %228 {offsets = [1, 0, 0], sizes = [8, 8, 8], strides = [1, 1, 1]} : vector<10x8x8xf32> to vector<8x8x8xf32>
    %236 = vector.shape_cast %235 : vector<8x8x8xf32> to vector<64x8xf32>
    %c14 = arith.constant 14 : index
    %c0_200 = arith.constant 0 : index
    %c0_201 = arith.constant 0 : index
    %237 = vector.load %arg6[%c14, %c0_200, %c0_201] : memref<36x8x8xf32, #tpu.memory_space<vmem>>, vector<1x8x8xf32>
    %238 = vector.shape_cast %237 : vector<1x8x8xf32> to vector<8x8xf32>
    %cst_202 = arith.constant dense<0.000000e+00> : vector<64x8xf32>
    %239 = tpu.matmul %236, %238, %cst_202 {dimension_numbers = #tpu.dot_dimension_numbers<[1], [0], [0], [1], [0, 0, 1, 1], [], []>} : vector<64x8xf32>, vector<8x8xf32>, vector<64x8xf32> -> vector<64x8xf32>
    %240 = arith.addf %234, %239 : vector<64x8xf32>
    %241 = vector.extract_strided_slice %228 {offsets = [2, 0, 0], sizes = [8, 8, 8], strides = [1, 1, 1]} : vector<10x8x8xf32> to vector<8x8x8xf32>
    %242 = vector.shape_cast %241 : vector<8x8x8xf32> to vector<64x8xf32>
    %c17 = arith.constant 17 : index
    %c0_203 = arith.constant 0 : index
    %c0_204 = arith.constant 0 : index
    %243 = vector.load %arg6[%c17, %c0_203, %c0_204] : memref<36x8x8xf32, #tpu.memory_space<vmem>>, vector<1x8x8xf32>
    %244 = vector.shape_cast %243 : vector<1x8x8xf32> to vector<8x8xf32>
    %cst_205 = arith.constant dense<0.000000e+00> : vector<64x8xf32>
    %245 = tpu.matmul %242, %244, %cst_205 {dimension_numbers = #tpu.dot_dimension_numbers<[1], [0], [0], [1], [0, 0, 1, 1], [], []>} : vector<64x8xf32>, vector<8x8xf32>, vector<64x8xf32> -> vector<64x8xf32>
    %246 = arith.addf %240, %245 : vector<64x8xf32>
    %cst_206 = arith.constant dense<0.000000e+00> : vector<8xf32>
    %247 = vector.multi_reduction <add>, %246, %cst_206 [0] : vector<64x8xf32> to vector<8xf32>
    %248 = vector.shape_cast %247 : vector<8xf32> to vector<1x8xf32>
    %cst_207 = arith.constant 6.400000e+01 : f32
    %249 = vector.broadcast %cst_207 : f32 to vector<1x8xf32>
    %250 = arith.divf %248, %249 : vector<1x8xf32>
    %251 = vector.broadcast %250 : vector<1x8xf32> to vector<64x8xf32>
    %252 = arith.subf %246, %251 : vector<64x8xf32>
    %253 = arith.mulf %252, %252 : vector<64x8xf32>
    %cst_208 = arith.constant dense<0.000000e+00> : vector<8xf32>
    %254 = vector.multi_reduction <add>, %253, %cst_208 [0] : vector<64x8xf32> to vector<8xf32>
    %255 = vector.shape_cast %254 : vector<8xf32> to vector<1x8xf32>
    %cst_209 = arith.constant 6.400000e+01 : f32
    %256 = vector.broadcast %cst_209 : f32 to vector<1x8xf32>
    %257 = arith.divf %255, %256 : vector<1x8xf32>
    %cst_210 = arith.constant 9.99999974E-6 : f32
    %258 = vector.broadcast %cst_210 : f32 to vector<1x8xf32>
    %259 = arith.addf %257, %258 : vector<1x8xf32>
    %260 = math.rsqrt %259 : vector<1x8xf32>
    %261 = vector.broadcast %260 : vector<1x8xf32> to vector<64x8xf32>
    %262 = arith.mulf %252, %261 : vector<64x8xf32>
    %263 = arith.addf %89, %262 : vector<64x8xf32>
    %264 = vector.shape_cast %263 : vector<64x8xf32> to vector<8x8x8xf32>
    %c1_211 = arith.constant 1 : index
    %c1_212 = arith.constant 1 : index
    %c0_213 = arith.constant 0 : index
    %265 = vector.load %arg8[%c1_211, %c1_212, %c0_213] : memref<10x10x8xf32, #tpu.memory_space<vmem>>, vector<8x8x8xf32>
    tpu.vector_store %arg8[%c1_211, %c1_212, %c0_213], %264 {strides = array<i32>} : memref<10x10x8xf32, #tpu.memory_space<vmem>>, vector<8x8x8xf32>,
    %266 = vector.extract_strided_slice %264 {offsets = [1, 0, 0], sizes = [1, 8, 8], strides = [1, 1, 1]} : vector<8x8x8xf32> to vector<1x8x8xf32>
    %c0_214 = arith.constant 0 : index
    %c1_215 = arith.constant 1 : index
    %c0_216 = arith.constant 0 : index
    %267 = vector.load %arg8[%c0_214, %c1_215, %c0_216] : memref<10x10x8xf32, #tpu.memory_space<vmem>>, vector<1x8x8xf32>
    tpu.vector_store %arg8[%c0_214, %c1_215, %c0_216], %266 {strides = array<i32>} : memref<10x10x8xf32, #tpu.memory_space<vmem>>, vector<1x8x8xf32>,
    %268 = vector.extract_strided_slice %264 {offsets = [6, 0, 0], sizes = [1, 8, 8], strides = [1, 1, 1]} : vector<8x8x8xf32> to vector<1x8x8xf32>
    %c9_217 = arith.constant 9 : index
    %c1_218 = arith.constant 1 : index
    %c0_219 = arith.constant 0 : index
    %269 = vector.load %arg8[%c9_217, %c1_218, %c0_219] : memref<10x10x8xf32, #tpu.memory_space<vmem>>, vector<1x8x8xf32>
    tpu.vector_store %arg8[%c9_217, %c1_218, %c0_219], %268 {strides = array<i32>} : memref<10x10x8xf32, #tpu.memory_space<vmem>>, vector<1x8x8xf32>,
    %c0_220 = arith.constant 0 : index
    %c2_221 = arith.constant 2 : index
    %c0_222 = arith.constant 0 : index
    %270 = vector.load %arg8[%c0_220, %c2_221, %c0_222] : memref<10x10x8xf32, #tpu.memory_space<vmem>>, vector<10x1x8xf32>
    %c0_223 = arith.constant 0 : index
    %c0_224 = arith.constant 0 : index
    %c0_225 = arith.constant 0 : index
    %271 = vector.load %arg8[%c0_223, %c0_224, %c0_225] : memref<10x10x8xf32, #tpu.memory_space<vmem>>, vector<10x1x8xf32>
    tpu.vector_store %arg8[%c0_223, %c0_224, %c0_225], %270 {strides = array<i32>} : memref<10x10x8xf32, #tpu.memory_space<vmem>>, vector<10x1x8xf32>,
    %c0_226 = arith.constant 0 : index
    %c7_227 = arith.constant 7 : index
    %c0_228 = arith.constant 0 : index
    %272 = vector.load %arg8[%c0_226, %c7_227, %c0_228] : memref<10x10x8xf32, #tpu.memory_space<vmem>>, vector<10x1x8xf32>
    %c0_229 = arith.constant 0 : index
    %c9_230 = arith.constant 9 : index
    %c0_231 = arith.constant 0 : index
    %273 = vector.load %arg8[%c0_229, %c9_230, %c0_231] : memref<10x10x8xf32, #tpu.memory_space<vmem>>, vector<10x1x8xf32>
    tpu.vector_store %arg8[%c0_229, %c9_230, %c0_231], %272 {strides = array<i32>} : memref<10x10x8xf32, #tpu.memory_space<vmem>>, vector<10x1x8xf32>,
    %cst_232 = arith.constant 0.000000e+00 : f32
    %274 = vector.broadcast %cst_232 : f32 to vector<64x8xf32>
    %c0_233 = arith.constant 0 : index
    %c0_234 = arith.constant 0 : index
    %c0_235 = arith.constant 0 : index
    %275 = vector.load %arg8[%c0_233, %c0_234, %c0_235] : memref<10x10x8xf32, #tpu.memory_space<vmem>>, vector<10x8x8xf32>
    %276 = vector.extract_strided_slice %275 {offsets = [0, 0, 0], sizes = [8, 8, 8], strides = [1, 1, 1]} : vector<10x8x8xf32> to vector<8x8x8xf32>
    %277 = vector.shape_cast %276 : vector<8x8x8xf32> to vector<64x8xf32>
    %c18_236 = arith.constant 18 : index
    %c0_237 = arith.constant 0 : index
    %c0_238 = arith.constant 0 : index
    %278 = vector.load %arg6[%c18_236, %c0_237, %c0_238] : memref<36x8x8xf32, #tpu.memory_space<vmem>>, vector<1x8x8xf32>
    %279 = vector.shape_cast %278 : vector<1x8x8xf32> to vector<8x8xf32>
    %cst_239 = arith.constant dense<0.000000e+00> : vector<64x8xf32>
    %280 = tpu.matmul %277, %279, %cst_239 {dimension_numbers = #tpu.dot_dimension_numbers<[1], [0], [0], [1], [0, 0, 1, 1], [], []>} : vector<64x8xf32>, vector<8x8xf32>, vector<64x8xf32> -> vector<64x8xf32>
    %281 = arith.addf %274, %280 : vector<64x8xf32>
    %282 = vector.extract_strided_slice %275 {offsets = [1, 0, 0], sizes = [8, 8, 8], strides = [1, 1, 1]} : vector<10x8x8xf32> to vector<8x8x8xf32>
    %283 = vector.shape_cast %282 : vector<8x8x8xf32> to vector<64x8xf32>
    %c21 = arith.constant 21 : index
    %c0_240 = arith.constant 0 : index
    %c0_241 = arith.constant 0 : index
    %284 = vector.load %arg6[%c21, %c0_240, %c0_241] : memref<36x8x8xf32, #tpu.memory_space<vmem>>, vector<1x8x8xf32>
    %285 = vector.shape_cast %284 : vector<1x8x8xf32> to vector<8x8xf32>
    %cst_242 = arith.constant dense<0.000000e+00> : vector<64x8xf32>
    %286 = tpu.matmul %283, %285, %cst_242 {dimension_numbers = #tpu.dot_dimension_numbers<[1], [0], [0], [1], [0, 0, 1, 1], [], []>} : vector<64x8xf32>, vector<8x8xf32>, vector<64x8xf32> -> vector<64x8xf32>
    %287 = arith.addf %281, %286 : vector<64x8xf32>
    %288 = vector.extract_strided_slice %275 {offsets = [2, 0, 0], sizes = [8, 8, 8], strides = [1, 1, 1]} : vector<10x8x8xf32> to vector<8x8x8xf32>
    %289 = vector.shape_cast %288 : vector<8x8x8xf32> to vector<64x8xf32>
    %c24 = arith.constant 24 : index
    %c0_243 = arith.constant 0 : index
    %c0_244 = arith.constant 0 : index
    %290 = vector.load %arg6[%c24, %c0_243, %c0_244] : memref<36x8x8xf32, #tpu.memory_space<vmem>>, vector<1x8x8xf32>
    %291 = vector.shape_cast %290 : vector<1x8x8xf32> to vector<8x8xf32>
    %cst_245 = arith.constant dense<0.000000e+00> : vector<64x8xf32>
    %292 = tpu.matmul %289, %291, %cst_245 {dimension_numbers = #tpu.dot_dimension_numbers<[1], [0], [0], [1], [0, 0, 1, 1], [], []>} : vector<64x8xf32>, vector<8x8xf32>, vector<64x8xf32> -> vector<64x8xf32>
    %293 = arith.addf %287, %292 : vector<64x8xf32>
    %c0_246 = arith.constant 0 : index
    %c1_247 = arith.constant 1 : index
    %c0_248 = arith.constant 0 : index
    %294 = vector.load %arg8[%c0_246, %c1_247, %c0_248] : memref<10x10x8xf32, #tpu.memory_space<vmem>>, vector<10x8x8xf32>
    %295 = vector.extract_strided_slice %294 {offsets = [0, 0, 0], sizes = [8, 8, 8], strides = [1, 1, 1]} : vector<10x8x8xf32> to vector<8x8x8xf32>
    %296 = vector.shape_cast %295 : vector<8x8x8xf32> to vector<64x8xf32>
    %c19 = arith.constant 19 : index
    %c0_249 = arith.constant 0 : index
    %c0_250 = arith.constant 0 : index
    %297 = vector.load %arg6[%c19, %c0_249, %c0_250] : memref<36x8x8xf32, #tpu.memory_space<vmem>>, vector<1x8x8xf32>
    %298 = vector.shape_cast %297 : vector<1x8x8xf32> to vector<8x8xf32>
    %cst_251 = arith.constant dense<0.000000e+00> : vector<64x8xf32>
    %299 = tpu.matmul %296, %298, %cst_251 {dimension_numbers = #tpu.dot_dimension_numbers<[1], [0], [0], [1], [0, 0, 1, 1], [], []>} : vector<64x8xf32>, vector<8x8xf32>, vector<64x8xf32> -> vector<64x8xf32>
    %300 = arith.addf %293, %299 : vector<64x8xf32>
    %301 = vector.extract_strided_slice %294 {offsets = [1, 0, 0], sizes = [8, 8, 8], strides = [1, 1, 1]} : vector<10x8x8xf32> to vector<8x8x8xf32>
    %302 = vector.shape_cast %301 : vector<8x8x8xf32> to vector<64x8xf32>
    %c22 = arith.constant 22 : index
    %c0_252 = arith.constant 0 : index
    %c0_253 = arith.constant 0 : index
    %303 = vector.load %arg6[%c22, %c0_252, %c0_253] : memref<36x8x8xf32, #tpu.memory_space<vmem>>, vector<1x8x8xf32>
    %304 = vector.shape_cast %303 : vector<1x8x8xf32> to vector<8x8xf32>
    %cst_254 = arith.constant dense<0.000000e+00> : vector<64x8xf32>
    %305 = tpu.matmul %302, %304, %cst_254 {dimension_numbers = #tpu.dot_dimension_numbers<[1], [0], [0], [1], [0, 0, 1, 1], [], []>} : vector<64x8xf32>, vector<8x8xf32>, vector<64x8xf32> -> vector<64x8xf32>
    %306 = arith.addf %300, %305 : vector<64x8xf32>
    %307 = vector.extract_strided_slice %294 {offsets = [2, 0, 0], sizes = [8, 8, 8], strides = [1, 1, 1]} : vector<10x8x8xf32> to vector<8x8x8xf32>
    %308 = vector.shape_cast %307 : vector<8x8x8xf32> to vector<64x8xf32>
    %c25 = arith.constant 25 : index
    %c0_255 = arith.constant 0 : index
    %c0_256 = arith.constant 0 : index
    %309 = vector.load %arg6[%c25, %c0_255, %c0_256] : memref<36x8x8xf32, #tpu.memory_space<vmem>>, vector<1x8x8xf32>
    %310 = vector.shape_cast %309 : vector<1x8x8xf32> to vector<8x8xf32>
    %cst_257 = arith.constant dense<0.000000e+00> : vector<64x8xf32>
    %311 = tpu.matmul %308, %310, %cst_257 {dimension_numbers = #tpu.dot_dimension_numbers<[1], [0], [0], [1], [0, 0, 1, 1], [], []>} : vector<64x8xf32>, vector<8x8xf32>, vector<64x8xf32> -> vector<64x8xf32>
    %312 = arith.addf %306, %311 : vector<64x8xf32>
    %c0_258 = arith.constant 0 : index
    %c2_259 = arith.constant 2 : index
    %c0_260 = arith.constant 0 : index
    %313 = vector.load %arg8[%c0_258, %c2_259, %c0_260] : memref<10x10x8xf32, #tpu.memory_space<vmem>>, vector<10x8x8xf32>
    %314 = vector.extract_strided_slice %313 {offsets = [0, 0, 0], sizes = [8, 8, 8], strides = [1, 1, 1]} : vector<10x8x8xf32> to vector<8x8x8xf32>
    %315 = vector.shape_cast %314 : vector<8x8x8xf32> to vector<64x8xf32>
    %c20 = arith.constant 20 : index
    %c0_261 = arith.constant 0 : index
    %c0_262 = arith.constant 0 : index
    %316 = vector.load %arg6[%c20, %c0_261, %c0_262] : memref<36x8x8xf32, #tpu.memory_space<vmem>>, vector<1x8x8xf32>
    %317 = vector.shape_cast %316 : vector<1x8x8xf32> to vector<8x8xf32>
    %cst_263 = arith.constant dense<0.000000e+00> : vector<64x8xf32>
    %318 = tpu.matmul %315, %317, %cst_263 {dimension_numbers = #tpu.dot_dimension_numbers<[1], [0], [0], [1], [0, 0, 1, 1], [], []>} : vector<64x8xf32>, vector<8x8xf32>, vector<64x8xf32> -> vector<64x8xf32>
    %319 = arith.addf %312, %318 : vector<64x8xf32>
    %320 = vector.extract_strided_slice %313 {offsets = [1, 0, 0], sizes = [8, 8, 8], strides = [1, 1, 1]} : vector<10x8x8xf32> to vector<8x8x8xf32>
    %321 = vector.shape_cast %320 : vector<8x8x8xf32> to vector<64x8xf32>
    %c23 = arith.constant 23 : index
    %c0_264 = arith.constant 0 : index
    %c0_265 = arith.constant 0 : index
    %322 = vector.load %arg6[%c23, %c0_264, %c0_265] : memref<36x8x8xf32, #tpu.memory_space<vmem>>, vector<1x8x8xf32>
    %323 = vector.shape_cast %322 : vector<1x8x8xf32> to vector<8x8xf32>
    %cst_266 = arith.constant dense<0.000000e+00> : vector<64x8xf32>
    %324 = tpu.matmul %321, %323, %cst_266 {dimension_numbers = #tpu.dot_dimension_numbers<[1], [0], [0], [1], [0, 0, 1, 1], [], []>} : vector<64x8xf32>, vector<8x8xf32>, vector<64x8xf32> -> vector<64x8xf32>
    %325 = arith.addf %319, %324 : vector<64x8xf32>
    %326 = vector.extract_strided_slice %313 {offsets = [2, 0, 0], sizes = [8, 8, 8], strides = [1, 1, 1]} : vector<10x8x8xf32> to vector<8x8x8xf32>
    %327 = vector.shape_cast %326 : vector<8x8x8xf32> to vector<64x8xf32>
    %c26 = arith.constant 26 : index
    %c0_267 = arith.constant 0 : index
    %c0_268 = arith.constant 0 : index
    %328 = vector.load %arg6[%c26, %c0_267, %c0_268] : memref<36x8x8xf32, #tpu.memory_space<vmem>>, vector<1x8x8xf32>
    %329 = vector.shape_cast %328 : vector<1x8x8xf32> to vector<8x8xf32>
    %cst_269 = arith.constant dense<0.000000e+00> : vector<64x8xf32>
    %330 = tpu.matmul %327, %329, %cst_269 {dimension_numbers = #tpu.dot_dimension_numbers<[1], [0], [0], [1], [0, 0, 1, 1], [], []>} : vector<64x8xf32>, vector<8x8xf32>, vector<64x8xf32> -> vector<64x8xf32>
    %331 = arith.addf %325, %330 : vector<64x8xf32>
    %cst_270 = arith.constant dense<0.000000e+00> : vector<8xf32>
    %332 = vector.multi_reduction <add>, %331, %cst_270 [0] : vector<64x8xf32> to vector<8xf32>
    %333 = vector.shape_cast %332 : vector<8xf32> to vector<1x8xf32>
    %cst_271 = arith.constant 6.400000e+01 : f32
    %334 = vector.broadcast %cst_271 : f32 to vector<1x8xf32>
    %335 = arith.divf %333, %334 : vector<1x8xf32>
    %336 = vector.broadcast %335 : vector<1x8xf32> to vector<64x8xf32>
    %337 = arith.subf %331, %336 : vector<64x8xf32>
    %338 = arith.mulf %337, %337 : vector<64x8xf32>
    %cst_272 = arith.constant dense<0.000000e+00> : vector<8xf32>
    %339 = vector.multi_reduction <add>, %338, %cst_272 [0] : vector<64x8xf32> to vector<8xf32>
    %340 = vector.shape_cast %339 : vector<8xf32> to vector<1x8xf32>
    %cst_273 = arith.constant 6.400000e+01 : f32
    %341 = vector.broadcast %cst_273 : f32 to vector<1x8xf32>
    %342 = arith.divf %340, %341 : vector<1x8xf32>
    %cst_274 = arith.constant 9.99999974E-6 : f32
    %343 = vector.broadcast %cst_274 : f32 to vector<1x8xf32>
    %344 = arith.addf %342, %343 : vector<1x8xf32>
    %345 = math.rsqrt %344 : vector<1x8xf32>
    %346 = vector.broadcast %345 : vector<1x8xf32> to vector<64x8xf32>
    %347 = arith.mulf %337, %346 : vector<64x8xf32>
    %cst_275 = arith.constant 0.000000e+00 : f32
    %348 = vector.broadcast %cst_275 : f32 to vector<64x8xf32>
    %349 = arith.cmpf oge, %347, %348 : vector<64x8xf32>
    %cst_276 = arith.constant 0.00999999977 : f32
    %350 = vector.broadcast %cst_276 : f32 to vector<64x8xf32>
    %351 = arith.mulf %350, %347 : vector<64x8xf32>
    %352 = arith.select %349, %347, %351 : vector<64x8xi1>, vector<64x8xf32>
    %353 = vector.shape_cast %352 : vector<64x8xf32> to vector<8x8x8xf32>
    %c1_277 = arith.constant 1 : index
    %c1_278 = arith.constant 1 : index
    %c0_279 = arith.constant 0 : index
    %354 = vector.load %arg8[%c1_277, %c1_278, %c0_279] : memref<10x10x8xf32, #tpu.memory_space<vmem>>, vector<8x8x8xf32>
    tpu.vector_store %arg8[%c1_277, %c1_278, %c0_279], %353 {strides = array<i32>} : memref<10x10x8xf32, #tpu.memory_space<vmem>>, vector<8x8x8xf32>,
    %355 = vector.extract_strided_slice %353 {offsets = [1, 0, 0], sizes = [1, 8, 8], strides = [1, 1, 1]} : vector<8x8x8xf32> to vector<1x8x8xf32>
    %c0_280 = arith.constant 0 : index
    %c1_281 = arith.constant 1 : index
    %c0_282 = arith.constant 0 : index
    %356 = vector.load %arg8[%c0_280, %c1_281, %c0_282] : memref<10x10x8xf32, #tpu.memory_space<vmem>>, vector<1x8x8xf32>
    tpu.vector_store %arg8[%c0_280, %c1_281, %c0_282], %355 {strides = array<i32>} : memref<10x10x8xf32, #tpu.memory_space<vmem>>, vector<1x8x8xf32>,
    %357 = vector.extract_strided_slice %353 {offsets = [6, 0, 0], sizes = [1, 8, 8], strides = [1, 1, 1]} : vector<8x8x8xf32> to vector<1x8x8xf32>
    %c9_283 = arith.constant 9 : index
    %c1_284 = arith.constant 1 : index
    %c0_285 = arith.constant 0 : index
    %358 = vector.load %arg8[%c9_283, %c1_284, %c0_285] : memref<10x10x8xf32, #tpu.memory_space<vmem>>, vector<1x8x8xf32>
    tpu.vector_store %arg8[%c9_283, %c1_284, %c0_285], %357 {strides = array<i32>} : memref<10x10x8xf32, #tpu.memory_space<vmem>>, vector<1x8x8xf32>,
    %c0_286 = arith.constant 0 : index
    %c2_287 = arith.constant 2 : index
    %c0_288 = arith.constant 0 : index
    %359 = vector.load %arg8[%c0_286, %c2_287, %c0_288] : memref<10x10x8xf32, #tpu.memory_space<vmem>>, vector<10x1x8xf32>
    %c0_289 = arith.constant 0 : index
    %c0_290 = arith.constant 0 : index
    %c0_291 = arith.constant 0 : index
    %360 = vector.load %arg8[%c0_289, %c0_290, %c0_291] : memref<10x10x8xf32, #tpu.memory_space<vmem>>, vector<10x1x8xf32>
    tpu.vector_store %arg8[%c0_289, %c0_290, %c0_291], %359 {strides = array<i32>} : memref<10x10x8xf32, #tpu.memory_space<vmem>>, vector<10x1x8xf32>,
    %c0_292 = arith.constant 0 : index
    %c7_293 = arith.constant 7 : index
    %c0_294 = arith.constant 0 : index
    %361 = vector.load %arg8[%c0_292, %c7_293, %c0_294] : memref<10x10x8xf32, #tpu.memory_space<vmem>>, vector<10x1x8xf32>
    %c0_295 = arith.constant 0 : index
    %c9_296 = arith.constant 9 : index
    %c0_297 = arith.constant 0 : index
    %362 = vector.load %arg8[%c0_295, %c9_296, %c0_297] : memref<10x10x8xf32, #tpu.memory_space<vmem>>, vector<10x1x8xf32>
    tpu.vector_store %arg8[%c0_295, %c9_296, %c0_297], %361 {strides = array<i32>} : memref<10x10x8xf32, #tpu.memory_space<vmem>>, vector<10x1x8xf32>,
    %cst_298 = arith.constant 0.000000e+00 : f32
    %363 = vector.broadcast %cst_298 : f32 to vector<64x8xf32>
    %c0_299 = arith.constant 0 : index
    %c0_300 = arith.constant 0 : index
    %c0_301 = arith.constant 0 : index
    %364 = vector.load %arg8[%c0_299, %c0_300, %c0_301] : memref<10x10x8xf32, #tpu.memory_space<vmem>>, vector<10x8x8xf32>
    %365 = vector.extract_strided_slice %364 {offsets = [0, 0, 0], sizes = [8, 8, 8], strides = [1, 1, 1]} : vector<10x8x8xf32> to vector<8x8x8xf32>
    %366 = vector.shape_cast %365 : vector<8x8x8xf32> to vector<64x8xf32>
    %c27_302 = arith.constant 27 : index
    %c0_303 = arith.constant 0 : index
    %c0_304 = arith.constant 0 : index
    %367 = vector.load %arg6[%c27_302, %c0_303, %c0_304] : memref<36x8x8xf32, #tpu.memory_space<vmem>>, vector<1x8x8xf32>
    %368 = vector.shape_cast %367 : vector<1x8x8xf32> to vector<8x8xf32>
    %cst_305 = arith.constant dense<0.000000e+00> : vector<64x8xf32>
    %369 = tpu.matmul %366, %368, %cst_305 {dimension_numbers = #tpu.dot_dimension_numbers<[1], [0], [0], [1], [0, 0, 1, 1], [], []>} : vector<64x8xf32>, vector<8x8xf32>, vector<64x8xf32> -> vector<64x8xf32>
    %370 = arith.addf %363, %369 : vector<64x8xf32>
    %371 = vector.extract_strided_slice %364 {offsets = [1, 0, 0], sizes = [8, 8, 8], strides = [1, 1, 1]} : vector<10x8x8xf32> to vector<8x8x8xf32>
    %372 = vector.shape_cast %371 : vector<8x8x8xf32> to vector<64x8xf32>
    %c30 = arith.constant 30 : index
    %c0_306 = arith.constant 0 : index
    %c0_307 = arith.constant 0 : index
    %373 = vector.load %arg6[%c30, %c0_306, %c0_307] : memref<36x8x8xf32, #tpu.memory_space<vmem>>, vector<1x8x8xf32>
    %374 = vector.shape_cast %373 : vector<1x8x8xf32> to vector<8x8xf32>
    %cst_308 = arith.constant dense<0.000000e+00> : vector<64x8xf32>
    %375 = tpu.matmul %372, %374, %cst_308 {dimension_numbers = #tpu.dot_dimension_numbers<[1], [0], [0], [1], [0, 0, 1, 1], [], []>} : vector<64x8xf32>, vector<8x8xf32>, vector<64x8xf32> -> vector<64x8xf32>
    %376 = arith.addf %370, %375 : vector<64x8xf32>
    %377 = vector.extract_strided_slice %364 {offsets = [2, 0, 0], sizes = [8, 8, 8], strides = [1, 1, 1]} : vector<10x8x8xf32> to vector<8x8x8xf32>
    %378 = vector.shape_cast %377 : vector<8x8x8xf32> to vector<64x8xf32>
    %c33 = arith.constant 33 : index
    %c0_309 = arith.constant 0 : index
    %c0_310 = arith.constant 0 : index
    %379 = vector.load %arg6[%c33, %c0_309, %c0_310] : memref<36x8x8xf32, #tpu.memory_space<vmem>>, vector<1x8x8xf32>
    %380 = vector.shape_cast %379 : vector<1x8x8xf32> to vector<8x8xf32>
    %cst_311 = arith.constant dense<0.000000e+00> : vector<64x8xf32>
    %381 = tpu.matmul %378, %380, %cst_311 {dimension_numbers = #tpu.dot_dimension_numbers<[1], [0], [0], [1], [0, 0, 1, 1], [], []>} : vector<64x8xf32>, vector<8x8xf32>, vector<64x8xf32> -> vector<64x8xf32>
    %382 = arith.addf %376, %381 : vector<64x8xf32>
    %c0_312 = arith.constant 0 : index
    %c1_313 = arith.constant 1 : index
    %c0_314 = arith.constant 0 : index
    %383 = vector.load %arg8[%c0_312, %c1_313, %c0_314] : memref<10x10x8xf32, #tpu.memory_space<vmem>>, vector<10x8x8xf32>
    %384 = vector.extract_strided_slice %383 {offsets = [0, 0, 0], sizes = [8, 8, 8], strides = [1, 1, 1]} : vector<10x8x8xf32> to vector<8x8x8xf32>
    %385 = vector.shape_cast %384 : vector<8x8x8xf32> to vector<64x8xf32>
    %c28 = arith.constant 28 : index
    %c0_315 = arith.constant 0 : index
    %c0_316 = arith.constant 0 : index
    %386 = vector.load %arg6[%c28, %c0_315, %c0_316] : memref<36x8x8xf32, #tpu.memory_space<vmem>>, vector<1x8x8xf32>
    %387 = vector.shape_cast %386 : vector<1x8x8xf32> to vector<8x8xf32>
    %cst_317 = arith.constant dense<0.000000e+00> : vector<64x8xf32>
    %388 = tpu.matmul %385, %387, %cst_317 {dimension_numbers = #tpu.dot_dimension_numbers<[1], [0], [0], [1], [0, 0, 1, 1], [], []>} : vector<64x8xf32>, vector<8x8xf32>, vector<64x8xf32> -> vector<64x8xf32>
    %389 = arith.addf %382, %388 : vector<64x8xf32>
    %390 = vector.extract_strided_slice %383 {offsets = [1, 0, 0], sizes = [8, 8, 8], strides = [1, 1, 1]} : vector<10x8x8xf32> to vector<8x8x8xf32>
    %391 = vector.shape_cast %390 : vector<8x8x8xf32> to vector<64x8xf32>
    %c31 = arith.constant 31 : index
    %c0_318 = arith.constant 0 : index
    %c0_319 = arith.constant 0 : index
    %392 = vector.load %arg6[%c31, %c0_318, %c0_319] : memref<36x8x8xf32, #tpu.memory_space<vmem>>, vector<1x8x8xf32>
    %393 = vector.shape_cast %392 : vector<1x8x8xf32> to vector<8x8xf32>
    %cst_320 = arith.constant dense<0.000000e+00> : vector<64x8xf32>
    %394 = tpu.matmul %391, %393, %cst_320 {dimension_numbers = #tpu.dot_dimension_numbers<[1], [0], [0], [1], [0, 0, 1, 1], [], []>} : vector<64x8xf32>, vector<8x8xf32>, vector<64x8xf32> -> vector<64x8xf32>
    %395 = arith.addf %389, %394 : vector<64x8xf32>
    %396 = vector.extract_strided_slice %383 {offsets = [2, 0, 0], sizes = [8, 8, 8], strides = [1, 1, 1]} : vector<10x8x8xf32> to vector<8x8x8xf32>
    %397 = vector.shape_cast %396 : vector<8x8x8xf32> to vector<64x8xf32>
    %c34 = arith.constant 34 : index
    %c0_321 = arith.constant 0 : index
    %c0_322 = arith.constant 0 : index
    %398 = vector.load %arg6[%c34, %c0_321, %c0_322] : memref<36x8x8xf32, #tpu.memory_space<vmem>>, vector<1x8x8xf32>
    %399 = vector.shape_cast %398 : vector<1x8x8xf32> to vector<8x8xf32>
    %cst_323 = arith.constant dense<0.000000e+00> : vector<64x8xf32>
    %400 = tpu.matmul %397, %399, %cst_323 {dimension_numbers = #tpu.dot_dimension_numbers<[1], [0], [0], [1], [0, 0, 1, 1], [], []>} : vector<64x8xf32>, vector<8x8xf32>, vector<64x8xf32> -> vector<64x8xf32>
    %401 = arith.addf %395, %400 : vector<64x8xf32>
    %c0_324 = arith.constant 0 : index
    %c2_325 = arith.constant 2 : index
    %c0_326 = arith.constant 0 : index
    %402 = vector.load %arg8[%c0_324, %c2_325, %c0_326] : memref<10x10x8xf32, #tpu.memory_space<vmem>>, vector<10x8x8xf32>
    %403 = vector.extract_strided_slice %402 {offsets = [0, 0, 0], sizes = [8, 8, 8], strides = [1, 1, 1]} : vector<10x8x8xf32> to vector<8x8x8xf32>
    %404 = vector.shape_cast %403 : vector<8x8x8xf32> to vector<64x8xf32>
    %c29 = arith.constant 29 : index
    %c0_327 = arith.constant 0 : index
    %c0_328 = arith.constant 0 : index
    %405 = vector.load %arg6[%c29, %c0_327, %c0_328] : memref<36x8x8xf32, #tpu.memory_space<vmem>>, vector<1x8x8xf32>
    %406 = vector.shape_cast %405 : vector<1x8x8xf32> to vector<8x8xf32>
    %cst_329 = arith.constant dense<0.000000e+00> : vector<64x8xf32>
    %407 = tpu.matmul %404, %406, %cst_329 {dimension_numbers = #tpu.dot_dimension_numbers<[1], [0], [0], [1], [0, 0, 1, 1], [], []>} : vector<64x8xf32>, vector<8x8xf32>, vector<64x8xf32> -> vector<64x8xf32>
    %408 = arith.addf %401, %407 : vector<64x8xf32>
    %409 = vector.extract_strided_slice %402 {offsets = [1, 0, 0], sizes = [8, 8, 8], strides = [1, 1, 1]} : vector<10x8x8xf32> to vector<8x8x8xf32>
    %410 = vector.shape_cast %409 : vector<8x8x8xf32> to vector<64x8xf32>
    %c32 = arith.constant 32 : index
    %c0_330 = arith.constant 0 : index
    %c0_331 = arith.constant 0 : index
    %411 = vector.load %arg6[%c32, %c0_330, %c0_331] : memref<36x8x8xf32, #tpu.memory_space<vmem>>, vector<1x8x8xf32>
    %412 = vector.shape_cast %411 : vector<1x8x8xf32> to vector<8x8xf32>
    %cst_332 = arith.constant dense<0.000000e+00> : vector<64x8xf32>
    %413 = tpu.matmul %410, %412, %cst_332 {dimension_numbers = #tpu.dot_dimension_numbers<[1], [0], [0], [1], [0, 0, 1, 1], [], []>} : vector<64x8xf32>, vector<8x8xf32>, vector<64x8xf32> -> vector<64x8xf32>
    %414 = arith.addf %408, %413 : vector<64x8xf32>
    %415 = vector.extract_strided_slice %402 {offsets = [2, 0, 0], sizes = [8, 8, 8], strides = [1, 1, 1]} : vector<10x8x8xf32> to vector<8x8x8xf32>
    %416 = vector.shape_cast %415 : vector<8x8x8xf32> to vector<64x8xf32>
    %c35 = arith.constant 35 : index
    %c0_333 = arith.constant 0 : index
    %c0_334 = arith.constant 0 : index
    %417 = vector.load %arg6[%c35, %c0_333, %c0_334] : memref<36x8x8xf32, #tpu.memory_space<vmem>>, vector<1x8x8xf32>
    %418 = vector.shape_cast %417 : vector<1x8x8xf32> to vector<8x8xf32>
    %cst_335 = arith.constant dense<0.000000e+00> : vector<64x8xf32>
    %419 = tpu.matmul %416, %418, %cst_335 {dimension_numbers = #tpu.dot_dimension_numbers<[1], [0], [0], [1], [0, 0, 1, 1], [], []>} : vector<64x8xf32>, vector<8x8xf32>, vector<64x8xf32> -> vector<64x8xf32>
    %420 = arith.addf %414, %419 : vector<64x8xf32>
    %cst_336 = arith.constant dense<0.000000e+00> : vector<8xf32>
    %421 = vector.multi_reduction <add>, %420, %cst_336 [0] : vector<64x8xf32> to vector<8xf32>
    %422 = vector.shape_cast %421 : vector<8xf32> to vector<1x8xf32>
    %cst_337 = arith.constant 6.400000e+01 : f32
    %423 = vector.broadcast %cst_337 : f32 to vector<1x8xf32>
    %424 = arith.divf %422, %423 : vector<1x8xf32>
    %425 = vector.broadcast %424 : vector<1x8xf32> to vector<64x8xf32>
    %426 = arith.subf %420, %425 : vector<64x8xf32>
    %427 = arith.mulf %426, %426 : vector<64x8xf32>
    %cst_338 = arith.constant dense<0.000000e+00> : vector<8xf32>
    %428 = vector.multi_reduction <add>, %427, %cst_338 [0] : vector<64x8xf32> to vector<8xf32>
    %429 = vector.shape_cast %428 : vector<8xf32> to vector<1x8xf32>
    %cst_339 = arith.constant 6.400000e+01 : f32
    %430 = vector.broadcast %cst_339 : f32 to vector<1x8xf32>
    %431 = arith.divf %429, %430 : vector<1x8xf32>
    %cst_340 = arith.constant 9.99999974E-6 : f32
    %432 = vector.broadcast %cst_340 : f32 to vector<1x8xf32>
    %433 = arith.addf %431, %432 : vector<1x8xf32>
    %434 = math.rsqrt %433 : vector<1x8xf32>
    %435 = vector.broadcast %434 : vector<1x8xf32> to vector<64x8xf32>
    %436 = arith.mulf %426, %435 : vector<64x8xf32>
    %437 = arith.addf %263, %436 : vector<64x8xf32>
    %438 = arith.addf %89, %437 : vector<64x8xf32>
    %439 = vector.shape_cast %438 : vector<64x8xf32> to vector<8x8x8xf32>
    %c0_341 = arith.constant 0 : index
    %c0_342 = arith.constant 0 : index
    %c0_343 = arith.constant 0 : index
    %c0_344 = arith.constant 0 : index
    %440 = vector.load %arg7[%c0_341, %c0_342, %c0_343, %c0_344] : memref<1x8x8x8xf32, #tpu.memory_space<vmem>>, vector<1x8x8x8xf32>
    %441 = vector.shape_cast %440 : vector<1x8x8x8xf32> to vector<8x8x8xf32>
    %442 = vector.shape_cast %439 : vector<8x8x8xf32> to vector<1x8x8x8xf32>
    tpu.vector_store %arg7[%c0_341, %c0_342, %c0_343, %c0_344], %442 {strides = array<i32>} : memref<1x8x8x8xf32, #tpu.memory_space<vmem>>, vector<1x8x8x8xf32>,
    return
  }
  func.func @transform_0(%arg0: i32) -> (i32, i32, i32, i32) {
    %c0_i32 = arith.constant 0 : i32
    %c0_i32_0 = arith.constant 0 : i32
    %c0_i32_1 = arith.constant 0 : i32
    %c0_i32_2 = arith.constant 0 : i32
    return %arg0, %c0_i32, %c0_i32_0, %c0_i32_1 : i32, i32, i32, i32
  }
  func.func @transform_1(%arg0: i32) -> (i32, i32, i32, i32) {
    %c0_i32 = arith.constant 0 : i32
    %c0_i32_0 = arith.constant 0 : i32
    %c0_i32_1 = arith.constant 0 : i32
    %c0_i32_2 = arith.constant 0 : i32
    return %arg0, %c0_i32, %c0_i32_0, %c0_i32_1 : i32, i32, i32, i32
  }
  func.func @transform_2(%arg0: i32) -> (i32, i32, i32) {
    %c0_i32 = arith.constant 0 : i32
    %c0_i32_0 = arith.constant 0 : i32
    %c0_i32_1 = arith.constant 0 : i32
    %c0_i32_2 = arith.constant 0 : i32
    return %c0_i32, %c0_i32_0, %c0_i32_1 : i32, i32, i32
  }
  func.func @transform_3(%arg0: i32) -> (i32, i32) {
    %c0_i32 = arith.constant 0 : i32
    %c0_i32_0 = arith.constant 0 : i32
    %c0_i32_1 = arith.constant 0 : i32
    return %c0_i32, %c0_i32_0 : i32, i32
  }
  func.func @transform_4(%arg0: i32) -> (i32, i32) {
    %c0_i32 = arith.constant 0 : i32
    %c0_i32_0 = arith.constant 0 : i32
    %c0_i32_1 = arith.constant 0 : i32
    return %c0_i32, %c0_i32_0 : i32, i32
  }
  func.func @transform_5(%arg0: i32) -> (i32, i32, i32) {
    %c0_i32 = arith.constant 0 : i32
    %c0_i32_0 = arith.constant 0 : i32
    %c0_i32_1 = arith.constant 0 : i32
    %c0_i32_2 = arith.constant 0 : i32
    return %c0_i32, %c0_i32_0, %c0_i32_1 : i32, i32, i32
  }
  func.func @transform_6(%arg0: i32) -> (i32, i32, i32, i32) {
    %c0_i32 = arith.constant 0 : i32
    %c0_i32_0 = arith.constant 0 : i32
    %c0_i32_1 = arith.constant 0 : i32
    %c0_i32_2 = arith.constant 0 : i32
    return %arg0, %c0_i32, %c0_i32_0, %c0_i32_1 : i32, i32, i32, i32
  }
}

</mosaic_0001>

<bundles_post_ra>
// kernel: fe_block_forward.1
= control target key start
LH: loop header
LB: loop body
LE: loop exit
PB: predicated region body
PF: predicated region fallthrough
CT: control target
= control target key end

     0   :  { %s4633_s21 = smov 0   ;;  %s5810_s0 = inlined_call_operand.vmem [shape: f32[2,36,9,4], index: 0, kind: input, shape index: {}]   ;;  %s5811_s1 = inlined_call_operand.vmem [shape: f32[2,8,8,8], index: 1, kind: input, shape index: {}]   ;;  %s5812_s2 = inlined_call_operand.vmem [shape: f32[9,4,8], index: 2, kind: input, shape index: {}]   ;;  %s5813_s3 = inlined_call_operand.vmem [shape: f32[1,8], index: 3, kind: input, shape index: {}]   ;;  %s5814_s4 = inlined_call_operand.vmem [shape: f32[1,8], index: 4, kind: input, shape index: {}]   ;;  %s5815_s5 = inlined_call_operand.vmem [shape: f32[36,8,8], index: 5, kind: input, shape index: {}]   ;;  %s5816_s6 = inlined_call_operand.vmem [shape: f32[2,8,8,8], index: 6, kind: output, shape index: {}]  }
   0x1 LB: > { %s4080_s22 = sadd.s32 4294967295, %s4595_s21   ;;  %p4084_p0 = scmp.ge.s32.totalorder %s4595_s21, 1  ;;  %s4595_s21 = sphi %s4633_s21, %s16_s21  }
   0x2   : > { %p222_p1 = scmp.lt.s32.totalorder %s4595_s21, 3 }
   0x4   : > { %p223_p2 = pnand %p4084_p0, %p222_p1 }
   0x6   : > { %226 = sbr.rel (%p223_p2) target bundleno = 2029 (0x7ed), region = 44 }
   0xb   : > { %v4098_v0 = vld [vmem:[%s5812_s2 + $0x4] sm:$0xf]  ;;  %vm317_vm0 = vcmask 1043456   ;;  %p257_p3 = scmp.lt.s32.totalorder %s4080_s22, 1  ;;  %v4117_v1 = vld [vmem:[%s5812_s2 + $0x8] sm:$0xf] }
   0xc   : > { %4562 = vmatpush.msk.msra.mxu1 %vm317_vm0, %v4098_v0  ;;  %4563 = vmatpush.msk.msra.mxu2 %vm317_vm0, %v4098_v0  ;;  %v4135_v2 = vld [vmem:[%s5812_s2 + $0xc] sm:$0xf]  ;;  %v280_v3 = vld [vmem:[%s5812_s2] sm:$0xf]  ;;  %v4153_v4 = vld [vmem:[%s5812_s2 + $0x10] sm:$0xf] }
   0xd   : > { %s5944_s22 = smov (!%p257_p3, %s4080_s22), 1  ;;  %4564 = vmatpush.msk.msra.mxu3 %vm317_vm0, %v4098_v0  ;;  %4099 = vmatpush.msk.msra.mxu0 %vm317_vm0, %v4098_v0  ;;  %vm292_vm1 = vcmask 31744   ;;  %v4189_v5 = vld [vmem:[%s5812_s2 + $0x18] sm:$0xf]  ;;  %v4207_v6 = vld [vmem:[%s5812_s2 + $0x1c] sm:$0xf] }
   0xe   : > { %4118 = vmatpush.msk.msrb.mxu2 %vm317_vm0, %v4117_v1  ;;  %4108 = vmatpush.msk.msrb.mxu1 %vm317_vm0, %v280_v3  ;;  %s4565_s9 = smul.u32 576, %s5944_s22  ;;  %v4171_v11 = vld [vmem:[%s5812_s2 + $0x14] sm:$0xf]  ;;  %v4225_v12 = vld [vmem:[%s5812_s2 + $0x20] sm:$0xf]  ;;  %vm1044_vm2 = vcmask 64512  }
   0xf   : > { %4136 = vmatpush.msk.msrb.mxu3 %vm317_vm0, %v4135_v2  ;;  %4154 = vmatpush.msk.msrb.mxu0 %vm317_vm0, %v4153_v4  ;;  %s4560_s7 = sshll.u32 %s5944_s22, 6  ;;  %vm1185_vm7 = vcmask 57344  }
  0x10   : > { %s4670_s12 = scalar_lea.vmem %s5810_s0, %s4565_s9  ;;  %s4960_s10 = scalar_lea.vmem %s5811_s1, %s4560_s7 }
  0x11   : > { %v4679_v7 = vld [vmem:[%s4670_s12 + $0xb0] sm:$0xff]  ;;  %v4706_v13 = vld [vmem:[%s4670_s12 + $0xc0] sm:$0xff]  ;;  %s271_s18 = scalar_lea.vmem %s5816_s6, %s4560_s7 }
  0x12   : > { %v4682_v8 = vld [vmem:[%s4670_s12 + $0xd0] sm:$0xff]  ;;  %4102 = vmatmul.msk.f32.vlgmr.msra.gmra.mxu1 %vm292_vm1, %v4679_v7  ;;  %v4709_v14 = vld [vmem:[%s4670_s12 + $0xe0] sm:$0xff] }
  0x13   : > { %v4685_v9 = vld [vmem:[%s4670_s12 + $0xf0] sm:$0xff]  ;;  %4104 = vmatmul.msk.f32.vlgmr.msra.gmra.mxu2 %vm292_vm1, %v4682_v8  ;;  %4172 = vmatpush.msk.msra.mxu1 %vm317_vm0, %v4171_v11  ;;  %v4712_v15 = vld [vmem:[%s4670_s12 + $0x100] sm:$0xff] }
  0x14   : > { %v4090_v10 = vld [vmem:[%s4670_s12 + $0x90] sm:$0xff]  ;;  %4106 = vmatmul.msk.f32.vlgmr.msra.gmra.mxu3 %vm292_vm1, %v4685_v9  ;;  %4190 = vmatpush.msk.msra.mxu2 %vm317_vm0, %v4189_v5  ;;  %v4715_v16 = vld [vmem:[%s4670_s12 + $0xa0] sm:$0xff] }
  0x15   : > { %4100 = vmatmul.msk.f32.vlgmr.msra.gmra.mxu0 %vm292_vm1, %v4090_v10  ;;  %4208 = vmatpush.msk.msra.mxu3 %vm317_vm0, %v4207_v6  ;;  %v272_v17 = vld [vmem:[%s4670_s12] sm:$0xff]  ;;  %v4145_v20 = vld [vmem:[%s4670_s12 + $0x1b0] sm:$0xff] }
  0x16   : > { %4226 = vmatpush.msk.msra.mxu0 %vm317_vm0, %v4225_v12  ;;  %v430_v18 = vld [vmem:[%s4670_s12 + $0x1] sm:$0xff]  ;;  %v273_v21 = vld [vmem:[%s4670_s12 + $0x10] sm:$0xff] }
  0x17   : > { %v4127_v19 = vld [vmem:[%s4670_s12 + $0x120] sm:$0xff]  ;;  %v431_v22 = vld [vmem:[%s4670_s12 + $0x11] sm:$0xff] }
  0x18   : > { %v4128_v23 = vld [vmem:[%s4670_s12 + $0x130] sm:$0xff]  ;;  %v4146_v24 = vld [vmem:[%s4670_s12 + $0x1c0] sm:$0xff] }
  0x19   : > { %v274_v25 = vld [vmem:[%s4670_s12 + $0x20] sm:$0xff]  ;;  %v4147_v28 = vld [vmem:[%s4670_s12 + $0x1d0] sm:$0xff] }
  0x1a   : > { %4103 = vmatmul.msk.f32.gmra.mxu1 %vm292_vm1, %v4706_v13  ;;  %v432_v26 = vld [vmem:[%s4670_s12 + $0x21] sm:$0xff]  ;;  %v275_v29 = vld [vmem:[%s4670_s12 + $0x30] sm:$0xff] }
  0x1b   : > { %4105 = vmatmul.msk.f32.gmra.mxu2 %vm292_vm1, %v4709_v14  ;;  %v4129_v27 = vld [vmem:[%s4670_s12 + $0x140] sm:$0xff]  ;;  %v433_v30 = vld [vmem:[%s4670_s12 + $0x31] sm:$0xff] }
  0x1c   : > { %4107 = vmatmul.msk.f32.gmra.mxu3 %vm292_vm1, %v4712_v15  ;;  %v4130_v31 = vld [vmem:[%s4670_s12 + $0x150] sm:$0xff]  ;;  %v4148_v32 = vld [vmem:[%s4670_s12 + $0x1e0] sm:$0xff] }
  0x1d   : > { %4101 = vmatmul.msk.f32.gmra.mxu0 %vm292_vm1, %v4715_v16  ;;  %v276_v33 = vld [vmem:[%s4670_s12 + $0x40] sm:$0xff]  ;;  %v4149_v36 = vld [vmem:[%s4670_s12 + $0x1f0] sm:$0xff] }
  0x1e   : > { %v434_v34 = vld [vmem:[%s4670_s12 + $0x41] sm:$0xff]  ;;  %v277_v37 = vld [vmem:[%s4670_s12 + $0x50] sm:$0xff] }
  0x1f   : > { %v4131_v35 = vld [vmem:[%s4670_s12 + $0x160] sm:$0xff]  ;;  %v435_v38 = vld [vmem:[%s4670_s12 + $0x51] sm:$0xff] }
  0x20   : > { %v4132_v39 = vld [vmem:[%s4670_s12 + $0x170] sm:$0xff]  ;;  %v4150_v40 = vld [vmem:[%s4670_s12 + $0x200] sm:$0xff] }
  0x21   : > { %v278_v41 = vld [vmem:[%s4670_s12 + $0x60] sm:$0xff]  ;;  %v4151_v44 = vld [vmem:[%s4670_s12 + $0x210] sm:$0xff] }
  0x22   : > { %4109 = vmatmul.msk.f32.vlgmr.msrb.gmra.mxu1 %vm292_vm1, %v272_v17  ;;  %v436_v42 = vld [vmem:[%s4670_s12 + $0x61] sm:$0xff]  ;;  %v279_v45 = vld [vmem:[%s4670_s12 + $0x70] sm:$0xff] }
  0x23   : > { %4119 = vmatmul.msk.f32.vlgmr.msrb.gmra.mxu2 %vm292_vm1, %v430_v18  ;;  %v4133_v43 = vld [vmem:[%s4670_s12 + $0x180] sm:$0xff]  ;;  %v437_v46 = vld [vmem:[%s4670_s12 + $0x71] sm:$0xff] }
  0x24   : > { %4137 = vmatmul.msk.f32.vlgmr.msrb.gmra.mxu3 %vm292_vm1, %v4127_v19  ;;  %v4134_v47 = vld [vmem:[%s4670_s12 + $0x190] sm:$0xff]  ;;  %v4152_v48 = vld [vmem:[%s4670_s12 + $0x220] sm:$0xff] }
  0x25   : > { %4155 = vmatmul.msk.f32.vlgmr.msrb.gmra.mxu0 %vm292_vm1, %v4145_v20  ;;  %v4163_v49 = vld [vmem:[%s4670_s12 + $0x121] sm:$0xff]  ;;  %v4164_v50 = vld [vmem:[%s4670_s12 + $0x131] sm:$0xff] }
  0x26   : > { %v4165_v51 = vld [vmem:[%s4670_s12 + $0x141] sm:$0xff]  ;;  %v4166_v52 = vld [vmem:[%s4670_s12 + $0x151] sm:$0xff] }
  0x27   : > { %v4167_v53 = vld [vmem:[%s4670_s12 + $0x161] sm:$0xff]  ;;  %v4168_v54 = vld [vmem:[%s4670_s12 + $0x171] sm:$0xff] }
  0x28   : > { %v4169_v56 = vld [vmem:[%s4670_s12 + $0x181] sm:$0xff]  ;;  %v4170_v61 = vld [vmem:[%s4670_s12 + $0x191] sm:$0xff] }
  0x29   : > { %v4188_v62 = vld [vmem:[%s4670_s12 + $0x80] sm:$0xff]  ;;  %v4206_v63 = vld [vmem:[%s4670_s12 + $0x110] sm:$0xff] }
  0x2a   : > { %4110 = vmatmul.msk.f32.gmra.mxu1 %vm292_vm1, %v273_v21  ;;  %v4224_v1 = vld [vmem:[%s4670_s12 + $0x81] sm:$0xff] }
  0x2b   : > { %4120 = vmatmul.msk.f32.gmra.mxu2 %vm292_vm1, %v431_v22 }
  0x2c   : > { %4138 = vmatmul.msk.f32.gmra.mxu3 %vm292_vm1, %v4128_v23 }
  0x2d   : > { %4156 = vmatmul.msk.f32.gmra.mxu0 %vm292_vm1, %v4146_v24 }
  0x32   : > { %4111 = vmatmul.msk.f32.gmra.mxu1 %vm292_vm1, %v274_v25 }
  0x33   : > { %4121 = vmatmul.msk.f32.gmra.mxu2 %vm292_vm1, %v432_v26 }
  0x34   : > { %4139 = vmatmul.msk.f32.gmra.mxu3 %vm292_vm1, %v4129_v27 }
  0x35   : > { %4157 = vmatmul.msk.f32.gmra.mxu0 %vm292_vm1, %v4147_v28 }
  0x3a   : > { %4112 = vmatmul.msk.f32.gmra.mxu1 %vm292_vm1, %v275_v29 }
  0x3b   : > { %4122 = vmatmul.msk.f32.gmra.mxu2 %vm292_vm1, %v433_v30 }
  0x3c   : > { %4140 = vmatmul.msk.f32.gmra.mxu3 %vm292_vm1, %v4130_v31 }
  0x3d   : > { %4158 = vmatmul.msk.f32.gmra.mxu0 %vm292_vm1, %v4148_v32 }
  0x42   : > { %4113 = vmatmul.msk.f32.gmra.mxu1 %vm292_vm1, %v276_v33 }
  0x43   : > { %4123 = vmatmul.msk.f32.gmra.mxu2 %vm292_vm1, %v434_v34 }
  0x44   : > { %4141 = vmatmul.msk.f32.gmra.mxu3 %vm292_vm1, %v4131_v35 }
  0x45   : > { %4159 = vmatmul.msk.f32.gmra.mxu0 %vm292_vm1, %v4149_v36 }
  0x4a   : > { %4114 = vmatmul.msk.f32.gmra.mxu1 %vm292_vm1, %v277_v37 }
  0x4b   : > { %4124 = vmatmul.msk.f32.gmra.mxu2 %vm292_vm1, %v435_v38 }
  0x4c   : > { %4142 = vmatmul.msk.f32.gmra.mxu3 %vm292_vm1, %v4132_v39 }
  0x4d   : > { %4160 = vmatmul.msk.f32.gmra.mxu0 %vm292_vm1, %v4150_v40 }
  0x52   : > { %4115 = vmatmul.msk.f32.gmra.mxu1 %vm292_vm1, %v278_v41 }
  0x53   : > { %4125 = vmatmul.msk.f32.gmra.mxu2 %vm292_vm1, %v436_v42 }
  0x54   : > { %4143 = vmatmul.msk.f32.gmra.mxu3 %vm292_vm1, %v4133_v43 }
  0x55   : > { %4161 = vmatmul.msk.f32.gmra.mxu0 %vm292_vm1, %v4151_v44 }
  0x5a   : > { %4116 = vmatmul.msk.f32.gmra.mxu1 %vm292_vm1, %v279_v45 }
  0x5b   : > { %4126 = vmatmul.msk.f32.gmra.mxu2 %vm292_vm1, %v437_v46 }
  0x5c   : > { %4144 = vmatmul.msk.f32.gmra.mxu3 %vm292_vm1, %v4134_v47 }
  0x5d   : > { %4162 = vmatmul.msk.f32.gmra.mxu0 %vm292_vm1, %v4152_v48 }
  0x62   : > { %4173 = vmatmul.msk.f32.vlgmr.msra.gmra.mxu1 %vm292_vm1, %v4163_v49 }
  0x63   : > { %4191 = vmatmul.msk.f32.vlgmr.msra.gmra.mxu2 %vm292_vm1, %v273_v21 }
  0x64   : > { %4209 = vmatmul.msk.f32.vlgmr.msra.gmra.mxu3 %vm292_vm1, %v4715_v16 }
  0x65   : > { %4227 = vmatmul.msk.f32.vlgmr.msra.gmra.mxu0 %vm292_vm1, %v431_v22 }
  0x6a   : > { %4174 = vmatmul.msk.f32.gmra.mxu1 %vm292_vm1, %v4164_v50 }
  0x6b   : > { %4192 = vmatmul.msk.f32.gmra.mxu2 %vm292_vm1, %v274_v25 }
  0x6c   : > { %4210 = vmatmul.msk.f32.gmra.mxu3 %vm292_vm1, %v4679_v7 }
  0x6d   : > { %4228 = vmatmul.msk.f32.gmra.mxu0 %vm292_vm1, %v432_v26 }
  0x72   : > { %4175 = vmatmul.msk.f32.gmra.mxu1 %vm292_vm1, %v4165_v51 }
  0x73   : > { %4193 = vmatmul.msk.f32.gmra.mxu2 %vm292_vm1, %v275_v29 }
  0x74   : > { %4211 = vmatmul.msk.f32.gmra.mxu3 %vm292_vm1, %v4706_v13 }
  0x75   : > { %4229 = vmatmul.msk.f32.gmra.mxu0 %vm292_vm1, %v433_v30 }
  0x7a   : > { %4176 = vmatmul.msk.f32.gmra.mxu1 %vm292_vm1, %v4166_v52 }
  0x7b   : > { %4194 = vmatmul.msk.f32.gmra.mxu2 %vm292_vm1, %v276_v33 }
  0x7c   : > { %4212 = vmatmul.msk.f32.gmra.mxu3 %vm292_vm1, %v4682_v8 }
  0x7d   : > { %4230 = vmatmul.msk.f32.gmra.mxu0 %vm292_vm1, %v434_v34 }
  0x82   : > { %4177 = vmatmul.msk.f32.gmra.mxu1 %vm292_vm1, %v4167_v53 }
  0x83   : > { %4195 = vmatmul.msk.f32.gmra.mxu2 %vm292_vm1, %v277_v37 }
  0x84   : > { %4213 = vmatmul.msk.f32.gmra.mxu3 %vm292_vm1, %v4709_v14 }
  0x85   : > { %4231 = vmatmul.msk.f32.gmra.mxu0 %vm292_vm1, %v435_v38 }
  0x8a   : > { %4178 = vmatmul.msk.f32.gmra.mxu1 %vm292_vm1, %v4168_v54 }
  0x8b   : > { %4196 = vmatmul.msk.f32.gmra.mxu2 %vm292_vm1, %v278_v41 }
  0x8c   : > { %4214 = vmatmul.msk.f32.gmra.mxu3 %vm292_vm1, %v4685_v9 }
  0x8d   : > { %4232 = vmatmul.msk.f32.gmra.mxu0 %vm292_vm1, %v436_v42 }
  0x8f   : > { %v4825_v55 = vpop.f32.mrf.mxu1 }
  0x92   : > { %v4828_v57 = vpop.f32.mrf.mxu0  ;;  %4179 = vmatmul.msk.f32.gmra.mxu1 %vm292_vm1, %v4169_v56 }
  0x93   : > { %4197 = vmatmul.msk.f32.gmra.mxu2 %vm292_vm1, %v279_v45 }
  0x94   : > { %4215 = vmatmul.msk.f32.gmra.mxu3 %vm292_vm1, %v4712_v15 }
  0x95   : > { %4233 = vmatmul.msk.f32.gmra.mxu0 %vm292_vm1, %v437_v46 }
  0x96   : > { %v4835_v58 = vpop.f32.mrf.mxu2 }
  0x97   : > { %v4837_v59 = vpop.f32.mrf.mxu3  ;;  %v4839_v60 = vpop.f32.mrf.mxu1 }
  0x9a   : > { %v341_v0 = vpop.f32.mrf.mxu0  ;;  %4180 = vmatmul.msk.f32.gmra.mxu1 %vm292_vm1, %v4170_v61 }
  0x9b   : > { %4198 = vmatmul.msk.f32.gmra.mxu2 %vm292_vm1, %v4188_v62 }
  0x9c   : > { %4216 = vmatmul.msk.f32.gmra.mxu3 %vm292_vm1, %v4206_v63 }
  0x9d   : > { %4234 = vmatmul.msk.f32.gmra.mxu0 %vm292_vm1, %v4224_v1 }
  0x9e   : > { %v4849_v2 = vpop.f32.mrf.mxu2 }
  0x9f   : > { %v4851_v3 = vpop.f32.mrf.mxu3  ;;  %v406_v4 = vpop.f32.mrf.mxu1 }
  0xa0   : > { %v407_v51 = vadd.f32 %v406_v4, %v4828_v57 }
  0xa2   : > { %v4853_v5 = vpop.f32.mrf.mxu0 }
  0xa6   : > { %v484_v6 = vpop.f32.mrf.mxu2 }
  0xa7   : > { %v571_v7 = vpop.f32.mrf.mxu3  ;;  %v409_v8 = vpop.f32.mrf.mxu1  ;;  %v508_v61 = vadd.f32 %v484_v6, %v407_v51 }
  0xa8   : > { %v410_v50 = vadd.f32 %v409_v8, %v341_v0 }
  0xaa   : > { %v661_v9 = vpop.f32.mrf.mxu0 }
  0xae   : > { %v487_v10 = vpop.f32.mrf.mxu2 }
  0xaf   : > { %v574_v11 = vpop.f32.mrf.mxu3  ;;  %v412_v12 = vpop.f32.mrf.mxu1  ;;  %v509_v53 = vadd.f32 %v487_v10, %v410_v50 }
  0xb0   : > { %v413_v54 = vadd.f32 %v412_v12, %v4825_v55 }
  0xb2   : > { %v664_v13 = vpop.f32.mrf.mxu0 }
  0xb6   : > { %v490_v14 = vpop.f32.mrf.mxu2 }
  0xb7   : > { %v577_v15 = vpop.f32.mrf.mxu3  ;;  %v415_v16 = vpop.f32.mrf.mxu1  ;;  %v510_v63 = vadd.f32 %v490_v14, %v413_v54 }
  0xb8   : > { %v416_v1 = vadd.f32 %v415_v16, %v4839_v60 }
  0xb9   : > { %v597_v57 = vadd.f32 %v577_v15, %v510_v63 }
  0xba   : > { %v4855_v17 = vpop.f32.mrf.mxu0 }
  0xbb   : > { %v684_v60 = vadd.f32 %v664_v13, %v597_v57 }
  0xbe   : > { %v493_v18 = vpop.f32.mrf.mxu2 }
  0xbf   : > { %v580_v19 = vpop.f32.mrf.mxu3  ;;  %v418_v20 = vpop.f32.mrf.mxu1 }
  0xc2   : > { %v4857_v21 = vpop.f32.mrf.mxu0 }
  0xc6   : > { %v496_v22 = vpop.f32.mrf.mxu2 }
  0xc7   : > { %v583_v23 = vpop.f32.mrf.mxu3  ;;  %v421_v24 = vpop.f32.mrf.mxu1 }
  0xc8   : > { %v422_v0 = vadd.f32 %v421_v24, %v4849_v2 }
  0xca   : > { %v4859_v25 = vpop.f32.mrf.mxu0 }
  0xce   : > { %v499_v26 = vpop.f32.mrf.mxu2 }
  0xcf   : > { %v586_v27 = vpop.f32.mrf.mxu3  ;;  %v424_v28 = vpop.f32.mrf.mxu1  ;;  %v513_v8 = vadd.f32 %v499_v26, %v422_v0 }
  0xd1   : > { %v600_v51 = vadd.f32 %v586_v27, %v513_v8 }
  0xd2   : > { %v4861_v29 = vpop.f32.mrf.mxu0 }
  0xd6   : > { %v502_v30 = vpop.f32.mrf.mxu2 }
  0xd7   : > { %v589_v31 = vpop.f32.mrf.mxu3  ;;  %v4863_v32 = vpop.f32.mrf.mxu1 }
  0xda   : > { %v4865_v33 = vpop.f32.mrf.mxu0 }
  0xdb   : > { %5845 = vst [vmem:[#allocation3_spill] sm:$0xff] %v4865_v33 }
  0xde   : > { %v4867_v34 = vpop.f32.mrf.mxu2 }
  0xdf   : > { %v4869_v35 = vpop.f32.mrf.mxu3  ;;  %v744_v36 = vpop.f32.mrf.mxu1 }
  0xe0   : > { %5846 = vst [vmem:[#allocation4_spill] sm:$0xff] %v4869_v35  ;;  %v596_v35 = vadd.f32 %v574_v11, %v509_v53  ;;  %v425_v11 = vadd.f32 %v424_v28, %v4837_v59 }
  0xe2   : > { %v4871_v37 = vpop.f32.mrf.mxu0  ;;  %v683_v55 = vadd.f32 %v661_v9, %v596_v35  ;;  %v514_v2 = vadd.f32 %v502_v30, %v425_v11  ;;  %v5854_v8 = vld [vmem:[#allocation3_spill] sm:$0xff] }
  0xe3   : > { %5847 = vst [vmem:[#allocation5_spill] sm:$0xff] %v4871_v37  ;;  %v419_v37 = vadd.f32 %v418_v20, %v4835_v58 }
  0xe5   : > { %v512_v4 = vadd.f32 %v496_v22, %v419_v37 }
  0xe6   : > { %v831_v38 = vpop.f32.mrf.mxu2 }
  0xe7   : > { %v918_v39 = vpop.f32.mrf.mxu3  ;;  %v747_v40 = vpop.f32.mrf.mxu1  ;;  %v599_v16 = vadd.f32 %v583_v23, %v512_v4  ;;  %v601_v23 = vadd.f32 %v589_v31, %v514_v2 }
  0xe9   : > { %v686_v9 = vadd.f32 %v4857_v21, %v599_v16 }
  0xea   : > { %v4873_v41 = vpop.f32.mrf.mxu0 }
  0xee   : > { %v834_v42 = vpop.f32.mrf.mxu2 }
  0xef   : > { %v921_v43 = vpop.f32.mrf.mxu3  ;;  %v750_v44 = vpop.f32.mrf.mxu1 }
  0xf0   : > { %v770_v20 = vadd.f32 %v750_v44, %v684_v60 }
  0xf2   : > { %v4875_v45 = vpop.f32.mrf.mxu0 }
  0xf3   : > { %5848 = vst [vmem:[#allocation6_spill] sm:$0xff] %v4875_v45  ;;  %v511_v45 = vadd.f32 %v493_v18, %v416_v1  ;;  %v769_v18 = vadd.f32 %v747_v40, %v683_v55 }
  0xf5   : > { %v598_v12 = vadd.f32 %v580_v19, %v511_v45  ;;  %v856_v15 = vadd.f32 %v834_v42, %v769_v18  ;;  %v688_v42 = vadd.f32 %v4861_v29, %v601_v23 }
  0xf6   : > { %v837_v46 = vpop.f32.mrf.mxu2 }
  0xf7   : > { %v924_v47 = vpop.f32.mrf.mxu3  ;;  %v753_v48 = vpop.f32.mrf.mxu1  ;;  %v857_v19 = vadd.f32 %v837_v46, %v770_v20  ;;  %v943_v35 = vadd.f32 %v921_v43, %v856_v15  ;;  %v5850_v43 = vld [vmem:[#allocation5_spill] sm:$0xff] }
  0xf9   : > { %v944_v37 = vadd.f32 %v924_v47, %v857_v19 }
  0xfa   : > { %v4877_v49 = vpop.f32.mrf.mxu0  ;;  %v5851_v46 = vld [vmem:[#allocation6_spill] sm:$0xff] }
  0xfb   : > { %5849 = vst [vmem:[#allocation7_spill] sm:$0xff] %v4877_v49  ;;  %v595_v49 = vadd.f32 %v571_v7, %v508_v61  ;;  %v685_v7 = vadd.f32 %v4855_v17, %v598_v12  ;;  %v428_v17 = vadd.f32 %v4863_v32, %v4851_v3  ;;  %v5852_v3 = vld [vmem:[#allocation4_spill] sm:$0xff] }
  0xfd   : > { %v682_v14 = vadd.f32 %v4853_v5, %v595_v49  ;;  %v771_v26 = vadd.f32 %v753_v48, %v685_v7  ;;  %v687_v5 = vadd.f32 %v4859_v25, %v600_v51  ;;  %v515_v21 = vadd.f32 %v4867_v34, %v428_v17 }
  0xfe   : > { %v840_v52 = vpop.f32.mrf.mxu2  ;;  %v1029_v25 = vadd.f32 %v4873_v41, %v943_v35  ;;  %v1030_v48 = vadd.f32 %v5851_v46, %v944_v37 }
  0xff   : > { %v927_v56 = vpop.f32.mrf.mxu3  ;;  %v756_v62 = vpop.f32.mrf.mxu1  ;;  %v768_v58 = vadd.f32 %v744_v36, %v682_v14  ;;  %v858_v59 = vadd.f32 %v840_v52, %v771_v26  ;;  %v602_v32 = vadd.f32 %v5852_v3, %v515_v21 }
 0x100   : > { %v772_v28 = vadd.f32 %v756_v62, %v686_v9  ;;  %v1046_v53 = vsel %vm1044_vm2, %v1029_v25, 0.0  ;;  %v1048_v63 = vsel %vm1044_vm2, %v1030_v48, 0.0 }
 0x101   : > { %v855_v22 = vadd.f32 %v831_v38, %v768_v58  ;;  %v945_v44 = vadd.f32 %v927_v56, %v858_v59  ;;  %v4597_v56 = vmov 64.0  }
 0x102   : > { %v4882_v33 = vpop.f32.mrf.mxu0  ;;  %v5853_v34 = vld [vmem:[#allocation7_spill] sm:$0xff]  ;;  %4577 = vrcp.f32 %v4597_v56 }
 0x103   : > { %v942_v30 = vadd.f32 %v918_v39, %v855_v22  ;;  %v1031_v54 = vadd.f32 %v5853_v34, %v945_v44 }
 0x105   : > { %v1028_v45 = vadd.f32 %v5850_v43, %v942_v30  ;;  %v1050_v55 = vsel %vm1044_vm2, %v1031_v54, 0.0 }
 0x106   : > { %v843_v10 = vpop.f32.mrf.mxu2 }
 0x107   : > { %v930_v6 = vpop.f32.mrf.mxu3  ;;  %v759_v50 = vpop.f32.mrf.mxu1  ;;  %v859_v38 = vadd.f32 %v843_v10, %v772_v28  ;;  %v1045_v62 = vsel %vm1044_vm2, %v1028_v45, 0.0  ;;  %v689_v10 = vadd.f32 %v5854_v8, %v602_v32 }
 0x108   : > { %v773_v40 = vadd.f32 %v759_v50, %v687_v5  ;;  %v1047_v57 = vadd.f32 %v1046_v53, %v1045_v62  ;;  %v4578_v16 = vpop.eup %4577 }
 0x109   : > { %v946_v49 = vadd.f32 %v930_v6, %v859_v38  ;;  %v1067_v22 = vmul.f32 64.0, %v4578_v16  ;;  %vm1071_vm3 = vweird.f32 %v4578_v16 }
 0x10a   : > { %v1019_v24 = vpop.f32.mrf.mxu0  ;;  %v1049_v6 = vadd.f32 %v1048_v63, %v1047_v57 }
 0x10b   : > { %v1032_v1 = vadd.f32 %v4882_v33, %v946_v49  ;;  %v1068_v5 = vsub.f32 1.0, %v1067_v22 }
 0x10c   : > { %v1051_v11 = vadd.f32 %v1050_v55, %v1049_v6 }
 0x10d   : > { %v1052_v14 = vsel %vm1044_vm2, %v1032_v1, 0.0  ;;  %v1069_v35 = vmul.f32 %v4578_v16, %v1068_v5  ;;  %v1037_v5 = vld [vmem:[%s4960_s10 + $0x8] sm:$0xff] }
 0x10e   : > { %v846_v13 = vpop.f32.mrf.mxu2  ;;  %v1053_v7 = vadd.f32 %v1052_v14, %v1051_v11 }
 0x10f   : > { %v933_v27 = vpop.f32.mrf.mxu3  ;;  %v762_v36 = vpop.f32.mrf.mxu1  ;;  %v860_v31 = vadd.f32 %v846_v13, %v773_v40 }
 0x110   : > { %v774_v52 = vadd.f32 %v762_v36, %v688_v42 }
 0x111   : > { %v947_v29 = vadd.f32 %v933_v27, %v860_v31  ;;  %v1070_v27 = vadd.f32 %v4578_v16, %v1069_v35 }
 0x112   : > { %v1022_v47 = vpop.f32.mrf.mxu0 }
 0x113   : > { %v1033_v12 = vadd.f32 %v1019_v24, %v947_v29  ;;  %v4910_v36 = vsel %vm1071_vm3, %v4578_v16, %v1070_v27  ;;  %v1039_v27 = vld [vmem:[%s4960_s10 + $0x18] sm:$0xff] }
 0x114   : > { %5855 = vst [vmem:[#allocation5_spill] sm:$0xff] %v4910_v36 }
 0x115   : > { %v1054_v51 = vsel %vm1044_vm2, %v1033_v12, 0.0 }
 0x116   : > { %v849_v39 = vpop.f32.mrf.mxu2  ;;  %v1055_v9 = vadd.f32 %v1054_v51, %v1053_v7 }
 0x117   : > { %v861_v61 = vadd.f32 %v849_v39, %v774_v52  ;;  %v936_v41 = vpop.f32.mrf.mxu3  ;;  %v765_v4 = vpop.f32.mrf.mxu1 }
 0x118   : > { %v775_v50 = vadd.f32 %v765_v4, %v689_v10 }
 0x119   : > { %v948_v0 = vadd.f32 %v936_v41, %v861_v61 }
 0x11a   : > { %v1025_v2 = vpop.f32.mrf.mxu0 }
 0x11b   : > { %v1034_v60 = vadd.f32 %v1022_v47, %v948_v0 }
 0x11d   : > { %v1056_v15 = vsel %vm1044_vm2, %v1034_v60, 0.0 }
 0x11e   : > { %v852_v18 = vpop.f32.mrf.mxu2  ;;  %v1057_v19 = vadd.f32 %v1056_v15, %v1055_v9  ;;  %v4261_v15 = vld [vmem:[%s5815_s5 + $0x8] sm:$0xff] }
 0x11f   : > { %v862_v58 = vadd.f32 %v852_v18, %v775_v50  ;;  %v939_v33 = vpop.f32.mrf.mxu3  ;;  %1443 = vmatpush.msrb.mxu0 %v4261_v15 }
 0x121   : > { %v949_v20 = vadd.f32 %v939_v33, %v862_v58  ;;  %v4235_v58 = vld [vmem:[%s5815_s5 + $0x18] sm:$0xff]  ;;  %v1226_v33 = vld [vmem:[%s5815_s5] sm:$0xff] }
 0x122   : > { %1268 = vmatpush.msrb.mxu1 %v4235_v58  ;;  %1312 = vmatpush.msrb.mxu2 %v1226_v33 }
 0x123   : > { %v1035_v24 = vadd.f32 %v1025_v2, %v949_v20  ;;  %v4252_v2 = vld [vmem:[%s5815_s5 + $0x30] sm:$0xff] }
 0x124   : > { %1358 = vmatpush.msrb.mxu3 %v4252_v2 }
 0x125   : > { %v1058_v26 = vsel %vm1044_vm2, %v1035_v24, 0.0 }
 0x126   : > { %v1059_v13 = vadd.f32 %v1058_v26, %v1057_v19  ;;  %v1036_v26 = vld [vmem:[%s4960_s10] sm:$0xff] }
 0x128   : > { %v1060_v23 = vrot.slane %v1059_v13, 4 }
 0x12a   : > { %v1061_v59 = vadd.f32 %v1060_v23, %v1059_v13 }
 0x12c   : > { %v1062_v28 = vrot.slane %v1061_v59, 2 }
 0x12e   : > { %v1063_v17 = vadd.f32 %v1062_v28, %v1061_v59  ;;  %v1038_v28 = vld [vmem:[%s4960_s10 + $0x10] sm:$0xff] }
 0x130   : > { %v1064_v30 = vrot.slane %v1063_v17, 1 }
 0x132   : > { %v1065_v37 = vadd.f32 %v1064_v30, %v1063_v17 }
 0x134   : > { %v1073_v38 = vmul.f32 %v4910_v36, %v1065_v37 }
 0x136   : > { %v4913_v40 = vsub.f32 %v1028_v45, %v1073_v38  ;;  %v4915_v21 = vsub.f32 %v1029_v25, %v1073_v38  ;;  %v4917_v42 = vsub.f32 %v1030_v48, %v1073_v38  ;;  %v4919_v44 = vsub.f32 %v1031_v54, %v1073_v38 }
 0x137   : > { %v4921_v31 = vsub.f32 %v1032_v1, %v1073_v38  ;;  %v1079_v52 = vsub.f32 %v1033_v12, %v1073_v38  ;;  %v1080_v32 = vsub.f32 %v1034_v60, %v1073_v38  ;;  %v1081_v34 = vsub.f32 %v1035_v24, %v1073_v38  ;;  %v4575_v24 = vld [vmem:[%s5813_s3] ss:$0 sm:$0xff] }
 0x138   : > { %v1082_v43 = vmul.f32 %v4913_v40, %v4913_v40  ;;  %v1083_v46 = vmul.f32 %v4915_v21, %v4915_v21  ;;  %v1084_v49 = vmul.f32 %v4917_v42, %v4917_v42  ;;  %v1085_v25 = vmul.f32 %v4919_v44, %v4919_v44 }
 0x139   : > { %v1086_v39 = vmul.f32 %v4921_v31, %v4921_v31  ;;  %v1087_v54 = vmul.f32 %v1079_v52, %v1079_v52  ;;  %v1088_v41 = vmul.f32 %v1080_v32, %v1080_v32  ;;  %v1089_v63 = vmul.f32 %v1081_v34, %v1081_v34 }
 0x13a   : > { %v1090_v45 = vsel %vm1044_vm2, %v1082_v43, 0.0  ;;  %v1091_v48 = vsel %vm1044_vm2, %v1083_v46, 0.0  ;;  %v1093_v47 = vsel %vm1044_vm2, %v1084_v49, 0.0  ;;  %v1095_v29 = vsel %vm1044_vm2, %v1085_v25, 0.0  ;;  %v4270_v43 = vld [vmem:[%s5815_s5 + $0x20] sm:$0xff]  ;;  %v1041_v46 = vld [vmem:[%s4960_s10 + $0x28] sm:$0xff] }
 0x13b   : > { %v1092_v3 = vadd.f32 %v1091_v48, %v1090_v45  ;;  %v1097_v56 = vsel %vm1044_vm2, %v1086_v39, 0.0  ;;  %v1099_v1 = vsel %vm1044_vm2, %v1087_v54, 0.0  ;;  %v1101_v57 = vsel %vm1044_vm2, %v1088_v41, 0.0  ;;  %1497 = vmatpush.msra.mxu1 %v4270_v43 }
 0x13c   : > { %v1103_v8 = vsel %vm1044_vm2, %v1089_v63, 0.0 }
 0x13d   : > { %v1094_v53 = vadd.f32 %v1093_v47, %v1092_v3 }
 0x13f   : > { %v1096_v61 = vadd.f32 %v1095_v29, %v1094_v53 }
 0x141   : > { %v1098_v62 = vadd.f32 %v1097_v56, %v1096_v61 }
 0x143   : > { %v1100_v0 = vadd.f32 %v1099_v1, %v1098_v62 }
 0x145   : > { %v1102_v4 = vadd.f32 %v1101_v57, %v1100_v0 }
 0x147   : > { %v1104_v10 = vadd.f32 %v1103_v8, %v1102_v4 }
 0x149   : > { %v1105_v55 = vrot.slane %v1104_v10, 4 }
 0x14b   : > { %v1106_v12 = vadd.f32 %v1105_v55, %v1104_v10 }
 0x14d   : > { %v1107_v6 = vrot.slane %v1106_v12, 2 }
 0x14f   : > { %v1108_v14 = vadd.f32 %v1107_v6, %v1106_v12 }
 0x151   : > { %v1109_v50 = vrot.slane %v1108_v14, 1 }
 0x153   : > { %v1110_v60 = vadd.f32 %v1109_v50, %v1108_v14 }
 0x155   : > { %v1111_v16 = vmul.f32 %v1110_v60, %v4910_v36 }
 0x157   : > { %v1112_v11 = vadd.f32 1e-05, %v1111_v16 }
 0x159   : > { %4579 = vrsqrt.f32 %v1112_v11  ;;  %vm1119_vm5 = vweird.f32 %v1112_v11 }
 0x15f   : > { %v4580_v18 = vpop.eup %4579 }
 0x160   : > { %v1114_v51 = vmul.f32 %v4580_v18, %v1112_v11  ;;  %vm1120_vm4 = vweird.f32 %v4580_v18 }
 0x161   : > { %vm1121_vm6 = vmor %vm1119_vm5, %vm1120_vm4 }
 0x162   : > { %v1115_v7 = vmul.f32 %v4580_v18, %v1114_v51 }
 0x164   : > { %v1116_v20 = vmul.f32 0.5, %v1115_v7 }
 0x166   : > { %v1117_v22 = vsub.f32 1.5, %v1116_v20 }
 0x168   : > { %v1118_v9 = vmul.f32 %v4580_v18, %v1117_v22 }
 0x16a   : > { %v1122_v19 = vsel %vm1121_vm6, %v4580_v18, %v1118_v9 }
 0x16b   : > { %v1123_v13 = vmul.f32 %v1122_v19, %v4913_v40  ;;  %v1124_v23 = vmul.f32 %v1122_v19, %v4915_v21  ;;  %v1125_v35 = vmul.f32 %v1122_v19, %v4917_v42  ;;  %v1126_v59 = vmul.f32 %v1122_v19, %v4919_v44  ;;  %v1040_v40 = vld [vmem:[%s4960_s10 + $0x20] sm:$0xff] }
 0x16c   : > { %v1127_v17 = vmul.f32 %v1122_v19, %v4921_v31  ;;  %v1128_v30 = vmul.f32 %v1122_v19, %v1079_v52  ;;  %v1129_v37 = vmul.f32 %v1122_v19, %v1080_v32  ;;  %v1130_v38 = vmul.f32 %v1122_v19, %v1081_v34  ;;  %v4576_v44 = vld [vmem:[%s5814_s4] ss:$0 sm:$0xff]  ;;  %v1042_v31 = vld [vmem:[%s4960_s10 + $0x30] sm:$0xff]  ;;  %v1043_v32 = vld [vmem:[%s4960_s10 + $0x38] sm:$0xff] }
 0x16d   : > { %v1135_v21 = vmul.f32 %v4575_v24, %v1123_v13  ;;  %v1136_v49 = vmul.f32 %v4575_v24, %v1124_v23  ;;  %v1137_v42 = vmul.f32 %v4575_v24, %v1125_v35  ;;  %v1138_v25 = vmul.f32 %v4575_v24, %v1126_v59 }
 0x16e   : > { %v1139_v52 = vmul.f32 %v4575_v24, %v1127_v17  ;;  %v1140_v45 = vmul.f32 %v4575_v24, %v1128_v30  ;;  %v1141_v48 = vmul.f32 %v4575_v24, %v1129_v37  ;;  %v1142_v3 = vmul.f32 %v4575_v24, %v1130_v38  ;;  %v4279_v17 = vld [vmem:[%s5815_s5 + $0x38] sm:$0xff]  ;;  %v4288_v30 = vld [vmem:[%s5815_s5 + $0x10] sm:$0xff]  ;;  %v4297_v37 = vld [vmem:[%s5815_s5 + $0x28] sm:$0xff] }
 0x16f   : > { %v1143_v39 = vadd.f32 %v1135_v21, %v1036_v26  ;;  %v1144_v47 = vadd.f32 %v1136_v49, %v1037_v5  ;;  %v1145_v53 = vadd.f32 %v1137_v42, %v1038_v28  ;;  %v1146_v34 = vadd.f32 %v1138_v25, %v1039_v27  ;;  %1551 = vmatpush.msra.mxu2 %v4279_v17  ;;  %v4306_v21 = vld [vmem:[%s5815_s5 + $0x40] sm:$0xff] }
 0x170   : > { %v1147_v54 = vadd.f32 %v1139_v52, %v1040_v40  ;;  %v1148_v29 = vadd.f32 %v1140_v45, %v1041_v46  ;;  %v1149_v61 = vadd.f32 %v1141_v48, %v1042_v31  ;;  %v1150_v63 = vadd.f32 %v1142_v3, %v1043_v32  ;;  %1690 = vmatpush.msra.mxu0 %v4297_v37 }
 0x171   : > { %v4984_v41 = vadd.f32 %v4576_v44, %v1143_v39  ;;  %v4986_v56 = vadd.f32 %v4576_v44, %v1144_v47  ;;  %v4988_v62 = vadd.f32 %v4576_v44, %v1145_v53  ;;  %v4990_v1 = vadd.f32 %v4576_v44, %v1146_v34  ;;  %1636 = vmatpush.msra.mxu3 %v4288_v30 }
 0x172   : > { %v4992_v0 = vadd.f32 %v4576_v44, %v1147_v54  ;;  %v4996_v57 = vadd.f32 %v4576_v44, %v1148_v29  ;;  %v5000_v4 = vadd.f32 %v4576_v44, %v1149_v61  ;;  %v5004_v8 = vadd.f32 %v4576_v44, %v1150_v63 }
 0x173   : > { %5856 = vst [vmem:[#allocation6_spill] sm:$0xff] %v4984_v41 }
 0x174   : > { %5857 = vst [vmem:[#allocation4_spill] sm:$0xff] %v4986_v56 }
 0x175   : > { %5858 = vst [vmem:[#allocation7_spill] sm:$0xff] %v4988_v62 }
 0x176   : > { %5859 = vst [vmem:[#allocation3_spill] sm:$0xff] %v4990_v1 }
 0x177   : > { %5860 = vst [vmem:[#allocation8_spill] sm:$0xff] %v4992_v0 }
 0x178   : > { %1164 = vst.msk [vmem:[#allocation2 + $0x11] sm:$0xff] %vm1044_vm2, %v4984_v41 }
 0x179   : > { %5861 = vst [vmem:[#allocation9_spill] sm:$0xff] %v4996_v57 }
 0x17a   : > { %1165 = vst.msk [vmem:[#allocation2 + $0x21] sm:$0xff] %vm1044_vm2, %v4986_v56 }
 0x17b   : > { %5862 = vst [vmem:[#allocation10_spill] sm:$0xff] %v5000_v4 }
 0x17c   : > { %1166 = vst.msk [vmem:[#allocation2 + $0x31] sm:$0xff] %vm1044_vm2, %v4988_v62 }
 0x17d   : > { %5863 = vst [vmem:[#allocation11_spill] sm:$0xff] %v5004_v8 }
 0x17e   : > { %1167 = vst.msk [vmem:[#allocation2 + $0x41] sm:$0xff] %vm1044_vm2, %v4990_v1 }
 0x17f   : > { %1168 = vst.msk [vmem:[#allocation2 + $0x51] sm:$0xff] %vm1044_vm2, %v4992_v0  ;;  %v1176_v10 = vld [vmem:[#allocation2 + $0x12] sm:$0x1]  ;;  %v1197_v2 = vld [vmem:[#allocation2 + $0x17] sm:$0x1] }
 0x180   : > { %1169 = vst.msk [vmem:[#allocation2 + $0x61] sm:$0xff] %vm1044_vm2, %v4996_v57  ;;  %v1393_v26 = vld [vmem:[#allocation2 + $0x11] sm:$0xff] }
 0x181   : > { %1170 = vst.msk [vmem:[#allocation2 + $0x71] sm:$0xff] %vm1044_vm2, %v5000_v4  ;;  %v1177_v55 = vld [vmem:[#allocation2 + $0x22] sm:$0x1]  ;;  %v1198_v20 = vld [vmem:[#allocation2 + $0x27] sm:$0x1] }
 0x182   : > { %1171 = vst.msk [vmem:[#allocation2 + $0x81] sm:$0xff] %vm1044_vm2, %v5004_v8  ;;  %v1394_v59 = vld [vmem:[#allocation2 + $0x21] sm:$0xff] }
 0x183   : > { %1174 = vst.msk [vmem:[#allocation2 + $0x91] sm:$0xff] %vm1044_vm2, %v5000_v4  ;;  %v1178_v12 = vld [vmem:[#allocation2 + $0x32] sm:$0x1]  ;;  %v1199_v22 = vld [vmem:[#allocation2 + $0x37] sm:$0x1] }
 0x184   : > { %1172 = vst.msk [vmem:[#allocation2 + $0x1] sm:$0xff] %vm1044_vm2, %v4986_v56  ;;  %v1395_v27 = vld [vmem:[#allocation2 + $0x31] sm:$0xff] }
 0x185   : > { %1187 = vst.msk [vmem:[#allocation2 + $0x10] sm:$0x1] %vm1185_vm7, %v1176_v10  ;;  %v1179_v6 = vld [vmem:[#allocation2 + $0x42] sm:$0x1]  ;;  %v1200_v9 = vld [vmem:[#allocation2 + $0x47] sm:$0x1] }
 0x186   : > { %1188 = vst.msk [vmem:[#allocation2 + $0x20] sm:$0x1] %vm1185_vm7, %v1177_v55  ;;  %v1180_v14 = vld [vmem:[#allocation2 + $0x52] sm:$0x1]  ;;  %v1201_v24 = vld [vmem:[#allocation2 + $0x57] sm:$0x1] }
 0x187   : > { %1189 = vst.msk [vmem:[#allocation2 + $0x30] sm:$0x1] %vm1185_vm7, %v1178_v12  ;;  %v1181_v16 = vld [vmem:[#allocation2 + $0x62] sm:$0x1]  ;;  %v1202_v5 = vld [vmem:[#allocation2 + $0x67] sm:$0x1] }
 0x188   : > { %1190 = vst.msk [vmem:[#allocation2 + $0x40] sm:$0x1] %vm1185_vm7, %v1179_v6  ;;  %v1182_v11 = vld [vmem:[#allocation2 + $0x72] sm:$0x1]  ;;  %v1203_v13 = vld [vmem:[#allocation2 + $0x77] sm:$0x1] }
 0x189   : > { %v1183_v50 = vld [vmem:[#allocation2 + $0x82] sm:$0x1]  ;;  %v1204_v60 = vld [vmem:[#allocation2 + $0x87] sm:$0x1]  ;;  %1191 = vst.msk [vmem:[#allocation2 + $0x50] sm:$0x1] %vm1185_vm7, %v1180_v14 }
 0x18a   : > { %1194 = vst.msk [vmem:[#allocation2 + $0x80] sm:$0x1] %vm1185_vm7, %v1183_v50  ;;  %v1184_v33 = vld [vmem:[#allocation2 + $0x92] sm:$0x1]  ;;  %v1205_v35 = vld [vmem:[#allocation2 + $0x97] sm:$0x1] }
 0x18b   : > { %v1392_v18 = vld [vmem:[#allocation2 + $0x1] sm:$0xff]  ;;  %1214 = vst.msk [vmem:[#allocation2 + $0x89] sm:$0x1] %vm1185_vm7, %v1204_v60  ;;  %v1397_v46 = vld [vmem:[#allocation2 + $0x51] sm:$0xff] }
 0x18c   : > { %v1175_v51 = vld [vmem:[#allocation2 + $0x2] sm:$0x1]  ;;  %4262 = vmatmul.msk.f32.vlgmr.msrb.gmra.mxu0 %vm1044_vm2, %v1392_v18  ;;  %v1217_v58 = vld [vmem:[#allocation2 + $0x10] sm:$0xff]  ;;  %1192 = vst.msk [vmem:[#allocation2 + $0x60] sm:$0x1] %vm1185_vm7, %v1181_v16 }
 0x18d   : > { %1186 = vst.msk [vmem:[#allocation2] sm:$0x1] %vm1185_vm7, %v1175_v51  ;;  %4236 = vmatmul.msk.f32.vlgmr.msrb.gmra.mxu1 %vm1044_vm2, %v1217_v58  ;;  %v1218_v7 = vld [vmem:[#allocation2 + $0x20] sm:$0xff]  ;;  %v1399_v44 = vld [vmem:[#allocation2 + $0x71] sm:$0xff] }
 0x18e   : > { %4253 = vmatmul.msk.f32.vlgmr.msrb.gmra.mxu3 %vm1044_vm2, %v1218_v7  ;;  %1193 = vst.msk [vmem:[#allocation2 + $0x70] sm:$0x1] %vm1185_vm7, %v1182_v11  ;;  %v1196_v15 = vld [vmem:[#allocation2 + $0x7] sm:$0x1]  ;;  %v1219_v23 = vld [vmem:[#allocation2 + $0x30] sm:$0xff]  ;;  %1744 = vmatpush.msrb.mxu1 %v4306_v21 }
 0x18f   : > { %1195 = vst.msk [vmem:[#allocation2 + $0x90] sm:$0x1] %vm1185_vm7, %v1184_v33  ;;  %v1220_v28 = vld [vmem:[#allocation2 + $0x40] sm:$0xff]  ;;  %v1401_v61 = vld [vmem:[#allocation2 + $0x91] sm:$0xff] }
 0x190   : > { %1207 = vst.msk [vmem:[#allocation2 + $0x19] sm:$0x1] %vm1185_vm7, %v1197_v2  ;;  %v1221_v38 = vld [vmem:[#allocation2 + $0x50] sm:$0xff]  ;;  %v1396_v43 = vld [vmem:[#allocation2 + $0x41] sm:$0xff] }
 0x191   : > { %1206 = vst.msk [vmem:[#allocation2 + $0x9] sm:$0x1] %vm1185_vm7, %v1196_v15  ;;  %v1398_v42 = vld [vmem:[#allocation2 + $0x61] sm:$0xff] }
 0x192   : > { %1208 = vst.msk [vmem:[#allocation2 + $0x29] sm:$0x1] %vm1185_vm7, %v1198_v20  ;;  %v1224_v25 = vld [vmem:[#allocation2 + $0x80] sm:$0xff] }
 0x193   : > { %1209 = vst.msk [vmem:[#allocation2 + $0x39] sm:$0x1] %vm1185_vm7, %v1199_v22  ;;  %v1222_v40 = vld [vmem:[#allocation2 + $0x60] sm:$0xff] }
 0x194   : > { %v1216_v19 = vld [vmem:[#allocation2] sm:$0xff]  ;;  %4263 = vmatmul.msk.f32.gmra.mxu0 %vm1044_vm2, %v1393_v26  ;;  %1210 = vst.msk [vmem:[#allocation2 + $0x49] sm:$0x1] %vm1185_vm7, %v1200_v9 }
 0x195   : > { %4244 = vmatmul.msk.f32.vlgmr.msrb.gmra.mxu2 %vm1044_vm2, %v1216_v19  ;;  %4237 = vmatmul.msk.f32.gmra.mxu1 %vm1044_vm2, %v1218_v7  ;;  %1211 = vst.msk [vmem:[#allocation2 + $0x59] sm:$0x1] %vm1185_vm7, %v1201_v24  ;;  %v1223_v49 = vld [vmem:[#allocation2 + $0x70] sm:$0xff]  ;;  %v1400_v34 = vld [vmem:[#allocation2 + $0x81] sm:$0xff] }
 0x196   : > { %4254 = vmatmul.msk.f32.gmra.mxu3 %vm1044_vm2, %v1219_v23  ;;  %1212 = vst.msk [vmem:[#allocation2 + $0x69] sm:$0x1] %vm1185_vm7, %v1202_v5  ;;  %v1225_v31 = vld [vmem:[#allocation2 + $0x90] sm:$0xff]  ;;  %v1593_v54 = vld [vmem:[#allocation2 + $0x82] sm:$0xff] }
 0x197   : > { %1213 = vst.msk [vmem:[#allocation2 + $0x79] sm:$0x1] %vm1185_vm7, %v1203_v13  ;;  %v1586_v52 = vld [vmem:[#allocation2 + $0x12] sm:$0xff] }
 0x198   : > { %1215 = vst.msk [vmem:[#allocation2 + $0x99] sm:$0x1] %vm1185_vm7, %v1205_v35  ;;  %v1585_v45 = vld [vmem:[#allocation2 + $0x2] sm:$0xff] }
 0x199   : > { %v1587_v48 = vld [vmem:[#allocation2 + $0x22] sm:$0xff] }
 0x19a   : > { %v1588_v3 = vld [vmem:[#allocation2 + $0x32] sm:$0xff] }
 0x19b   : > { %v1589_v32 = vld [vmem:[#allocation2 + $0x42] sm:$0xff] }
 0x19c   : > { %4264 = vmatmul.msk.f32.gmra.mxu0 %vm1044_vm2, %v1394_v59  ;;  %v1590_v39 = vld [vmem:[#allocation2 + $0x52] sm:$0xff] }
 0x19d   : > { %4245 = vmatmul.msk.f32.gmra.mxu2 %vm1044_vm2, %v1217_v58  ;;  %4238 = vmatmul.msk.f32.gmra.mxu1 %vm1044_vm2, %v1219_v23  ;;  %v1591_v47 = vld [vmem:[#allocation2 + $0x62] sm:$0xff] }
 0x19e   : > { %4255 = vmatmul.msk.f32.gmra.mxu3 %vm1044_vm2, %v1220_v28  ;;  %v1592_v53 = vld [vmem:[#allocation2 + $0x72] sm:$0xff] }
 0x19f   : > { %v1594_v22 = vld [vmem:[#allocation2 + $0x92] sm:$0xff] }
 0x1a4   : > { %4265 = vmatmul.msk.f32.gmra.mxu0 %vm1044_vm2, %v1395_v27 }
 0x1a5   : > { %4246 = vmatmul.msk.f32.gmra.mxu2 %vm1044_vm2, %v1218_v7  ;;  %4239 = vmatmul.msk.f32.gmra.mxu1 %vm1044_vm2, %v1220_v28 }
 0x1a6   : > { %4256 = vmatmul.msk.f32.gmra.mxu3 %vm1044_vm2, %v1221_v38 }
 0x1ac   : > { %4266 = vmatmul.msk.f32.gmra.mxu0 %vm1044_vm2, %v1396_v43 }
 0x1ad   : > { %4247 = vmatmul.msk.f32.gmra.mxu2 %vm1044_vm2, %v1219_v23  ;;  %4240 = vmatmul.msk.f32.gmra.mxu1 %vm1044_vm2, %v1221_v38 }
 0x1ae   : > { %4257 = vmatmul.msk.f32.gmra.mxu3 %vm1044_vm2, %v1222_v40 }
 0x1b4   : > { %4267 = vmatmul.msk.f32.gmra.mxu0 %vm1044_vm2, %v1397_v46 }
 0x1b5   : > { %4248 = vmatmul.msk.f32.gmra.mxu2 %vm1044_vm2, %v1220_v28  ;;  %4241 = vmatmul.msk.f32.gmra.mxu1 %vm1044_vm2, %v1222_v40 }
 0x1b6   : > { %4258 = vmatmul.msk.f32.gmra.mxu3 %vm1044_vm2, %v1223_v49 }
 0x1bc   : > { %4268 = vmatmul.msk.f32.gmra.mxu0 %vm1044_vm2, %v1398_v42 }
 0x1bd   : > { %4249 = vmatmul.msk.f32.gmra.mxu2 %vm1044_vm2, %v1221_v38  ;;  %4242 = vmatmul.msk.f32.gmra.mxu1 %vm1044_vm2, %v1223_v49 }
 0x1be   : > { %4259 = vmatmul.msk.f32.gmra.mxu3 %vm1044_vm2, %v1224_v25 }
 0x1c4   : > { %4269 = vmatmul.msk.f32.gmra.mxu0 %vm1044_vm2, %v1399_v44 }
 0x1c5   : > { %4250 = vmatmul.msk.f32.gmra.mxu2 %vm1044_vm2, %v1222_v40  ;;  %4243 = vmatmul.msk.f32.gmra.mxu1 %vm1044_vm2, %v1224_v25 }
 0x1c6   : > { %4260 = vmatmul.msk.f32.gmra.mxu3 %vm1044_vm2, %v1225_v31 }
 0x1cc   : > { %4298 = vmatmul.msk.f32.vlgmr.msra.gmra.mxu0 %vm1044_vm2, %v1586_v52 }
 0x1cd   : > { %4251 = vmatmul.msk.f32.gmra.mxu2 %vm1044_vm2, %v1223_v49  ;;  %4271 = vmatmul.msk.f32.vlgmr.msra.gmra.mxu1 %vm1044_vm2, %v1393_v26 }
 0x1ce   : > { %4289 = vmatmul.msk.f32.vlgmr.msra.gmra.mxu3 %vm1044_vm2, %v1585_v45 }
 0x1d4   : > { %4299 = vmatmul.msk.f32.gmra.mxu0 %vm1044_vm2, %v1587_v48 }
 0x1d5   : > { %4280 = vmatmul.msk.f32.vlgmr.msra.gmra.mxu2 %vm1044_vm2, %v1394_v59  ;;  %4272 = vmatmul.msk.f32.gmra.mxu1 %vm1044_vm2, %v1394_v59 }
 0x1d6   : > { %4290 = vmatmul.msk.f32.gmra.mxu3 %vm1044_vm2, %v1586_v52 }
 0x1dc   : > { %4300 = vmatmul.msk.f32.gmra.mxu0 %vm1044_vm2, %v1588_v3 }
 0x1dd   : > { %4281 = vmatmul.msk.f32.gmra.mxu2 %vm1044_vm2, %v1395_v27  ;;  %4273 = vmatmul.msk.f32.gmra.mxu1 %vm1044_vm2, %v1395_v27 }
 0x1de   : > { %4291 = vmatmul.msk.f32.gmra.mxu3 %vm1044_vm2, %v1587_v48 }
 0x1e4   : > { %4301 = vmatmul.msk.f32.gmra.mxu0 %vm1044_vm2, %v1589_v32 }
 0x1e5   : > { %4282 = vmatmul.msk.f32.gmra.mxu2 %vm1044_vm2, %v1396_v43  ;;  %4274 = vmatmul.msk.f32.gmra.mxu1 %vm1044_vm2, %v1396_v43 }
 0x1e6   : > { %4292 = vmatmul.msk.f32.gmra.mxu3 %vm1044_vm2, %v1588_v3 }
 0x1ec   : > { %4302 = vmatmul.msk.f32.gmra.mxu0 %vm1044_vm2, %v1590_v39 }
 0x1ed   : > { %4283 = vmatmul.msk.f32.gmra.mxu2 %vm1044_vm2, %v1397_v46  ;;  %4275 = vmatmul.msk.f32.gmra.mxu1 %vm1044_vm2, %v1397_v46 }
 0x1ee   : > { %4293 = vmatmul.msk.f32.gmra.mxu3 %vm1044_vm2, %v1589_v32 }
 0x1f4   : > { %4303 = vmatmul.msk.f32.gmra.mxu0 %vm1044_vm2, %v1591_v47 }
 0x1f5   : > { %4284 = vmatmul.msk.f32.gmra.mxu2 %vm1044_vm2, %v1398_v42  ;;  %4276 = vmatmul.msk.f32.gmra.mxu1 %vm1044_vm2, %v1398_v42 }
 0x1f6   : > { %4294 = vmatmul.msk.f32.gmra.mxu3 %vm1044_vm2, %v1590_v39 }
 0x1fc   : > { %4304 = vmatmul.msk.f32.gmra.mxu0 %vm1044_vm2, %v1592_v53 }
 0x1fd   : > { %4285 = vmatmul.msk.f32.gmra.mxu2 %vm1044_vm2, %v1399_v44  ;;  %4277 = vmatmul.msk.f32.gmra.mxu1 %vm1044_vm2, %v1399_v44 }
 0x1fe   : > { %4295 = vmatmul.msk.f32.gmra.mxu3 %vm1044_vm2, %v1591_v47 }
 0x204   : > { %4305 = vmatmul.msk.f32.gmra.mxu0 %vm1044_vm2, %v1593_v54 }
 0x205   : > { %4286 = vmatmul.msk.f32.gmra.mxu2 %vm1044_vm2, %v1400_v34  ;;  %4278 = vmatmul.msk.f32.gmra.mxu1 %vm1044_vm2, %v1400_v34 }
 0x206   : > { %4296 = vmatmul.msk.f32.gmra.mxu3 %vm1044_vm2, %v1592_v53 }
 0x209   : > { %v5130_v14 = vpop.f32.mrf.mxu0 }
 0x20a   : > { %v5115_v29 = vpop.f32.mrf.mxu1 }
 0x20d   : > { %4287 = vmatmul.msk.f32.gmra.mxu2 %vm1044_vm2, %v1401_v61  ;;  %4307 = vmatmul.msk.f32.vlgmr.msrb.gmra.mxu1 %vm1044_vm2, %v1587_v48 }
 0x211   : > { %v5128_v6 = vpop.f32.mrf.mxu3  ;;  %v5133_v18 = vpop.f32.mrf.mxu0 }
 0x212   : > { %v5119_v63 = vpop.f32.mrf.mxu1 }
 0x215   : > { %4308 = vmatmul.msk.f32.gmra.mxu1 %vm1044_vm2, %v1588_v3 }
 0x218   : > { %v1314_v55 = vpop.f32.mrf.mxu2 }
 0x219   : > { %v1363_v16 = vpop.f32.mrf.mxu3  ;;  %v5136_v7 = vpop.f32.mrf.mxu0  ;;  %v1315_v0 = vadd.f32 %v1314_v55, %v5115_v29 }
 0x21a   : > { %v5122_v10 = vpop.f32.mrf.mxu1 }
 0x21d   : > { %4309 = vmatmul.msk.f32.gmra.mxu1 %vm1044_vm2, %v1589_v32 }
 0x220   : > { %v1317_v50 = vpop.f32.mrf.mxu2 }
 0x221   : > { %v1366_v58 = vpop.f32.mrf.mxu3  ;;  %v1454_v9 = vpop.f32.mrf.mxu0  ;;  %v1318_v4 = vadd.f32 %v1317_v50, %v5119_v63 }
 0x222   : > { %v5125_v12 = vpop.f32.mrf.mxu1 }
 0x223   : > { %v1385_v62 = vadd.f32 %v1363_v16, %v1318_v4 }
 0x225   : > { %4310 = vmatmul.msk.f32.gmra.mxu1 %vm1044_vm2, %v1590_v39 }
 0x228   : > { %v1320_v51 = vpop.f32.mrf.mxu2 }
 0x229   : > { %v1369_v20 = vpop.f32.mrf.mxu3  ;;  %v1457_v5 = vpop.f32.mrf.mxu0  ;;  %v1321_v1 = vadd.f32 %v1320_v51, %v5122_v10 }
 0x22a   : > { %v1282_v60 = vpop.f32.mrf.mxu1 }
 0x22d   : > { %4311 = vmatmul.msk.f32.gmra.mxu1 %vm1044_vm2, %v1591_v47 }
 0x230   : > { %v1323_v2 = vpop.f32.mrf.mxu2 }
 0x231   : > { %v1372_v26 = vpop.f32.mrf.mxu3  ;;  %v1460_v28 = vpop.f32.mrf.mxu0  ;;  %v1324_v56 = vadd.f32 %v1323_v2, %v5125_v12 }
 0x232   : > { %v1285_v11 = vpop.f32.mrf.mxu1 }
 0x235   : > { %4312 = vmatmul.msk.f32.gmra.mxu1 %vm1044_vm2, %v1592_v53 }
 0x238   : > { %v1326_v24 = vpop.f32.mrf.mxu2 }
 0x239   : > { %v1375_v35 = vpop.f32.mrf.mxu3  ;;  %v5142_v37 = vpop.f32.mrf.mxu0  ;;  %v1327_v36 = vadd.f32 %v1326_v24, %v1282_v60 }
 0x23a   : > { %v1288_v33 = vpop.f32.mrf.mxu1  ;;  %5864 = vst [vmem:[#allocation12_spill] sm:$0xff] %v5142_v37  ;;  %v1470_v37 = vadd.f32 %v5133_v18, %v1385_v62 }
 0x23b   : > { %v1388_v63 = vadd.f32 %v1372_v26, %v1327_v36 }
 0x23d   : > { %4313 = vmatmul.msk.f32.gmra.mxu1 %vm1044_vm2, %v1593_v54  ;;  %v1473_v24 = vadd.f32 %v1457_v5, %v1388_v63 }
 0x240   : > { %v1329_v13 = vpop.f32.mrf.mxu2 }
 0x241   : > { %v1378_v17 = vpop.f32.mrf.mxu3  ;;  %v5146_v46 = vpop.f32.mrf.mxu0 }
 0x242   : > { %v5139_v15 = vpop.f32.mrf.mxu1  ;;  %5866 = vst [vmem:[#allocation14_spill] sm:$0xff] %v5146_v46  ;;  %v1384_v46 = vadd.f32 %v5128_v6, %v1315_v0 }
 0x244   : > { %v1469_v29 = vadd.f32 %v5130_v14, %v1384_v46 }
 0x245   : > { %4314 = vmatmul.msk.f32.gmra.mxu1 %vm1044_vm2, %v1594_v22 }
 0x248   : > { %v1332_v27 = vpop.f32.mrf.mxu2 }
 0x249   : > { %v5144_v40 = vpop.f32.mrf.mxu3  ;;  %v5148_v25 = vpop.f32.mrf.mxu0  ;;  %v1333_v50 = vadd.f32 %v1332_v27, %v1288_v33 }
 0x24a   : > { %v1499_v19 = vpop.f32.mrf.mxu1  ;;  %5865 = vst [vmem:[#allocation13_spill] sm:$0xff] %v5144_v40  ;;  %v1387_v40 = vadd.f32 %v1369_v20, %v1324_v56 }
 0x24b   : > { %5867 = vst [vmem:[#allocation15_spill] sm:$0xff] %v5148_v25  ;;  %v1386_v25 = vadd.f32 %v1366_v58, %v1321_v1  ;;  %v1523_v16 = vadd.f32 %v1499_v19, %v1469_v29  ;;  %v1390_v1 = vadd.f32 %v1378_v17, %v1333_v50 }
 0x24c   : > { %v1472_v2 = vadd.f32 %v1454_v9, %v1387_v40 }
 0x24d   : > { %v1471_v4 = vadd.f32 %v5136_v7, %v1386_v25 }
 0x250   : > { %v1335_v38 = vpop.f32.mrf.mxu2 }
 0x251   : > { %v1638_v42 = vpop.f32.mrf.mxu3  ;;  %v1695_v48 = vpop.f32.mrf.mxu0  ;;  %v1336_v14 = vadd.f32 %v1335_v38, %v5139_v15 }
 0x252   : > { %v1502_v23 = vpop.f32.mrf.mxu1  ;;  %v5873_v46 = vld [vmem:[#allocation15_spill] sm:$0xff] }
 0x253   : > { %v1524_v55 = vadd.f32 %v1502_v23, %v1470_v37  ;;  %v5871_v23 = vld [vmem:[#allocation12_spill] sm:$0xff] }
 0x254   : > { %v1475_v9 = vadd.f32 %v5871_v23, %v1390_v1 }
 0x258   : > { %v1553_v21 = vpop.f32.mrf.mxu2 }
 0x259   : > { %v1641_v52 = vpop.f32.mrf.mxu3  ;;  %v1698_v47 = vpop.f32.mrf.mxu0  ;;  %v1577_v6 = vadd.f32 %v1553_v21, %v1523_v16 }
 0x25a   : > { %v1505_v59 = vpop.f32.mrf.mxu1 }
 0x25b   : > { %v1525_v51 = vadd.f32 %v1505_v59, %v1471_v4  ;;  %v1662_v19 = vadd.f32 %v1638_v42, %v1577_v6 }
 0x25d   : > { %v1716_v15 = vadd.f32 %v5873_v46, %v1662_v19 }
 0x260   : > { %v1556_v44 = vpop.f32.mrf.mxu2 }
 0x261   : > { %v1644_v32 = vpop.f32.mrf.mxu3  ;;  %v5154_v61 = vpop.f32.mrf.mxu0  ;;  %v1578_v60 = vadd.f32 %v1556_v44, %v1524_v55 }
 0x262   : > { %v1508_v30 = vpop.f32.mrf.mxu1  ;;  %5870 = vst [vmem:[#allocation18_spill] sm:$0xff] %v5154_v61  ;;  %v1330_v61 = vadd.f32 %v1329_v13, %v1285_v11 }
 0x263   : > { %v1526_v11 = vadd.f32 %v1508_v30, %v1472_v2  ;;  %v1663_v33 = vadd.f32 %v1641_v52, %v1578_v60 }
 0x264   : > { %v1389_v10 = vadd.f32 %v1375_v35, %v1330_v61  ;;  %v5872_v35 = vld [vmem:[#allocation13_spill] sm:$0xff] }
 0x265   : > { %v1391_v59 = vadd.f32 %v5872_v35, %v1336_v14  ;;  %v1717_v30 = vadd.f32 %v1695_v48, %v1663_v33 }
 0x266   : > { %v1474_v18 = vadd.f32 %v1460_v28, %v1389_v10 }
 0x268   : > { %v1559_v3 = vpop.f32.mrf.mxu2 }
 0x269   : > { %v1647_v54 = vpop.f32.mrf.mxu3  ;;  %v1704_v41 = vpop.f32.mrf.mxu0  ;;  %v1579_v56 = vadd.f32 %v1559_v3, %v1525_v51 }
 0x26a   : > { %v1511_v43 = vpop.f32.mrf.mxu1 }
 0x26b   : > { %v1527_v62 = vadd.f32 %v1511_v43, %v1473_v24  ;;  %v1664_v13 = vadd.f32 %v1644_v32, %v1579_v56 }
 0x26d   : > { %v1718_v21 = vadd.f32 %v1698_v47, %v1664_v13 }
 0x270   : > { %v1562_v53 = vpop.f32.mrf.mxu2 }
 0x271   : > { %v1650_v57 = vpop.f32.mrf.mxu3  ;;  %v1707_v36 = vpop.f32.mrf.mxu0  ;;  %v1580_v7 = vadd.f32 %v1562_v53, %v1526_v11 }
 0x272   : > { %v1514_v49 = vpop.f32.mrf.mxu1 }
 0x273   : > { %v1528_v26 = vadd.f32 %v1514_v49, %v1474_v18  ;;  %v1665_v27 = vadd.f32 %v1647_v54, %v1580_v7  ;;  %v5874_v49 = vld [vmem:[#allocation14_spill] sm:$0xff] }
 0x274   : > { %v1476_v42 = vadd.f32 %v5874_v49, %v1391_v59 }
 0x278   : > { %v1565_v22 = vpop.f32.mrf.mxu2 }
 0x279   : > { %v1653_v12 = vpop.f32.mrf.mxu3  ;;  %v1581_v20 = vadd.f32 %v1565_v22, %v1527_v62  ;;  %v1710_v53 = vpop.f32.mrf.mxu0 }
 0x27a   : > { %v1517_v31 = vpop.f32.mrf.mxu1 }
 0x27b   : > { %v1529_v17 = vadd.f32 %v1517_v31, %v1475_v9  ;;  %v1666_v37 = vadd.f32 %v1650_v57, %v1581_v20  ;;  %v5878_v9 = vld [vmem:[#allocation5_spill] sm:$0xff] }
 0x27d   : > { %v1720_v31 = vadd.f32 %v1704_v41, %v1666_v37 }
 0x281   : > { %v1656_v43 = vpop.f32.mrf.mxu3  ;;  %v1713_v6 = vpop.f32.mrf.mxu0 }
 0x282   : > { %v5150_v45 = vpop.f32.mrf.mxu1 }
 0x283   : > { %5868 = vst [vmem:[#allocation16_spill] sm:$0xff] %v5150_v45  ;;  %v1568_v45 = vpop.f32.mrf.mxu2 }
 0x284   : > { %v1582_v5 = vadd.f32 %v1568_v45, %v1528_v26  ;;  %v5876_v45 = vld [vmem:[#allocation18_spill] sm:$0xff] }
 0x285   : > { %v1719_v32 = vadd.f32 %v5876_v45, %v1665_v27 }
 0x286   : > { %v1667_v25 = vadd.f32 %v1653_v12, %v1582_v5 }
 0x288   : > { %v1721_v50 = vadd.f32 %v1707_v36, %v1667_v25 }
 0x289   : > { %v1659_v41 = vpop.f32.mrf.mxu3 }
 0x28a   : > { %v5152_v39 = vpop.f32.mrf.mxu1  ;;  %v5877_v57 = vld [vmem:[#allocation16_spill] sm:$0xff] }
 0x28b   : > { %5869 = vst [vmem:[#allocation17_spill] sm:$0xff] %v5152_v39  ;;  %v1571_v58 = vpop.f32.mrf.mxu2  ;;  %v1530_v61 = vadd.f32 %v5877_v57, %v1476_v42 }
 0x28c   : > { %v1583_v40 = vadd.f32 %v1571_v58, %v1529_v17 }
 0x28e   : > { %v1668_v48 = vadd.f32 %v1656_v43, %v1583_v40 }
 0x290   : > { %v1722_v16 = vadd.f32 %v1710_v53, %v1668_v48 }
 0x292   : > { %v1749_v34 = vpop.f32.mrf.mxu1  ;;  %v5875_v44 = vld [vmem:[#allocation17_spill] sm:$0xff] }
 0x293   : > { %v1771_v38 = vadd.f32 %v1749_v34, %v1717_v30  ;;  %v1770_v52 = vadd.f32 %v5875_v44, %v1716_v15  ;;  %v1574_v54 = vpop.f32.mrf.mxu2 }
 0x294   : > { %v1584_v34 = vadd.f32 %v1574_v54, %v1530_v61 }
 0x295   : > { %v1779_v22 = vsel %vm1044_vm2, %v1771_v38, 0.0  ;;  %v1778_v47 = vsel %vm1044_vm2, %v1770_v52, 0.0 }
 0x296   : > { %v1780_v4 = vadd.f32 %v1779_v22, %v1778_v47  ;;  %v1669_v51 = vadd.f32 %v1659_v41, %v1584_v34  ;;  %v4316_v41 = vld [vmem:[%s5815_s5 + $0x60] sm:$0xff] }
 0x297   : > { %1984 = vmatpush.msrb.mxu2 %v4316_v41 }
 0x29a   : > { %v1752_v8 = vpop.f32.mrf.mxu1 }
 0x29b   : > { %v1772_v3 = vadd.f32 %v1752_v8, %v1718_v21 }
 0x29d   : > { %v1781_v29 = vsel %vm1044_vm2, %v1772_v3, 0.0 }
 0x29e   : > { %v1782_v60 = vadd.f32 %v1781_v29, %v1780_v4 }
 0x2a2   : > { %v1755_v39 = vpop.f32.mrf.mxu1 }
 0x2a3   : > { %v1773_v63 = vadd.f32 %v1755_v39, %v1719_v32 }
 0x2a5   : > { %v1783_v10 = vsel %vm1044_vm2, %v1773_v63, 0.0 }
 0x2a6   : > { %v1784_v39 = vadd.f32 %v1783_v10, %v1782_v60  ;;  %v4342_v60 = vld [vmem:[%s5815_s5 + $0x50] sm:$0xff] }
 0x2a7   : > { %2159 = vmatpush.msra.mxu1 %v4342_v60 }
 0x2aa   : > { %v1758_v0 = vpop.f32.mrf.mxu1 }
 0x2ab   : > { %v1774_v55 = vadd.f32 %v1758_v0, %v1720_v31  ;;  %v1723_v0 = vadd.f32 %v1713_v6, %v1669_v51 }
 0x2ad   : > { %v1785_v2 = vsel %vm1044_vm2, %v1774_v55, 0.0 }
 0x2ae   : > { %v1786_v56 = vadd.f32 %v1785_v2, %v1784_v39  ;;  %v4315_v39 = vld [vmem:[%s5815_s5 + $0x48] sm:$0xff] }
 0x2af   : > { %2028 = vmatpush.msrb.mxu3 %v4315_v39  ;;  %v4360_v39 = vld [vmem:[%s5815_s5 + $0x80] sm:$0xff] }
 0x2b1   : > { %2267 = vmatpush.msra.mxu3 %v4360_v39 }
 0x2b2   : > { %v1761_v28 = vpop.f32.mrf.mxu1 }
 0x2b3   : > { %v1775_v12 = vadd.f32 %v1761_v28, %v1721_v50 }
 0x2b5   : > { %v1787_v1 = vsel %vm1044_vm2, %v1775_v12, 0.0 }
 0x2b6   : > { %v1788_v62 = vadd.f32 %v1787_v1, %v1786_v56  ;;  %v4333_v1 = vld [vmem:[%s5815_s5 + $0x78] sm:$0xff] }
 0x2b7   : > { %2074 = vmatpush.msrb.mxu0 %v4333_v1  ;;  %v4369_v1 = vld [vmem:[%s5815_s5 + $0x58] sm:$0xff] }
 0x2b9   : > { %2352 = vmatpush.msra.mxu0 %v4369_v1 }
 0x2ba   : > { %v1764_v8 = vpop.f32.mrf.mxu1 }
 0x2bb   : > { %v1776_v24 = vadd.f32 %v1764_v8, %v1722_v16 }
 0x2bd   : > { %v1789_v11 = vsel %vm1044_vm2, %v1776_v24, 0.0 }
 0x2be   : > { %v1790_v58 = vadd.f32 %v1789_v11, %v1788_v62  ;;  %v4351_v62 = vld [vmem:[%s5815_s5 + $0x68] sm:$0xff] }
 0x2bf   : > { %2213 = vmatpush.msra.mxu2 %v4351_v62 }
 0x2c2   : > { %v1767_v36 = vpop.f32.mrf.mxu1 }
 0x2c3   : > { %v1777_v18 = vadd.f32 %v1767_v36, %v1723_v0 }
 0x2c5   : > { %v1791_v14 = vsel %vm1044_vm2, %v1777_v18, 0.0 }
 0x2c6   : > { %v1792_v33 = vadd.f32 %v1791_v14, %v1790_v58 }
 0x2c8   : > { %v1793_v7 = vrot.slane %v1792_v33, 4 }
 0x2ca   : > { %v1794_v20 = vadd.f32 %v1793_v7, %v1792_v33 }
 0x2cc   : > { %v1795_v26 = vrot.slane %v1794_v20, 2 }
 0x2ce   : > { %v1796_v19 = vadd.f32 %v1795_v26, %v1794_v20 }
 0x2d0   : > { %v1797_v13 = vrot.slane %v1796_v19, 1 }
 0x2d2   : > { %v1798_v23 = vadd.f32 %v1797_v13, %v1796_v19 }
 0x2d4   : > { %v1799_v5 = vmul.f32 %v1798_v23, %v5878_v9 }
 0x2d6   : > { %v1800_v35 = vsub.f32 %v1770_v52, %v1799_v5  ;;  %v1801_v59 = vsub.f32 %v1771_v38, %v1799_v5  ;;  %v5181_v27 = vsub.f32 %v1772_v3, %v1799_v5  ;;  %v5183_v17 = vsub.f32 %v1773_v63, %v1799_v5 }
 0x2d7   : > { %v1804_v30 = vsub.f32 %v1774_v55, %v1799_v5  ;;  %v1805_v40 = vsub.f32 %v1775_v12, %v1799_v5  ;;  %v1806_v38 = vsub.f32 %v1776_v24, %v1799_v5  ;;  %v1807_v52 = vsub.f32 %v1777_v18, %v1799_v5 }
 0x2d8   : > { %v1808_v37 = vmul.f32 %v1800_v35, %v1800_v35  ;;  %v1809_v43 = vmul.f32 %v1801_v59, %v1801_v59  ;;  %v1810_v28 = vmul.f32 %v5181_v27, %v5181_v27  ;;  %v1811_v46 = vmul.f32 %v5183_v17, %v5183_v17 }
 0x2d9   : > { %v1812_v49 = vmul.f32 %v1804_v30, %v1804_v30  ;;  %v1813_v3 = vmul.f32 %v1805_v40, %v1805_v40  ;;  %v1814_v53 = vmul.f32 %v1806_v38, %v1806_v38  ;;  %v1815_v48 = vmul.f32 %v1807_v52, %v1807_v52 }
 0x2da   : > { %v1816_v15 = vsel %vm1044_vm2, %v1808_v37, 0.0  ;;  %v1817_v21 = vsel %vm1044_vm2, %v1809_v43, 0.0  ;;  %v1819_v42 = vsel %vm1044_vm2, %v1810_v28, 0.0  ;;  %v1821_v45 = vsel %vm1044_vm2, %v1811_v46, 0.0 }
 0x2db   : > { %v1818_v25 = vadd.f32 %v1817_v21, %v1816_v15  ;;  %v1823_v54 = vsel %vm1044_vm2, %v1812_v49, 0.0  ;;  %v1825_v57 = vsel %vm1044_vm2, %v1813_v3, 0.0  ;;  %v1827_v22 = vsel %vm1044_vm2, %v1814_v53, 0.0 }
 0x2dc   : > { %v1829_v50 = vsel %vm1044_vm2, %v1815_v48, 0.0 }
 0x2dd   : > { %v1820_v44 = vadd.f32 %v1819_v42, %v1818_v25 }
 0x2df   : > { %v1822_v32 = vadd.f32 %v1821_v45, %v1820_v44 }
 0x2e1   : > { %v1824_v31 = vadd.f32 %v1823_v54, %v1822_v32 }
 0x2e3   : > { %v1826_v61 = vadd.f32 %v1825_v57, %v1824_v31 }
 0x2e5   : > { %v1828_v63 = vadd.f32 %v1827_v22, %v1826_v61 }
 0x2e7   : > { %v1830_v34 = vadd.f32 %v1829_v50, %v1828_v63 }
 0x2e9   : > { %v1831_v47 = vrot.slane %v1830_v34, 4 }
 0x2eb   : > { %v1832_v29 = vadd.f32 %v1831_v47, %v1830_v34 }
 0x2ed   : > { %v1833_v55 = vrot.slane %v1832_v29, 2 }
 0x2ef   : > { %v1834_v4 = vadd.f32 %v1833_v55, %v1832_v29 }
 0x2f1   : > { %v1835_v8 = vrot.slane %v1834_v4, 1 }
 0x2f3   : > { %v1836_v10 = vadd.f32 %v1835_v8, %v1834_v4 }
 0x2f5   : > { %v1837_v12 = vmul.f32 %v1836_v10, %v5878_v9 }
 0x2f7   : > { %v1838_v16 = vadd.f32 1e-05, %v1837_v12 }
 0x2f9   : > { %4581 = vrsqrt.f32 %v1838_v16  ;;  %vm1845_vm9 = vweird.f32 %v1838_v16 }
 0x2ff   : > { %v4582_v51 = vpop.eup %4581 }
 0x300   : > { %v1840_v2 = vmul.f32 %v4582_v51, %v1838_v16  ;;  %vm1846_vm8 = vweird.f32 %v4582_v51 }
 0x301   : > { %vm1847_vm10 = vmor %vm1845_vm9, %vm1846_vm8 }
 0x302   : > { %v1841_v24 = vmul.f32 %v4582_v51, %v1840_v2 }
 0x304   : > { %v1842_v6 = vmul.f32 0.5, %v1841_v24 }
 0x306   : > { %v1843_v56 = vsub.f32 1.5, %v1842_v6 }
 0x308   : > { %v1844_v11 = vmul.f32 %v4582_v51, %v1843_v56 }
 0x30a   : > { %v1848_v0 = vsel %vm1847_vm10, %v4582_v51, %v1844_v11  ;;  %v4378_v51 = vld [vmem:[%s5815_s5 + $0x70] sm:$0xff]  ;;  %v4387_v11 = vld [vmem:[%s5815_s5 + $0x88] sm:$0xff] }
 0x30b   : > { %v1849_v36 = vmul.f32 %v1848_v0, %v1800_v35  ;;  %v1850_v18 = vmul.f32 %v1848_v0, %v1801_v59  ;;  %v1853_v58 = vmul.f32 %v1848_v0, %v1804_v30  ;;  %v1854_v14 = vmul.f32 %v1848_v0, %v1805_v40  ;;  %2406 = vmatpush.msrb.mxu1 %v4378_v51 }
 0x30c   : > { %v1855_v33 = vmul.f32 %v1848_v0, %v1806_v38  ;;  %v1856_v7 = vmul.f32 %v1848_v0, %v1807_v52  ;;  %v1851_v20 = vmul.f32 %v1848_v0, %v5181_v27  ;;  %v1852_v26 = vmul.f32 %v1848_v0, %v5183_v17 }
 0x30d   : > { %vm1857_vm11 = vcmp.ge.f32.partialorder %v1849_v36, 0.0  ;;  %vm1858_vm12 = vcmp.ge.f32.partialorder %v1850_v18, 0.0  ;;  %vm1861_vm13 = vcmp.ge.f32.partialorder %v1853_v58, 0.0  ;;  %vm1862_vm14 = vcmp.ge.f32.partialorder %v1854_v14, 0.0 }
 0x30e   : > { %vm1863_vm15 = vcmp.ge.f32.partialorder %v1855_v33, 0.0  ;;  %vm1864_vm0 = vcmp.ge.f32.partialorder %v1856_v7, 0.0  ;;  %v1865_v19 = vmul.f32 0.01, %v1849_v36  ;;  %v1866_v13 = vmul.f32 0.01, %v1850_v18 }
 0x30f   : > { %v1869_v23 = vmul.f32 0.01, %v1853_v58  ;;  %v1870_v5 = vmul.f32 0.01, %v1854_v14  ;;  %v1867_v35 = vmul.f32 0.01, %v1851_v20 }
 0x310   : > { %v1871_v59 = vmul.f32 0.01, %v1855_v33  ;;  %v1872_v30 = vmul.f32 0.01, %v1856_v7  ;;  %v1873_v37 = vsel %vm1857_vm11, %v1849_v36, %v1865_v19  ;;  %vm1859_vm1 = vcmp.ge.f32.partialorder %v1851_v20, 0.0 }
 0x311   : > { %v1868_v43 = vmul.f32 0.01, %v1852_v26  ;;  %v1877_v28 = vsel %vm1861_vm13, %v1853_v58, %v1869_v23  ;;  %v1878_v27 = vsel %vm1862_vm14, %v1854_v14, %v1870_v5  ;;  %1881 = vst.msk [vmem:[#allocation2 + $0x11] sm:$0xff] %vm1044_vm2, %v1873_v37  ;;  %vm1860_vm3 = vcmp.ge.f32.partialorder %v1852_v26, 0.0 }
 0x312   : > { %v1879_v17 = vsel %vm1863_vm15, %v1855_v33, %v1871_v59  ;;  %v1880_v40 = vsel %vm1864_vm0, %v1856_v7, %v1872_v30  ;;  %1885 = vst.msk [vmem:[#allocation2 + $0x51] sm:$0xff] %vm1044_vm2, %v1877_v28  ;;  %v1874_v46 = vsel %vm1858_vm12, %v1850_v18, %v1866_v13  ;;  %v1875_v15 = vsel %vm1859_vm1, %v1851_v20, %v1867_v35 }
 0x313   : > { %1886 = vst.msk [vmem:[#allocation2 + $0x61] sm:$0xff] %vm1044_vm2, %v1878_v27  ;;  %v1876_v21 = vsel %vm1860_vm3, %v1852_v26, %v1868_v43 }
 0x314   : > { %1887 = vst.msk [vmem:[#allocation2 + $0x71] sm:$0xff] %vm1044_vm2, %v1879_v17 }
 0x315   : > { %1888 = vst.msk [vmem:[#allocation2 + $0x81] sm:$0xff] %vm1044_vm2, %v1880_v40 }
 0x316   : > { %1882 = vst.msk [vmem:[#allocation2 + $0x21] sm:$0xff] %vm1044_vm2, %v1874_v46 }
 0x317   : > { %1883 = vst.msk [vmem:[#allocation2 + $0x31] sm:$0xff] %vm1044_vm2, %v1875_v15 }
 0x318   : > { %1884 = vst.msk [vmem:[#allocation2 + $0x41] sm:$0xff] %vm1044_vm2, %v1876_v21  ;;  %v1892_v25 = vld [vmem:[#allocation2 + $0x12] sm:$0x1]  ;;  %v1912_v48 = vld [vmem:[#allocation2 + $0x17] sm:$0x1] }
 0x319   : > { %1889 = vst.msk [vmem:[#allocation2 + $0x1] sm:$0xff] %vm1044_vm2, %v1874_v46  ;;  %v1896_v38 = vld [vmem:[#allocation2 + $0x52] sm:$0x1]  ;;  %v1916_v34 = vld [vmem:[#allocation2 + $0x57] sm:$0x1] }
 0x31a   : > { %1890 = vst.msk [vmem:[#allocation2 + $0x91] sm:$0xff] %vm1044_vm2, %v1879_v17  ;;  %v1897_v49 = vld [vmem:[#allocation2 + $0x62] sm:$0x1]  ;;  %v5244_v29 = vld [vmem:[#allocation2 + $0x11] sm:$0xff]  ;;  %v1917_v55 = vld [vmem:[#allocation2 + $0x67] sm:$0x1] }
 0x31b   : > { %1902 = vst.msk [vmem:[#allocation2 + $0x10] sm:$0x1] %vm1185_vm7, %v1892_v25  ;;  %v1898_v52 = vld [vmem:[#allocation2 + $0x72] sm:$0x1]  ;;  %v1918_v4 = vld [vmem:[#allocation2 + $0x77] sm:$0x1] }
 0x31c   : > { %1906 = vst.msk [vmem:[#allocation2 + $0x50] sm:$0x1] %vm1185_vm7, %v1896_v38  ;;  %v1899_v45 = vld [vmem:[#allocation2 + $0x82] sm:$0x1]  ;;  %v1919_v8 = vld [vmem:[#allocation2 + $0x87] sm:$0x1] }
 0x31d   : > { %v1893_v42 = vld [vmem:[#allocation2 + $0x22] sm:$0x1]  ;;  %1907 = vst.msk [vmem:[#allocation2 + $0x60] sm:$0x1] %vm1185_vm7, %v1897_v49  ;;  %v1913_v61 = vld [vmem:[#allocation2 + $0x27] sm:$0x1] }
 0x31e   : > { %1903 = vst.msk [vmem:[#allocation2 + $0x20] sm:$0x1] %vm1185_vm7, %v1893_v42  ;;  %v1894_v44 = vld [vmem:[#allocation2 + $0x32] sm:$0x1]  ;;  %v1914_v63 = vld [vmem:[#allocation2 + $0x37] sm:$0x1] }
 0x31f   : > { %1904 = vst.msk [vmem:[#allocation2 + $0x30] sm:$0x1] %vm1185_vm7, %v1894_v44  ;;  %v1895_v3 = vld [vmem:[#allocation2 + $0x42] sm:$0x1]  ;;  %v1915_v50 = vld [vmem:[#allocation2 + $0x47] sm:$0x1] }
 0x320   : > { %v2108_v32 = vld [vmem:[#allocation2 + $0x1] sm:$0xff]  ;;  %1905 = vst.msk [vmem:[#allocation2 + $0x40] sm:$0x1] %vm1185_vm7, %v1895_v3  ;;  %v2111_v60 = vld [vmem:[#allocation2 + $0x31] sm:$0xff] }
 0x321   : > { %v1891_v53 = vld [vmem:[#allocation2 + $0x2] sm:$0x1]  ;;  %4343 = vmatmul.msk.f32.vlgmr.msra.gmra.mxu1 %vm1044_vm2, %v2108_v32  ;;  %v1900_v54 = vld [vmem:[#allocation2 + $0x92] sm:$0x1]  ;;  %1908 = vst.msk [vmem:[#allocation2 + $0x70] sm:$0x1] %vm1185_vm7, %v1898_v52 }
 0x322   : > { %1901 = vst.msk [vmem:[#allocation2] sm:$0x1] %vm1185_vm7, %v1891_v53  ;;  %v1932_v31 = vld [vmem:[#allocation2 + $0x10] sm:$0xff]  ;;  %v1911_v57 = vld [vmem:[#allocation2 + $0x7] sm:$0x1] }
 0x323   : > { %4317 = vmatmul.msk.f32.vlgmr.msrb.gmra.mxu2 %vm1044_vm2, %v1932_v31  ;;  %1909 = vst.msk [vmem:[#allocation2 + $0x80] sm:$0x1] %vm1185_vm7, %v1899_v45  ;;  %v1920_v10 = vld [vmem:[#allocation2 + $0x97] sm:$0x1]  ;;  %v2110_v16 = vld [vmem:[#allocation2 + $0x21] sm:$0xff] }
 0x324   : > { %1910 = vst.msk [vmem:[#allocation2 + $0x90] sm:$0x1] %vm1185_vm7, %v1900_v54  ;;  %v1936_v2 = vld [vmem:[#allocation2 + $0x50] sm:$0xff]  ;;  %v2112_v24 = vld [vmem:[#allocation2 + $0x41] sm:$0xff]  ;;  %2460 = vmatpush.msrb.mxu2 %v4387_v11 }
 0x325   : > { %v1933_v22 = vld [vmem:[#allocation2 + $0x20] sm:$0xff]  ;;  %1922 = vst.msk [vmem:[#allocation2 + $0x19] sm:$0x1] %vm1185_vm7, %v1912_v48  ;;  %v2113_v56 = vld [vmem:[#allocation2 + $0x51] sm:$0xff] }
 0x326   : > { %4334 = vmatmul.msk.f32.vlgmr.msrb.gmra.mxu0 %vm1044_vm2, %v1933_v22  ;;  %1921 = vst.msk [vmem:[#allocation2 + $0x9] sm:$0x1] %vm1185_vm7, %v1911_v57  ;;  %v1934_v12 = vld [vmem:[#allocation2 + $0x30] sm:$0xff]  ;;  %v1937_v6 = vld [vmem:[#allocation2 + $0x60] sm:$0xff] }
 0x327   : > { %1923 = vst.msk [vmem:[#allocation2 + $0x29] sm:$0x1] %vm1185_vm7, %v1913_v61  ;;  %v1935_v41 = vld [vmem:[#allocation2 + $0x40] sm:$0xff]  ;;  %v2115_v18 = vld [vmem:[#allocation2 + $0x71] sm:$0xff] }
 0x328   : > { %1924 = vst.msk [vmem:[#allocation2 + $0x39] sm:$0x1] %vm1185_vm7, %v1914_v63  ;;  %v1938_v0 = vld [vmem:[#allocation2 + $0x70] sm:$0xff]  ;;  %v2114_v62 = vld [vmem:[#allocation2 + $0x61] sm:$0xff] }
 0x329   : > { %v1931_v47 = vld [vmem:[#allocation2] sm:$0xff]  ;;  %4344 = vmatmul.msk.f32.gmra.mxu1 %vm1044_vm2, %v5244_v29  ;;  %1925 = vst.msk [vmem:[#allocation2 + $0x49] sm:$0x1] %vm1185_vm7, %v1915_v50  ;;  %v2117_v59 = vld [vmem:[#allocation2 + $0x91] sm:$0xff] }
 0x32a   : > { %4325 = vmatmul.msk.f32.vlgmr.msrb.gmra.mxu3 %vm1044_vm2, %v1931_v47  ;;  %1926 = vst.msk [vmem:[#allocation2 + $0x59] sm:$0x1] %vm1185_vm7, %v1916_v34  ;;  %v1939_v36 = vld [vmem:[#allocation2 + $0x80] sm:$0xff] }
 0x32b   : > { %4318 = vmatmul.msk.f32.gmra.mxu2 %vm1044_vm2, %v1933_v22  ;;  %1927 = vst.msk [vmem:[#allocation2 + $0x69] sm:$0x1] %vm1185_vm7, %v1917_v55  ;;  %v1940_v58 = vld [vmem:[#allocation2 + $0x90] sm:$0xff]  ;;  %v2116_v5 = vld [vmem:[#allocation2 + $0x81] sm:$0xff] }
 0x32c   : > { %1928 = vst.msk [vmem:[#allocation2 + $0x79] sm:$0x1] %vm1185_vm7, %v1918_v4  ;;  %v2302_v14 = vld [vmem:[#allocation2 + $0x12] sm:$0xff] }
 0x32d   : > { %1929 = vst.msk [vmem:[#allocation2 + $0x89] sm:$0x1] %vm1185_vm7, %v1919_v8  ;;  %v2301_v33 = vld [vmem:[#allocation2 + $0x2] sm:$0xff] }
 0x32e   : > { %4335 = vmatmul.msk.f32.gmra.mxu0 %vm1044_vm2, %v1934_v12  ;;  %1930 = vst.msk [vmem:[#allocation2 + $0x99] sm:$0x1] %vm1185_vm7, %v1920_v10  ;;  %v2303_v7 = vld [vmem:[#allocation2 + $0x22] sm:$0xff] }
 0x32f   : > { %v2304_v20 = vld [vmem:[#allocation2 + $0x32] sm:$0xff] }
 0x330   : > { %v2305_v26 = vld [vmem:[#allocation2 + $0x42] sm:$0xff] }
 0x331   : > { %4345 = vmatmul.msk.f32.gmra.mxu1 %vm1044_vm2, %v2110_v16  ;;  %v2306_v19 = vld [vmem:[#allocation2 + $0x52] sm:$0xff] }
 0x332   : > { %4326 = vmatmul.msk.f32.gmra.mxu3 %vm1044_vm2, %v1932_v31  ;;  %v2307_v13 = vld [vmem:[#allocation2 + $0x62] sm:$0xff] }
 0x333   : > { %4319 = vmatmul.msk.f32.gmra.mxu2 %vm1044_vm2, %v1934_v12  ;;  %v2308_v23 = vld [vmem:[#allocation2 + $0x72] sm:$0xff] }
 0x334   : > { %v2309_v35 = vld [vmem:[#allocation2 + $0x82] sm:$0xff] }
 0x335   : > { %v2310_v3 = vld [vmem:[#allocation2 + $0x92] sm:$0xff] }
 0x336   : > { %4336 = vmatmul.msk.f32.gmra.mxu0 %vm1044_vm2, %v1935_v41 }
 0x339   : > { %4346 = vmatmul.msk.f32.gmra.mxu1 %vm1044_vm2, %v2111_v60 }
 0x33a   : > { %4327 = vmatmul.msk.f32.gmra.mxu3 %vm1044_vm2, %v1933_v22 }
 0x33b   : > { %4320 = vmatmul.msk.f32.gmra.mxu2 %vm1044_vm2, %v1935_v41 }
 0x33e   : > { %4337 = vmatmul.msk.f32.gmra.mxu0 %vm1044_vm2, %v1936_v2 }
 0x341   : > { %4347 = vmatmul.msk.f32.gmra.mxu1 %vm1044_vm2, %v2112_v24 }
 0x342   : > { %4328 = vmatmul.msk.f32.gmra.mxu3 %vm1044_vm2, %v1934_v12 }
 0x343   : > { %4321 = vmatmul.msk.f32.gmra.mxu2 %vm1044_vm2, %v1936_v2 }
 0x346   : > { %4338 = vmatmul.msk.f32.gmra.mxu0 %vm1044_vm2, %v1937_v6 }
 0x349   : > { %4348 = vmatmul.msk.f32.gmra.mxu1 %vm1044_vm2, %v2113_v56 }
 0x34a   : > { %4329 = vmatmul.msk.f32.gmra.mxu3 %vm1044_vm2, %v1935_v41 }
 0x34b   : > { %4322 = vmatmul.msk.f32.gmra.mxu2 %vm1044_vm2, %v1937_v6 }
 0x34e   : > { %4339 = vmatmul.msk.f32.gmra.mxu0 %vm1044_vm2, %v1938_v0 }
 0x351   : > { %4349 = vmatmul.msk.f32.gmra.mxu1 %vm1044_vm2, %v2114_v62 }
 0x352   : > { %4330 = vmatmul.msk.f32.gmra.mxu3 %vm1044_vm2, %v1936_v2 }
 0x353   : > { %4323 = vmatmul.msk.f32.gmra.mxu2 %vm1044_vm2, %v1938_v0 }
 0x356   : > { %4340 = vmatmul.msk.f32.gmra.mxu0 %vm1044_vm2, %v1939_v36 }
 0x359   : > { %4350 = vmatmul.msk.f32.gmra.mxu1 %vm1044_vm2, %v2115_v18 }
 0x35a   : > { %4331 = vmatmul.msk.f32.gmra.mxu3 %vm1044_vm2, %v1937_v6 }
 0x35b   : > { %4324 = vmatmul.msk.f32.gmra.mxu2 %vm1044_vm2, %v1939_v36 }
 0x35e   : > { %4341 = vmatmul.msk.f32.gmra.mxu0 %vm1044_vm2, %v1940_v58 }
 0x361   : > { %4379 = vmatmul.msk.f32.vlgmr.msrb.gmra.mxu1 %vm1044_vm2, %v2302_v14 }
 0x362   : > { %4332 = vmatmul.msk.f32.gmra.mxu3 %vm1044_vm2, %v1938_v0 }
 0x363   : > { %4352 = vmatmul.msk.f32.vlgmr.msra.gmra.mxu2 %vm1044_vm2, %v5244_v29 }
 0x366   : > { %4370 = vmatmul.msk.f32.vlgmr.msra.gmra.mxu0 %vm1044_vm2, %v2301_v33 }
 0x369   : > { %4380 = vmatmul.msk.f32.gmra.mxu1 %vm1044_vm2, %v2303_v7 }
 0x36a   : > { %4361 = vmatmul.msk.f32.vlgmr.msra.gmra.mxu3 %vm1044_vm2, %v2110_v16 }
 0x36b   : > { %4353 = vmatmul.msk.f32.gmra.mxu2 %vm1044_vm2, %v2110_v16 }
 0x36e   : > { %4371 = vmatmul.msk.f32.gmra.mxu0 %vm1044_vm2, %v2302_v14 }
 0x371   : > { %4381 = vmatmul.msk.f32.gmra.mxu1 %vm1044_vm2, %v2304_v20 }
 0x372   : > { %4362 = vmatmul.msk.f32.gmra.mxu3 %vm1044_vm2, %v2111_v60 }
 0x373   : > { %4354 = vmatmul.msk.f32.gmra.mxu2 %vm1044_vm2, %v2111_v60 }
 0x376   : > { %4372 = vmatmul.msk.f32.gmra.mxu0 %vm1044_vm2, %v2303_v7 }
 0x379   : > { %4382 = vmatmul.msk.f32.gmra.mxu1 %vm1044_vm2, %v2305_v26 }
 0x37a   : > { %4363 = vmatmul.msk.f32.gmra.mxu3 %vm1044_vm2, %v2112_v24 }
 0x37b   : > { %4355 = vmatmul.msk.f32.gmra.mxu2 %vm1044_vm2, %v2112_v24 }
 0x37e   : > { %4373 = vmatmul.msk.f32.gmra.mxu0 %vm1044_vm2, %v2304_v20 }
 0x381   : > { %4383 = vmatmul.msk.f32.gmra.mxu1 %vm1044_vm2, %v2306_v19 }
 0x382   : > { %4364 = vmatmul.msk.f32.gmra.mxu3 %vm1044_vm2, %v2113_v56 }
 0x383   : > { %4356 = vmatmul.msk.f32.gmra.mxu2 %vm1044_vm2, %v2113_v56 }
 0x386   : > { %4374 = vmatmul.msk.f32.gmra.mxu0 %vm1044_vm2, %v2305_v26 }
 0x389   : > { %4384 = vmatmul.msk.f32.gmra.mxu1 %vm1044_vm2, %v2307_v13 }
 0x38a   : > { %4365 = vmatmul.msk.f32.gmra.mxu3 %vm1044_vm2, %v2114_v62 }
 0x38b   : > { %4357 = vmatmul.msk.f32.gmra.mxu2 %vm1044_vm2, %v2114_v62 }
 0x38e   : > { %4375 = vmatmul.msk.f32.gmra.mxu0 %vm1044_vm2, %v2306_v19 }
 0x391   : > { %4385 = vmatmul.msk.f32.gmra.mxu1 %vm1044_vm2, %v2308_v23 }
 0x392   : > { %4366 = vmatmul.msk.f32.gmra.mxu3 %vm1044_vm2, %v2115_v18 }
 0x393   : > { %4358 = vmatmul.msk.f32.gmra.mxu2 %vm1044_vm2, %v2115_v18 }
 0x396   : > { %4376 = vmatmul.msk.f32.gmra.mxu0 %vm1044_vm2, %v2307_v13 }
 0x399   : > { %4386 = vmatmul.msk.f32.gmra.mxu1 %vm1044_vm2, %v2309_v35 }
 0x39a   : > { %4367 = vmatmul.msk.f32.gmra.mxu3 %vm1044_vm2, %v2116_v5 }
 0x39b   : > { %4359 = vmatmul.msk.f32.gmra.mxu2 %vm1044_vm2, %v2116_v5 }
 0x39e   : > { %4377 = vmatmul.msk.f32.gmra.mxu0 %vm1044_vm2, %v2308_v23  ;;  %v5335_v40 = vpop.f32.mrf.mxu1 }
 0x3a2   : > { %4368 = vmatmul.msk.f32.gmra.mxu3 %vm1044_vm2, %v2117_v59 }
 0x3a3   : > { %4388 = vmatmul.msk.f32.vlgmr.msrb.gmra.mxu2 %vm1044_vm2, %v2303_v7  ;;  %v2076_v17 = vpop.f32.mrf.mxu0 }
 0x3a6   : > { %v5329_v30 = vpop.f32.mrf.mxu2  ;;  %v2164_v38 = vpop.f32.mrf.mxu1 }
 0x3ab   : > { %4389 = vmatmul.msk.f32.gmra.mxu2 %vm1044_vm2, %v2304_v20  ;;  %v2079_v21 = vpop.f32.mrf.mxu0 }
 0x3ad   : > { %v2030_v28 = vpop.f32.mrf.mxu3 }
 0x3ae   : > { %v1989_v37 = vpop.f32.mrf.mxu2  ;;  %v2167_v52 = vpop.f32.mrf.mxu1 }
 0x3b3   : > { %4390 = vmatmul.msk.f32.gmra.mxu2 %vm1044_vm2, %v2305_v26  ;;  %v2082_v42 = vpop.f32.mrf.mxu0 }
 0x3b5   : > { %v2033_v15 = vpop.f32.mrf.mxu3 }
 0x3b6   : > { %v1992_v43 = vpop.f32.mrf.mxu2  ;;  %v2170_v54 = vpop.f32.mrf.mxu1 }
 0x3bb   : > { %4391 = vmatmul.msk.f32.gmra.mxu2 %vm1044_vm2, %v2306_v19  ;;  %v2085_v53 = vpop.f32.mrf.mxu0  ;;  %v2034_v19 = vadd.f32 %v2033_v15, %v1989_v37 }
 0x3bd   : > { %v2036_v49 = vpop.f32.mrf.mxu3 }
 0x3be   : > { %v1995_v27 = vpop.f32.mrf.mxu2  ;;  %v2173_v61 = vpop.f32.mrf.mxu1 }
 0x3c3   : > { %4392 = vmatmul.msk.f32.gmra.mxu2 %vm1044_vm2, %v2307_v13  ;;  %v2088_v57 = vpop.f32.mrf.mxu0  ;;  %v2031_v13 = vadd.f32 %v2030_v28, %v5329_v30 }
 0x3c5   : > { %v2039_v45 = vpop.f32.mrf.mxu3 }
 0x3c6   : > { %v1998_v46 = vpop.f32.mrf.mxu2  ;;  %v2176_v47 = vpop.f32.mrf.mxu1  ;;  %v2040_v59 = vadd.f32 %v2039_v45, %v1995_v27 }
 0x3cb   : > { %4393 = vmatmul.msk.f32.gmra.mxu2 %vm1044_vm2, %v2308_v23  ;;  %v2091_v50 = vpop.f32.mrf.mxu0  ;;  %v2037_v23 = vadd.f32 %v2036_v49, %v1992_v43 }
 0x3cd   : > { %v2042_v31 = vpop.f32.mrf.mxu3  ;;  %v2102_v9 = vadd.f32 %v2082_v42, %v2037_v23 }
 0x3ce   : > { %v2001_v25 = vpop.f32.mrf.mxu2  ;;  %v5342_v8 = vpop.f32.mrf.mxu1 }
 0x3cf   : > { %5880 = vst [vmem:[#allocation13_spill] sm:$0xff] %v5342_v8  ;;  %v2187_v30 = vadd.f32 %v2167_v52, %v2102_v9 }
 0x3d3   : > { %4394 = vmatmul.msk.f32.gmra.mxu2 %vm1044_vm2, %v2309_v35  ;;  %v2094_v55 = vpop.f32.mrf.mxu0  ;;  %v2101_v35 = vadd.f32 %v2079_v21, %v2034_v19 }
 0x3d5   : > { %v2045_v63 = vpop.f32.mrf.mxu3  ;;  %v2186_v8 = vadd.f32 %v2164_v38, %v2101_v35 }
 0x3d6   : > { %v2004_v44 = vpop.f32.mrf.mxu2  ;;  %v5344_v41 = vpop.f32.mrf.mxu1  ;;  %v5888_v52 = vld [vmem:[#allocation13_spill] sm:$0xff] }
 0x3d7   : > { %5881 = vst [vmem:[#allocation15_spill] sm:$0xff] %v5344_v41  ;;  %v2103_v41 = vadd.f32 %v2085_v53, %v2040_v59 }
 0x3d9   : > { %v2188_v21 = vadd.f32 %v2170_v54, %v2103_v41 }
 0x3db   : > { %4395 = vmatmul.msk.f32.gmra.mxu2 %vm1044_vm2, %v2310_v3  ;;  %v2097_v16 = vpop.f32.mrf.mxu0  ;;  %v2100_v3 = vadd.f32 %v2076_v17, %v2031_v13 }
 0x3dd   : > { %v2048_v29 = vpop.f32.mrf.mxu3 }
 0x3de   : > { %v5340_v32 = vpop.f32.mrf.mxu2  ;;  %v5346_v24 = vpop.f32.mrf.mxu1  ;;  %v2049_v37 = vadd.f32 %v2048_v29, %v2004_v44 }
 0x3df   : > { %5879 = vst [vmem:[#allocation12_spill] sm:$0xff] %v5340_v32  ;;  %v2185_v32 = vadd.f32 %v5335_v40, %v2100_v3 }
 0x3e0   : > { %5882 = vst [vmem:[#allocation14_spill] sm:$0xff] %v5346_v24  ;;  %v2106_v17 = vadd.f32 %v2094_v55, %v2049_v37 }
 0x3e3   : > { %v2354_v2 = vpop.f32.mrf.mxu0 }
 0x3e5   : > { %v2051_v10 = vpop.f32.mrf.mxu3 }
 0x3e6   : > { %v2215_v48 = vpop.f32.mrf.mxu2  ;;  %v2411_v11 = vpop.f32.mrf.mxu1  ;;  %v5887_v45 = vld [vmem:[#allocation12_spill] sm:$0xff] }
 0x3e7   : > { %v2239_v49 = vadd.f32 %v2215_v48, %v2185_v32  ;;  %v2191_v32 = vadd.f32 %v5888_v52, %v2106_v17 }
 0x3eb   : > { %v2357_v6 = vpop.f32.mrf.mxu0 }
 0x3ed   : > { %v2269_v60 = vpop.f32.mrf.mxu3 }
 0x3ee   : > { %v2218_v22 = vpop.f32.mrf.mxu2  ;;  %v5352_v18 = vpop.f32.mrf.mxu1  ;;  %v2293_v53 = vadd.f32 %v2269_v60, %v2239_v49  ;;  %v5890_v60 = vld [vmem:[#allocation14_spill] sm:$0xff] }
 0x3ef   : > { %5885 = vst [vmem:[#allocation16_spill] sm:$0xff] %v5352_v18  ;;  %v2240_v28 = vadd.f32 %v2218_v22, %v2186_v8 }
 0x3f0   : > { %v2378_v54 = vadd.f32 %v2354_v2, %v2293_v53 }
 0x3f3   : > { %v2360_v62 = vpop.f32.mrf.mxu0 }
 0x3f5   : > { %v2272_v1 = vpop.f32.mrf.mxu3 }
 0x3f6   : > { %v2221_v34 = vpop.f32.mrf.mxu2  ;;  %v5354_v7 = vpop.f32.mrf.mxu1  ;;  %v2294_v42 = vadd.f32 %v2272_v1, %v2240_v28 }
 0x3f7   : > { %5886 = vst [vmem:[#allocation19_spill] sm:$0xff] %v5354_v7  ;;  %v2241_v19 = vadd.f32 %v2221_v34, %v2187_v30 }
 0x3f8   : > { %v2379_v22 = vadd.f32 %v2357_v6, %v2294_v42 }
 0x3fa   : > { %v2433_v8 = vadd.f32 %v2411_v11, %v2379_v22 }
 0x3fb   : > { %v2363_v33 = vpop.f32.mrf.mxu0 }
 0x3fd   : > { %v2275_v0 = vpop.f32.mrf.mxu3 }
 0x3fe   : > { %v2224_v4 = vpop.f32.mrf.mxu2  ;;  %v2420_v24 = vpop.f32.mrf.mxu1  ;;  %v2295_v40 = vadd.f32 %v2275_v0, %v2241_v19  ;;  %v5891_v0 = vld [vmem:[#allocation16_spill] sm:$0xff] }
 0x400   : > { %v2380_v34 = vadd.f32 %v2360_v62, %v2295_v40 }
 0x403   : > { %v2366_v5 = vpop.f32.mrf.mxu0 }
 0x405   : > { %v2278_v58 = vpop.f32.mrf.mxu3 }
 0x406   : > { %v2227_v12 = vpop.f32.mrf.mxu2 }
 0x40b   : > { %v2369_v27 = vpop.f32.mrf.mxu0 }
 0x40d   : > { %v2281_v20 = vpop.f32.mrf.mxu3 }
 0x40e   : > { %v2230_v51 = vpop.f32.mrf.mxu2 }
 0x415   : > { %v2284_v7 = vpop.f32.mrf.mxu3 }
 0x416   : > { %v2233_v39 = vpop.f32.mrf.mxu2 }
 0x417   : > { %v2245_v55 = vadd.f32 %v2233_v39, %v2191_v32 }
 0x41e   : > { %v5348_v56 = vpop.f32.mrf.mxu2 }
 0x41f   : > { %5883 = vst [vmem:[#allocation17_spill] sm:$0xff] %v5348_v56  ;;  %v2043_v56 = vadd.f32 %v2042_v31, %v1998_v46  ;;  %v2242_v46 = vadd.f32 %v2224_v4, %v2188_v21  ;;  %v2052_v31 = vadd.f32 %v2051_v10, %v5887_v45  ;;  %v2372_v10 = vpop.f32.mrf.mxu0 }
 0x421   : > { %v2104_v15 = vadd.f32 %v2088_v57, %v2043_v56  ;;  %v2423_v57 = vpop.f32.mrf.mxu1  ;;  %v2296_v9 = vadd.f32 %v2278_v58, %v2242_v46  ;;  %v2107_v48 = vadd.f32 %v2097_v16, %v2052_v31 }
 0x423   : > { %v2381_v4 = vadd.f32 %v2363_v33, %v2296_v9 }
 0x426   : > { %v5350_v36 = vpop.f32.mrf.mxu2  ;;  %v5892_v2 = vld [vmem:[#allocation17_spill] sm:$0xff] }
 0x427   : > { %5884 = vst [vmem:[#allocation18_spill] sm:$0xff] %v5350_v36  ;;  %v2046_v36 = vadd.f32 %v2045_v63, %v2001_v25  ;;  %v2189_v25 = vadd.f32 %v2173_v61, %v2104_v15 }
 0x429   : > { %v2105_v43 = vadd.f32 %v2091_v50, %v2046_v36  ;;  %v2243_v13 = vadd.f32 %v2227_v12, %v2189_v25  ;;  %v2287_v50 = vpop.f32.mrf.mxu3  ;;  %v2432_v12 = vadd.f32 %v5890_v60, %v2378_v54  ;;  %v2434_v36 = vadd.f32 %v5891_v0, %v2380_v34  ;;  %v2426_v11 = vpop.f32.mrf.mxu1  ;;  %v5895_v34 = vld [vmem:[#allocation5_spill] sm:$0xff] }
 0x42a   : > { %v2299_v6 = vadd.f32 %v2287_v50, %v2245_v55 }
 0x42b   : > { %v2190_v38 = vadd.f32 %v2176_v47, %v2105_v43  ;;  %v2297_v29 = vadd.f32 %v2281_v20, %v2243_v13  ;;  %v5889_v47 = vld [vmem:[#allocation15_spill] sm:$0xff] }
 0x42c   : > { %v2192_v41 = vadd.f32 %v5889_v47, %v2107_v48  ;;  %v2384_v23 = vadd.f32 %v2372_v10, %v2299_v6 }
 0x42d   : > { %v2244_v44 = vadd.f32 %v2230_v51, %v2190_v38  ;;  %v2382_v51 = vadd.f32 %v2366_v5, %v2297_v29 }
 0x42e   : > { %v2465_v14 = vpop.f32.mrf.mxu2  ;;  %v2246_v58 = vadd.f32 %v5892_v2, %v2192_v41  ;;  %v5893_v62 = vld [vmem:[#allocation18_spill] sm:$0xff]  ;;  %v2438_v21 = vadd.f32 %v2426_v11, %v2384_v23 }
 0x42f   : > { %v2298_v61 = vadd.f32 %v2284_v7, %v2244_v44  ;;  %v2487_v56 = vadd.f32 %v2465_v14, %v2433_v8  ;;  %v2486_v20 = vadd.f32 %v5893_v62, %v2432_v12  ;;  %v5894_v7 = vld [vmem:[#allocation19_spill] sm:$0xff]  ;;  %v2436_v3 = vadd.f32 %v2420_v24, %v2382_v51 }
 0x430   : > { %v2435_v33 = vadd.f32 %v5894_v7, %v2381_v4 }
 0x431   : > { %v2383_v16 = vadd.f32 %v2369_v27, %v2298_v61  ;;  %v2495_v35 = vsel %vm1044_vm2, %v2487_v56, 0.0  ;;  %v2290_v15 = vpop.f32.mrf.mxu3  ;;  %v2494_v14 = vsel %vm1044_vm2, %v2486_v20, 0.0  ;;  %v2375_v27 = vpop.f32.mrf.mxu0 }
 0x432   : > { %v2300_v37 = vadd.f32 %v2290_v15, %v2246_v58  ;;  %v2496_v43 = vadd.f32 %v2495_v35, %v2494_v14  ;;  %v2429_v45 = vpop.f32.mrf.mxu1 }
 0x433   : > { %v2437_v5 = vadd.f32 %v2423_v57, %v2383_v16 }
 0x434   : > { %v2385_v42 = vadd.f32 %v2375_v27, %v2300_v37  ;;  %v4397_v27 = vld [vmem:[%s5815_s5 + $0xa8] sm:$0xff] }
 0x435   : > { %2684 = vmatpush.msrb.mxu3 %v4397_v27 }
 0x436   : > { %v2468_v26 = vpop.f32.mrf.mxu2  ;;  %v2439_v38 = vadd.f32 %v2429_v45, %v2385_v42 }
 0x437   : > { %v2488_v39 = vadd.f32 %v2468_v26, %v2434_v36 }
 0x439   : > { %v2497_v28 = vsel %vm1044_vm2, %v2488_v39, 0.0 }
 0x43a   : > { %v2498_v17 = vadd.f32 %v2497_v28, %v2496_v43 }
 0x43e   : > { %v2471_v18 = vpop.f32.mrf.mxu2 }
 0x43f   : > { %v2489_v59 = vadd.f32 %v2471_v18, %v2435_v33 }
 0x441   : > { %v2499_v26 = vsel %vm1044_vm2, %v2489_v59, 0.0 }
 0x442   : > { %v2500_v46 = vadd.f32 %v2499_v26, %v2498_v17  ;;  %v4423_v17 = vld [vmem:[%s5815_s5 + $0x98] sm:$0xff] }
 0x443   : > { %2859 = vmatpush.msra.mxu2 %v4423_v17 }
 0x446   : > { %v2474_v63 = vpop.f32.mrf.mxu2 }
 0x447   : > { %v2490_v30 = vadd.f32 %v2474_v63, %v2436_v3 }
 0x449   : > { %v2501_v18 = vsel %vm1044_vm2, %v2490_v30, 0.0 }
 0x44a   : > { %v2502_v31 = vadd.f32 %v2501_v18, %v2500_v46  ;;  %v4396_v18 = vld [vmem:[%s5815_s5 + $0x90] sm:$0xff] }
 0x44b   : > { %2728 = vmatpush.msrb.mxu0 %v4396_v18 }
 0x44e   : > { %v2477_v1 = vpop.f32.mrf.mxu2 }
 0x44f   : > { %v2491_v19 = vadd.f32 %v2477_v1, %v2437_v5 }
 0x451   : > { %v2503_v25 = vsel %vm1044_vm2, %v2491_v19, 0.0 }
 0x452   : > { %v2504_v63 = vadd.f32 %v2503_v25, %v2502_v31 }
 0x456   : > { %v2480_v49 = vpop.f32.mrf.mxu2 }
 0x457   : > { %v2492_v24 = vadd.f32 %v2480_v49, %v2438_v21 }
 0x459   : > { %v2505_v53 = vsel %vm1044_vm2, %v2492_v24, 0.0 }
 0x45a   : > { %v2506_v57 = vadd.f32 %v2505_v53, %v2504_v63  ;;  %v4432_v53 = vld [vmem:[%s5815_s5 + $0xb0] sm:$0xff] }
 0x45b   : > { %2913 = vmatpush.msra.mxu3 %v4432_v53  ;;  %v4468_v53 = vld [vmem:[%s5815_s5 + $0xd0] sm:$0xff] }
 0x45e   : > { %v2483_v40 = vpop.f32.mrf.mxu2 }
 0x45f   : > { %v2493_v13 = vadd.f32 %v2483_v40, %v2439_v38 }
 0x461   : > { %v2507_v44 = vsel %vm1044_vm2, %v2493_v13, 0.0 }
 0x462   : > { %v2508_v22 = vadd.f32 %v2507_v44, %v2506_v57 }
 0x464   : > { %v2509_v9 = vrot.slane %v2508_v22, 4 }
 0x466   : > { %v2510_v52 = vadd.f32 %v2509_v9, %v2508_v22 }
 0x468   : > { %v2511_v32 = vrot.slane %v2510_v52, 2 }
 0x46a   : > { %v2512_v48 = vadd.f32 %v2511_v32, %v2510_v52  ;;  %v5896_v32 = vld [vmem:[#allocation6_spill] sm:$0xff] }
 0x46c   : > { %v2513_v54 = vrot.slane %v2512_v48, 1 }
 0x46e   : > { %v2514_v50 = vadd.f32 %v2513_v54, %v2512_v48  ;;  %v5898_v54 = vld [vmem:[#allocation4_spill] sm:$0xff] }
 0x470   : > { %v2515_v29 = vmul.f32 %v2514_v50, %v5895_v34 }
 0x472   : > { %v2516_v55 = vsub.f32 %v2486_v20, %v2515_v29  ;;  %v2517_v61 = vsub.f32 %v2487_v56, %v2515_v29  ;;  %v2518_v4 = vsub.f32 %v2488_v39, %v2515_v29  ;;  %v2519_v8 = vsub.f32 %v2489_v59, %v2515_v29 }
 0x473   : > { %v2520_v10 = vsub.f32 %v2490_v30, %v2515_v29  ;;  %v2521_v12 = vsub.f32 %v2491_v19, %v2515_v29  ;;  %v2522_v36 = vsub.f32 %v2492_v24, %v2515_v29  ;;  %v2523_v62 = vsub.f32 %v2493_v13, %v2515_v29  ;;  %v4414_v24 = vld [vmem:[%s5815_s5 + $0xc0] sm:$0xff] }
 0x474   : > { %v2524_v47 = vmul.f32 %v2516_v55, %v2516_v55  ;;  %v2525_v41 = vmul.f32 %v2517_v61, %v2517_v61  ;;  %v2526_v60 = vmul.f32 %v2518_v4, %v2518_v4  ;;  %v2527_v1 = vmul.f32 %v2519_v8, %v2519_v8  ;;  %2774 = vmatpush.msra.mxu1 %v4414_v24  ;;  %v5900_v29 = vld [vmem:[#allocation7_spill] sm:$0xff] }
 0x475   : > { %v2528_v16 = vmul.f32 %v2520_v10, %v2520_v10  ;;  %v2529_v56 = vmul.f32 %v2521_v12, %v2521_v12  ;;  %v2530_v7 = vmul.f32 %v2522_v36, %v2522_v36  ;;  %v2531_v23 = vmul.f32 %v2523_v62, %v2523_v62 }
 0x476   : > { %v2532_v51 = vsel %vm1044_vm2, %v2524_v47, 0.0  ;;  %v2533_v6 = vsel %vm1044_vm2, %v2525_v41, 0.0  ;;  %v2535_v2 = vsel %vm1044_vm2, %v2526_v60, 0.0  ;;  %v2537_v20 = vsel %vm1044_vm2, %v2527_v1, 0.0  ;;  %v5902_v60 = vld [vmem:[#allocation3_spill] sm:$0xff] }
 0x477   : > { %v2534_v0 = vadd.f32 %v2533_v6, %v2532_v51  ;;  %v2539_v33 = vsel %vm1044_vm2, %v2528_v16, 0.0  ;;  %v2541_v35 = vsel %vm1044_vm2, %v2529_v56, 0.0  ;;  %v2543_v3 = vsel %vm1044_vm2, %v2530_v7, 0.0  ;;  %v5910_v51 = vld [vmem:[#allocation11_spill] sm:$0xff] }
 0x478   : > { %v2545_v5 = vsel %vm1044_vm2, %v2531_v23, 0.0 }
 0x479   : > { %v2536_v58 = vadd.f32 %v2535_v2, %v2534_v0 }
 0x47b   : > { %v2538_v39 = vadd.f32 %v2537_v20, %v2536_v58 }
 0x47d   : > { %v2540_v11 = vadd.f32 %v2539_v33, %v2538_v39 }
 0x47f   : > { %v2542_v59 = vadd.f32 %v2541_v35, %v2540_v11 }
 0x481   : > { %v2544_v15 = vadd.f32 %v2543_v3, %v2542_v59 }
 0x483   : > { %v2546_v37 = vadd.f32 %v2545_v5, %v2544_v15 }
 0x485   : > { %v2547_v14 = vrot.slane %v2546_v37, 4 }
 0x487   : > { %v2548_v28 = vadd.f32 %v2547_v14, %v2546_v37 }
 0x489   : > { %v2549_v30 = vrot.slane %v2548_v28, 2 }
 0x48b   : > { %v2550_v43 = vadd.f32 %v2549_v30, %v2548_v28 }
 0x48d   : > { %v2551_v49 = vrot.slane %v2550_v43, 1 }
 0x48f   : > { %v2552_v26 = vadd.f32 %v2551_v49, %v2550_v43 }
 0x491   : > { %v2553_v19 = vmul.f32 %v2552_v26, %v5895_v34 }
 0x493   : > { %v2554_v21 = vadd.f32 1e-05, %v2553_v19 }
 0x495   : > { %4583 = vrsqrt.f32 %v2554_v21  ;;  %vm2561_vm5 = vweird.f32 %v2554_v21 }
 0x49b   : > { %v4584_v42 = vpop.eup %4583 }
 0x49c   : > { %v2556_v46 = vmul.f32 %v4584_v42, %v2554_v21  ;;  %vm2562_vm4 = vweird.f32 %v4584_v42 }
 0x49d   : > { %vm2563_vm6 = vmor %vm2561_vm5, %vm2562_vm4 }
 0x49e   : > { %v2557_v25 = vmul.f32 %v4584_v42, %v2556_v46  ;;  %v4441_v46 = vld [vmem:[%s5815_s5 + $0xc8] sm:$0xff] }
 0x49f   : > { %2967 = vmatpush.msra.mxu0 %v4441_v46 }
 0x4a0   : > { %v2558_v45 = vmul.f32 0.5, %v2557_v25  ;;  %v4450_v25 = vld [vmem:[%s5815_s5 + $0xa0] sm:$0xff] }
 0x4a1   : > { %3052 = vmatpush.msrb.mxu1 %v4450_v25 }
 0x4a2   : > { %v2559_v31 = vsub.f32 1.5, %v2558_v45 }
 0x4a4   : > { %v2560_v38 = vmul.f32 %v4584_v42, %v2559_v31 }
 0x4a6   : > { %v2564_v63 = vsel %vm2563_vm6, %v4584_v42, %v2560_v38  ;;  %v4459_v42 = vld [vmem:[%s5815_s5 + $0xb8] sm:$0xff] }
 0x4a7   : > { %v2565_v40 = vmul.f32 %v2564_v63, %v2516_v55  ;;  %v2566_v13 = vmul.f32 %v2564_v63, %v2517_v61  ;;  %v2567_v57 = vmul.f32 %v2564_v63, %v2518_v4  ;;  %v2568_v44 = vmul.f32 %v2564_v63, %v2519_v8  ;;  %v5904_v55 = vld [vmem:[#allocation8_spill] sm:$0xff]  ;;  %v5906_v4 = vld [vmem:[#allocation9_spill] sm:$0xff]  ;;  %3106 = vmatpush.msrb.mxu2 %v4459_v42 }
 0x4a8   : > { %v2569_v22 = vmul.f32 %v2564_v63, %v2520_v10  ;;  %v2570_v9 = vmul.f32 %v2564_v63, %v2521_v12  ;;  %v2571_v52 = vmul.f32 %v2564_v63, %v2522_v36  ;;  %v2572_v41 = vmul.f32 %v2564_v63, %v2523_v62  ;;  %v5908_v10 = vld [vmem:[#allocation10_spill] sm:$0xff] }
 0x4a9   : > { %v5400_v48 = vadd.f32 %v2565_v40, %v5896_v32  ;;  %v5403_v50 = vadd.f32 %v2566_v13, %v5898_v54  ;;  %v5406_v47 = vadd.f32 %v2567_v57, %v5900_v29  ;;  %v5409_v1 = vadd.f32 %v2568_v44, %v5902_v60 }
 0x4aa   : > { %v5412_v61 = vadd.f32 %v2569_v22, %v5904_v55  ;;  %v5417_v8 = vadd.f32 %v2570_v9, %v5906_v4  ;;  %v5422_v12 = vadd.f32 %v2571_v52, %v5908_v10  ;;  %v5427_v6 = vadd.f32 %v2572_v41, %v5910_v51 }
 0x4ab   : > { %5897 = vst [vmem:[#allocation12_spill] sm:$0xff] %v5400_v48 }
 0x4ac   : > { %5899 = vst [vmem:[#allocation13_spill] sm:$0xff] %v5403_v50 }
 0x4ad   : > { %5901 = vst [vmem:[#allocation15_spill] sm:$0xff] %v5406_v47 }
 0x4ae   : > { %5903 = vst [vmem:[#allocation14_spill] sm:$0xff] %v5409_v1 }
 0x4af   : > { %5905 = vst [vmem:[#allocation16_spill] sm:$0xff] %v5412_v61 }
 0x4b0   : > { %2581 = vst.msk [vmem:[#allocation2 + $0x11] sm:$0xff] %vm1044_vm2, %v5400_v48 }
 0x4b1   : > { %5907 = vst [vmem:[#allocation17_spill] sm:$0xff] %v5417_v8 }
 0x4b2   : > { %2582 = vst.msk [vmem:[#allocation2 + $0x21] sm:$0xff] %vm1044_vm2, %v5403_v50 }
 0x4b3   : > { %5909 = vst [vmem:[#allocation18_spill] sm:$0xff] %v5422_v12 }
 0x4b4   : > { %2583 = vst.msk [vmem:[#allocation2 + $0x31] sm:$0xff] %vm1044_vm2, %v5406_v47 }
 0x4b5   : > { %5911 = vst [vmem:[#allocation19_spill] sm:$0xff] %v5427_v6 }
 0x4b6   : > { %2584 = vst.msk [vmem:[#allocation2 + $0x41] sm:$0xff] %vm1044_vm2, %v5409_v1 }
 0x4b7   : > { %2585 = vst.msk [vmem:[#allocation2 + $0x51] sm:$0xff] %vm1044_vm2, %v5412_v61  ;;  %v2592_v0 = vld [vmem:[#allocation2 + $0x12] sm:$0x1]  ;;  %v2612_v23 = vld [vmem:[#allocation2 + $0x17] sm:$0x1] }
 0x4b8   : > { %2586 = vst.msk [vmem:[#allocation2 + $0x61] sm:$0xff] %vm1044_vm2, %v5417_v8  ;;  %v5459_v28 = vld [vmem:[#allocation2 + $0x11] sm:$0xff] }
 0x4b9   : > { %2587 = vst.msk [vmem:[#allocation2 + $0x71] sm:$0xff] %vm1044_vm2, %v5422_v12  ;;  %v2593_v36 = vld [vmem:[#allocation2 + $0x22] sm:$0x1]  ;;  %v2613_v3 = vld [vmem:[#allocation2 + $0x27] sm:$0x1] }
 0x4ba   : > { %2588 = vst.msk [vmem:[#allocation2 + $0x81] sm:$0xff] %vm1044_vm2, %v5427_v6  ;;  %v2810_v21 = vld [vmem:[#allocation2 + $0x21] sm:$0xff] }
 0x4bb   : > { %2589 = vst.msk [vmem:[#allocation2 + $0x1] sm:$0xff] %vm1044_vm2, %v5403_v50  ;;  %v2594_v16 = vld [vmem:[#allocation2 + $0x32] sm:$0x1]  ;;  %v2614_v15 = vld [vmem:[#allocation2 + $0x37] sm:$0x1] }
 0x4bc   : > { %2590 = vst.msk [vmem:[#allocation2 + $0x91] sm:$0xff] %vm1044_vm2, %v5422_v12  ;;  %v2811_v17 = vld [vmem:[#allocation2 + $0x31] sm:$0xff] }
 0x4bd   : > { %2602 = vst.msk [vmem:[#allocation2 + $0x10] sm:$0x1] %vm1185_vm7, %v2592_v0  ;;  %v2595_v2 = vld [vmem:[#allocation2 + $0x42] sm:$0x1]  ;;  %v2615_v5 = vld [vmem:[#allocation2 + $0x47] sm:$0x1] }
 0x4be   : > { %2603 = vst.msk [vmem:[#allocation2 + $0x20] sm:$0x1] %vm1185_vm7, %v2593_v36  ;;  %v2596_v58 = vld [vmem:[#allocation2 + $0x52] sm:$0x1]  ;;  %v2616_v37 = vld [vmem:[#allocation2 + $0x57] sm:$0x1] }
 0x4bf   : > { %2604 = vst.msk [vmem:[#allocation2 + $0x30] sm:$0x1] %vm1185_vm7, %v2594_v16  ;;  %v2597_v62 = vld [vmem:[#allocation2 + $0x62] sm:$0x1]  ;;  %v2617_v30 = vld [vmem:[#allocation2 + $0x67] sm:$0x1] }
 0x4c0   : > { %2605 = vst.msk [vmem:[#allocation2 + $0x40] sm:$0x1] %vm1185_vm7, %v2595_v2  ;;  %v2598_v56 = vld [vmem:[#allocation2 + $0x72] sm:$0x1]  ;;  %v2618_v43 = vld [vmem:[#allocation2 + $0x77] sm:$0x1] }
 0x4c1   : > { %2606 = vst.msk [vmem:[#allocation2 + $0x50] sm:$0x1] %vm1185_vm7, %v2596_v58  ;;  %v2599_v20 = vld [vmem:[#allocation2 + $0x82] sm:$0x1]  ;;  %v2619_v49 = vld [vmem:[#allocation2 + $0x87] sm:$0x1] }
 0x4c2   : > { %v2808_v39 = vld [vmem:[#allocation2 + $0x1] sm:$0xff]  ;;  %2607 = vst.msk [vmem:[#allocation2 + $0x60] sm:$0x1] %vm1185_vm7, %v2597_v62  ;;  %v2813_v31 = vld [vmem:[#allocation2 + $0x51] sm:$0xff] }
 0x4c3   : > { %v2591_v7 = vld [vmem:[#allocation2 + $0x2] sm:$0x1]  ;;  %4424 = vmatmul.msk.f32.vlgmr.msra.gmra.mxu2 %vm1044_vm2, %v2808_v39  ;;  %v2600_v33 = vld [vmem:[#allocation2 + $0x92] sm:$0x1]  ;;  %2608 = vst.msk [vmem:[#allocation2 + $0x70] sm:$0x1] %vm1185_vm7, %v2598_v56 }
 0x4c4   : > { %2601 = vst.msk [vmem:[#allocation2] sm:$0x1] %vm1185_vm7, %v2591_v7  ;;  %v2632_v11 = vld [vmem:[#allocation2 + $0x10] sm:$0xff]  ;;  %v2611_v59 = vld [vmem:[#allocation2 + $0x7] sm:$0x1] }
 0x4c5   : > { %4398 = vmatmul.msk.f32.vlgmr.msrb.gmra.mxu3 %vm1044_vm2, %v2632_v11  ;;  %v2633_v35 = vld [vmem:[#allocation2 + $0x20] sm:$0xff]  ;;  %2609 = vst.msk [vmem:[#allocation2 + $0x80] sm:$0x1] %vm1185_vm7, %v2599_v20  ;;  %v2620_v19 = vld [vmem:[#allocation2 + $0x97] sm:$0x1] }
 0x4c6   : > { %4415 = vmatmul.msk.f32.vlgmr.msra.gmra.mxu1 %vm1044_vm2, %v2633_v35  ;;  %2610 = vst.msk [vmem:[#allocation2 + $0x90] sm:$0x1] %vm1185_vm7, %v2600_v33  ;;  %v2634_v26 = vld [vmem:[#allocation2 + $0x30] sm:$0xff]  ;;  %v2812_v24 = vld [vmem:[#allocation2 + $0x41] sm:$0xff]  ;;  %3160 = vmatpush.msrb.mxu3 %v4468_v53 }
 0x4c7   : > { %2622 = vst.msk [vmem:[#allocation2 + $0x19] sm:$0x1] %vm1185_vm7, %v2612_v23  ;;  %v2635_v27 = vld [vmem:[#allocation2 + $0x40] sm:$0xff]  ;;  %v2815_v13 = vld [vmem:[#allocation2 + $0x71] sm:$0xff] }
 0x4c8   : > { %2621 = vst.msk [vmem:[#allocation2 + $0x9] sm:$0x1] %vm1185_vm7, %v2611_v59  ;;  %v2636_v18 = vld [vmem:[#allocation2 + $0x50] sm:$0xff]  ;;  %v2814_v63 = vld [vmem:[#allocation2 + $0x61] sm:$0xff] }
 0x4c9   : > { %2623 = vst.msk [vmem:[#allocation2 + $0x29] sm:$0x1] %vm1185_vm7, %v2613_v3  ;;  %v2637_v45 = vld [vmem:[#allocation2 + $0x60] sm:$0xff]  ;;  %v2817_v62 = vld [vmem:[#allocation2 + $0x91] sm:$0xff] }
 0x4ca   : > { %2624 = vst.msk [vmem:[#allocation2 + $0x39] sm:$0x1] %vm1185_vm7, %v2614_v15  ;;  %v2638_v38 = vld [vmem:[#allocation2 + $0x70] sm:$0xff]  ;;  %v2816_v2 = vld [vmem:[#allocation2 + $0x81] sm:$0xff] }
 0x4cb   : > { %v2631_v14 = vld [vmem:[#allocation2] sm:$0xff]  ;;  %4425 = vmatmul.msk.f32.gmra.mxu2 %vm1044_vm2, %v5459_v28  ;;  %2625 = vst.msk [vmem:[#allocation2 + $0x49] sm:$0x1] %vm1185_vm7, %v2615_v5 }
 0x4cc   : > { %4406 = vmatmul.msk.f32.vlgmr.msrb.gmra.mxu0 %vm1044_vm2, %v2631_v14  ;;  %2626 = vst.msk [vmem:[#allocation2 + $0x59] sm:$0x1] %vm1185_vm7, %v2616_v37  ;;  %v2639_v40 = vld [vmem:[#allocation2 + $0x80] sm:$0xff] }
 0x4cd   : > { %4399 = vmatmul.msk.f32.gmra.mxu3 %vm1044_vm2, %v2633_v35  ;;  %2627 = vst.msk [vmem:[#allocation2 + $0x69] sm:$0x1] %vm1185_vm7, %v2617_v30  ;;  %v2640_v57 = vld [vmem:[#allocation2 + $0x90] sm:$0xff] }
 0x4ce   : > { %4416 = vmatmul.msk.f32.gmra.mxu1 %vm1044_vm2, %v2634_v26  ;;  %2628 = vst.msk [vmem:[#allocation2 + $0x79] sm:$0x1] %vm1185_vm7, %v2618_v43  ;;  %v3002_v44 = vld [vmem:[#allocation2 + $0x12] sm:$0xff] }
 0x4cf   : > { %2629 = vst.msk [vmem:[#allocation2 + $0x89] sm:$0x1] %vm1185_vm7, %v2619_v49  ;;  %v3001_v22 = vld [vmem:[#allocation2 + $0x2] sm:$0xff] }
 0x4d0   : > { %2630 = vst.msk [vmem:[#allocation2 + $0x99] sm:$0x1] %vm1185_vm7, %v2620_v19  ;;  %v3003_v9 = vld [vmem:[#allocation2 + $0x22] sm:$0xff] }
 0x4d1   : > { %v3004_v52 = vld [vmem:[#allocation2 + $0x32] sm:$0xff] }
 0x4d2   : > { %v3005_v41 = vld [vmem:[#allocation2 + $0x42] sm:$0xff] }
 0x4d3   : > { %4426 = vmatmul.msk.f32.gmra.mxu2 %vm1044_vm2, %v2810_v21  ;;  %v3006_v0 = vld [vmem:[#allocation2 + $0x52] sm:$0xff] }
 0x4d4   : > { %4407 = vmatmul.msk.f32.gmra.mxu0 %vm1044_vm2, %v2632_v11  ;;  %v3007_v36 = vld [vmem:[#allocation2 + $0x62] sm:$0xff] }
 0x4d5   : > { %4400 = vmatmul.msk.f32.gmra.mxu3 %vm1044_vm2, %v2634_v26  ;;  %v3008_v16 = vld [vmem:[#allocation2 + $0x72] sm:$0xff] }
 0x4d6   : > { %4417 = vmatmul.msk.f32.gmra.mxu1 %vm1044_vm2, %v2635_v27  ;;  %v3009_v58 = vld [vmem:[#allocation2 + $0x82] sm:$0xff] }
 0x4d7   : > { %v3010_v43 = vld [vmem:[#allocation2 + $0x92] sm:$0xff] }
 0x4db   : > { %4427 = vmatmul.msk.f32.gmra.mxu2 %vm1044_vm2, %v2811_v17 }
 0x4dc   : > { %4408 = vmatmul.msk.f32.gmra.mxu0 %vm1044_vm2, %v2633_v35 }
 0x4dd   : > { %4401 = vmatmul.msk.f32.gmra.mxu3 %vm1044_vm2, %v2635_v27 }
 0x4de   : > { %4418 = vmatmul.msk.f32.gmra.mxu1 %vm1044_vm2, %v2636_v18 }
 0x4e3   : > { %4428 = vmatmul.msk.f32.gmra.mxu2 %vm1044_vm2, %v2812_v24 }
 0x4e4   : > { %4409 = vmatmul.msk.f32.gmra.mxu0 %vm1044_vm2, %v2634_v26 }
 0x4e5   : > { %4402 = vmatmul.msk.f32.gmra.mxu3 %vm1044_vm2, %v2636_v18 }
 0x4e6   : > { %4419 = vmatmul.msk.f32.gmra.mxu1 %vm1044_vm2, %v2637_v45 }
 0x4eb   : > { %4429 = vmatmul.msk.f32.gmra.mxu2 %vm1044_vm2, %v2813_v31 }
 0x4ec   : > { %4410 = vmatmul.msk.f32.gmra.mxu0 %vm1044_vm2, %v2635_v27 }
 0x4ed   : > { %4403 = vmatmul.msk.f32.gmra.mxu3 %vm1044_vm2, %v2637_v45 }
 0x4ee   : > { %4420 = vmatmul.msk.f32.gmra.mxu1 %vm1044_vm2, %v2638_v38 }
 0x4f3   : > { %4430 = vmatmul.msk.f32.gmra.mxu2 %vm1044_vm2, %v2814_v63 }
 0x4f4   : > { %4411 = vmatmul.msk.f32.gmra.mxu0 %vm1044_vm2, %v2636_v18 }
 0x4f5   : > { %4404 = vmatmul.msk.f32.gmra.mxu3 %vm1044_vm2, %v2638_v38 }
 0x4f6   : > { %4421 = vmatmul.msk.f32.gmra.mxu1 %vm1044_vm2, %v2639_v40 }
 0x4fb   : > { %4431 = vmatmul.msk.f32.gmra.mxu2 %vm1044_vm2, %v2815_v13 }
 0x4fc   : > { %4412 = vmatmul.msk.f32.gmra.mxu0 %vm1044_vm2, %v2637_v45 }
 0x4fd   : > { %4405 = vmatmul.msk.f32.gmra.mxu3 %vm1044_vm2, %v2639_v40 }
 0x4fe   : > { %4422 = vmatmul.msk.f32.gmra.mxu1 %vm1044_vm2, %v2640_v57 }
 0x503   : > { %4460 = vmatmul.msk.f32.vlgmr.msrb.gmra.mxu2 %vm1044_vm2, %v3002_v44 }
 0x504   : > { %4413 = vmatmul.msk.f32.gmra.mxu0 %vm1044_vm2, %v2638_v38 }
 0x505   : > { %4433 = vmatmul.msk.f32.vlgmr.msra.gmra.mxu3 %vm1044_vm2, %v5459_v28 }
 0x506   : > { %4451 = vmatmul.msk.f32.vlgmr.msrb.gmra.mxu1 %vm1044_vm2, %v3001_v22 }
 0x50b   : > { %4461 = vmatmul.msk.f32.gmra.mxu2 %vm1044_vm2, %v3003_v9 }
 0x50c   : > { %4442 = vmatmul.msk.f32.vlgmr.msra.gmra.mxu0 %vm1044_vm2, %v2810_v21 }
 0x50d   : > { %4434 = vmatmul.msk.f32.gmra.mxu3 %vm1044_vm2, %v2810_v21 }
 0x50e   : > { %4452 = vmatmul.msk.f32.gmra.mxu1 %vm1044_vm2, %v3002_v44 }
 0x513   : > { %4462 = vmatmul.msk.f32.gmra.mxu2 %vm1044_vm2, %v3004_v52 }
 0x514   : > { %4443 = vmatmul.msk.f32.gmra.mxu0 %vm1044_vm2, %v2811_v17 }
 0x515   : > { %4435 = vmatmul.msk.f32.gmra.mxu3 %vm1044_vm2, %v2811_v17 }
 0x516   : > { %4453 = vmatmul.msk.f32.gmra.mxu1 %vm1044_vm2, %v3003_v9 }
 0x51b   : > { %4463 = vmatmul.msk.f32.gmra.mxu2 %vm1044_vm2, %v3005_v41 }
 0x51c   : > { %4444 = vmatmul.msk.f32.gmra.mxu0 %vm1044_vm2, %v2812_v24 }
 0x51d   : > { %4436 = vmatmul.msk.f32.gmra.mxu3 %vm1044_vm2, %v2812_v24 }
 0x51e   : > { %4454 = vmatmul.msk.f32.gmra.mxu1 %vm1044_vm2, %v3004_v52 }
 0x523   : > { %4464 = vmatmul.msk.f32.gmra.mxu2 %vm1044_vm2, %v3006_v0 }
 0x524   : > { %4445 = vmatmul.msk.f32.gmra.mxu0 %vm1044_vm2, %v2813_v31 }
 0x525   : > { %4437 = vmatmul.msk.f32.gmra.mxu3 %vm1044_vm2, %v2813_v31 }
 0x526   : > { %4455 = vmatmul.msk.f32.gmra.mxu1 %vm1044_vm2, %v3005_v41 }
 0x52b   : > { %4465 = vmatmul.msk.f32.gmra.mxu2 %vm1044_vm2, %v3007_v36 }
 0x52c   : > { %4446 = vmatmul.msk.f32.gmra.mxu0 %vm1044_vm2, %v2814_v63 }
 0x52d   : > { %4438 = vmatmul.msk.f32.gmra.mxu3 %vm1044_vm2, %v2814_v63 }
 0x52e   : > { %4456 = vmatmul.msk.f32.gmra.mxu1 %vm1044_vm2, %v3006_v0 }
 0x533   : > { %4466 = vmatmul.msk.f32.gmra.mxu2 %vm1044_vm2, %v3008_v16 }
 0x534   : > { %4447 = vmatmul.msk.f32.gmra.mxu0 %vm1044_vm2, %v2815_v13 }
 0x535   : > { %4439 = vmatmul.msk.f32.gmra.mxu3 %vm1044_vm2, %v2815_v13 }
 0x536   : > { %4457 = vmatmul.msk.f32.gmra.mxu1 %vm1044_vm2, %v3007_v36 }
 0x53b   : > { %4467 = vmatmul.msk.f32.gmra.mxu2 %vm1044_vm2, %v3009_v58 }
 0x53c   : > { %4448 = vmatmul.msk.f32.gmra.mxu0 %vm1044_vm2, %v2816_v2 }
 0x53d   : > { %4440 = vmatmul.msk.f32.gmra.mxu3 %vm1044_vm2, %v2816_v2 }
 0x53e   : > { %4458 = vmatmul.msk.f32.gmra.mxu1 %vm1044_vm2, %v3008_v16 }
 0x543   : > { %v2776_v11 = vpop.f32.mrf.mxu1 }
 0x544   : > { %4449 = vmatmul.msk.f32.gmra.mxu0 %vm1044_vm2, %v2817_v62 }
 0x545   : > { %4469 = vmatmul.msk.f32.vlgmr.msrb.gmra.mxu3 %vm1044_vm2, %v3003_v9 }
 0x546   : > { %v5550_v23 = vpop.f32.mrf.mxu2 }
 0x547   : > { %5912 = vst [vmem:[#allocation20_spill] sm:$0xff] %v5550_v23 }
 0x548   : > { %v5544_v56 = vpop.f32.mrf.mxu3 }
 0x549   : > { %v2730_v7 = vpop.f32.mrf.mxu0 }
 0x54a   : > { %v2731_v8 = vadd.f32 %v2730_v7, %v5544_v56 }
 0x54b   : > { %v2779_v3 = vpop.f32.mrf.mxu1 }
 0x54c   : > { %v2800_v48 = vadd.f32 %v2776_v11, %v2731_v8 }
 0x54d   : > { %4470 = vmatmul.msk.f32.gmra.mxu3 %vm1044_vm2, %v3004_v52 }
 0x54e   : > { %v2864_v5 = vpop.f32.mrf.mxu2 }
 0x550   : > { %v2689_v20 = vpop.f32.mrf.mxu3 }
 0x551   : > { %v2733_v59 = vpop.f32.mrf.mxu0 }
 0x552   : > { %v2734_v12 = vadd.f32 %v2733_v59, %v2689_v20 }
 0x553   : > { %v2782_v14 = vpop.f32.mrf.mxu1 }
 0x554   : > { %v2801_v47 = vadd.f32 %v2779_v3, %v2734_v12 }
 0x555   : > { %4471 = vmatmul.msk.f32.gmra.mxu3 %vm1044_vm2, %v3005_v41 }
 0x556   : > { %v2867_v30 = vpop.f32.mrf.mxu2  ;;  %v2886_v23 = vadd.f32 %v2864_v5, %v2801_v47 }
 0x558   : > { %v2692_v39 = vpop.f32.mrf.mxu3 }
 0x559   : > { %v2736_v37 = vpop.f32.mrf.mxu0 }
 0x55a   : > { %v2737_v61 = vadd.f32 %v2736_v37, %v2692_v39 }
 0x55b   : > { %v2785_v19 = vpop.f32.mrf.mxu1 }
 0x55c   : > { %v2802_v34 = vadd.f32 %v2782_v14, %v2737_v61 }
 0x55d   : > { %4472 = vmatmul.msk.f32.gmra.mxu3 %vm1044_vm2, %v3006_v0 }
 0x55e   : > { %v2870_v21 = vpop.f32.mrf.mxu2  ;;  %v2887_v39 = vadd.f32 %v2867_v30, %v2802_v34 }
 0x560   : > { %v2695_v33 = vpop.f32.mrf.mxu3 }
 0x561   : > { %v2739_v49 = vpop.f32.mrf.mxu0 }
 0x562   : > { %v2740_v50 = vadd.f32 %v2739_v49, %v2695_v33 }
 0x563   : > { %v2788_v42 = vpop.f32.mrf.mxu1 }
 0x565   : > { %4473 = vmatmul.msk.f32.gmra.mxu3 %vm1044_vm2, %v3007_v36 }
 0x566   : > { %v2873_v18 = vpop.f32.mrf.mxu2 }
 0x568   : > { %v2698_v35 = vpop.f32.mrf.mxu3 }
 0x569   : > { %v2742_v27 = vpop.f32.mrf.mxu0 }
 0x56b   : > { %v2791_v25 = vpop.f32.mrf.mxu1 }
 0x56d   : > { %4474 = vmatmul.msk.f32.gmra.mxu3 %vm1044_vm2, %v3008_v16 }
 0x56e   : > { %v2876_v31 = vpop.f32.mrf.mxu2 }
 0x570   : > { %v2701_v15 = vpop.f32.mrf.mxu3 }
 0x571   : > { %v2745_v46 = vpop.f32.mrf.mxu0 }
 0x573   : > { %v2794_v38 = vpop.f32.mrf.mxu1 }
 0x575   : > { %4475 = vmatmul.msk.f32.gmra.mxu3 %vm1044_vm2, %v3009_v58 }
 0x576   : > { %v2879_v40 = vpop.f32.mrf.mxu2 }
 0x578   : > { %v2704_v28 = vpop.f32.mrf.mxu3 }
 0x579   : > { %v2748_v53 = vpop.f32.mrf.mxu0 }
 0x57a   : > { %v2749_v56 = vadd.f32 %v2748_v53, %v2704_v28 }
 0x57b   : > { %v2797_v44 = vpop.f32.mrf.mxu1 }
 0x57c   : > { %v2806_v11 = vadd.f32 %v2794_v38, %v2749_v56 }
 0x57d   : > { %4476 = vmatmul.msk.f32.gmra.mxu3 %vm1044_vm2, %v3010_v43 }
 0x57e   : > { %v5557_v22 = vpop.f32.mrf.mxu2  ;;  %v2891_v34 = vadd.f32 %v2879_v40, %v2806_v11 }
 0x57f   : > { %5914 = vst [vmem:[#allocation22_spill] sm:$0xff] %v5557_v22 }
 0x580   : > { %v5555_v26 = vpop.f32.mrf.mxu3 }
 0x581   : > { %5913 = vst [vmem:[#allocation21_spill] sm:$0xff] %v5555_v26  ;;  %v2751_v13 = vpop.f32.mrf.mxu0  ;;  %v2803_v26 = vadd.f32 %v2785_v19, %v2740_v50 }
 0x583   : > { %v3054_v41 = vpop.f32.mrf.mxu1  ;;  %v2888_v49 = vadd.f32 %v2870_v21, %v2803_v26 }
 0x586   : > { %v5559_v0 = vpop.f32.mrf.mxu2  ;;  %v5921_v38 = vld [vmem:[#allocation22_spill] sm:$0xff] }
 0x587   : > { %5915 = vst [vmem:[#allocation23_spill] sm:$0xff] %v5559_v0  ;;  %v2746_v0 = vadd.f32 %v2745_v46, %v2701_v15 }
 0x588   : > { %v2915_v17 = vpop.f32.mrf.mxu3  ;;  %v5920_v14 = vld [vmem:[#allocation21_spill] sm:$0xff] }
 0x589   : > { %v2969_v9 = vpop.f32.mrf.mxu0  ;;  %v2805_v3 = vadd.f32 %v2791_v25, %v2746_v0 }
 0x58b   : > { %v3057_v2 = vpop.f32.mrf.mxu1  ;;  %v2890_v47 = vadd.f32 %v2876_v31, %v2805_v3 }
 0x58e   : > { %v3111_v62 = vpop.f32.mrf.mxu2 }
 0x590   : > { %v2918_v24 = vpop.f32.mrf.mxu3 }
 0x591   : > { %v2972_v16 = vpop.f32.mrf.mxu0  ;;  %v2940_v37 = vadd.f32 %v2918_v24, %v2886_v23 }
 0x593   : > { %v3060_v51 = vpop.f32.mrf.mxu1  ;;  %v2994_v61 = vadd.f32 %v2972_v16, %v2940_v37 }
 0x595   : > { %v3079_v30 = vadd.f32 %v3057_v2, %v2994_v61 }
 0x596   : > { %v3114_v4 = vpop.f32.mrf.mxu2 }
 0x598   : > { %v2921_v45 = vpop.f32.mrf.mxu3 }
 0x599   : > { %v2975_v43 = vpop.f32.mrf.mxu0  ;;  %v2941_v33 = vadd.f32 %v2921_v45, %v2887_v39 }
 0x59b   : > { %v3063_v6 = vpop.f32.mrf.mxu1 }
 0x59e   : > { %v5565_v29 = vpop.f32.mrf.mxu2 }
 0x59f   : > { %5918 = vst [vmem:[#allocation26_spill] sm:$0xff] %v5565_v29  ;;  %v5919_v29 = vld [vmem:[#allocation20_spill] sm:$0xff] }
 0x5a0   : > { %v2924_v63 = vpop.f32.mrf.mxu3  ;;  %v2885_v20 = vadd.f32 %v5919_v29, %v2800_v48  ;;  %v2995_v48 = vadd.f32 %v2975_v43, %v2941_v33 }
 0x5a1   : > { %v2978_v55 = vpop.f32.mrf.mxu0 }
 0x5a2   : > { %v2939_v12 = vadd.f32 %v2915_v17, %v2885_v20  ;;  %v3080_v46 = vadd.f32 %v3060_v51, %v2995_v48 }
 0x5a3   : > { %v3066_v1 = vpop.f32.mrf.mxu1 }
 0x5a4   : > { %v2993_v50 = vadd.f32 %v2969_v9, %v2939_v12 }
 0x5a6   : > { %v3078_v26 = vadd.f32 %v3054_v41, %v2993_v50  ;;  %v5925_v51 = vld [vmem:[#allocation26_spill] sm:$0xff] }
 0x5a8   : > { %v2927_v57 = vpop.f32.mrf.mxu3 }
 0x5a9   : > { %v2981_v54 = vpop.f32.mrf.mxu0 }
 0x5ab   : > { %v3069_v8 = vpop.f32.mrf.mxu1 }
 0x5b0   : > { %v2930_v52 = vpop.f32.mrf.mxu3 }
 0x5b1   : > { %v2984_v59 = vpop.f32.mrf.mxu0  ;;  %v2944_v28 = vadd.f32 %v2930_v52, %v2890_v47 }
 0x5b3   : > { %v2998_v25 = vadd.f32 %v2984_v59, %v2944_v28  ;;  %v3072_v53 = vpop.f32.mrf.mxu1 }
 0x5b5   : > { %v3083_v0 = vadd.f32 %v3069_v8, %v2998_v25 }
 0x5b8   : > { %v2933_v36 = vpop.f32.mrf.mxu3 }
 0x5b9   : > { %v2945_v24 = vadd.f32 %v2933_v36, %v2891_v34 }
 0x5bb   : > { %v3075_v33 = vpop.f32.mrf.mxu1 }
 0x5c0   : > { %v5561_v58 = vpop.f32.mrf.mxu3 }
 0x5c1   : > { %5916 = vst [vmem:[#allocation24_spill] sm:$0xff] %v5561_v58  ;;  %v2743_v58 = vadd.f32 %v2742_v27, %v2698_v35  ;;  %v2942_v35 = vadd.f32 %v2924_v63, %v2888_v49  ;;  %v2752_v27 = vadd.f32 %v2751_v13, %v5920_v14  ;;  %v5922_v63 = vld [vmem:[#allocation23_spill] sm:$0xff] }
 0x5c2   : > { %v3132_v13 = vadd.f32 %v5922_v63, %v3078_v26  ;;  %v5926_v26 = vld [vmem:[#allocation5_spill] sm:$0xff] }
 0x5c3   : > { %v2804_v7 = vadd.f32 %v2788_v42, %v2743_v58  ;;  %v2996_v23 = vadd.f32 %v2978_v55, %v2942_v35  ;;  %v2807_v17 = vadd.f32 %v2797_v44, %v2752_v27  ;;  %v2987_v42 = vpop.f32.mrf.mxu0  ;;  %v3134_v55 = vadd.f32 %v3114_v4, %v3080_v46 }
 0x5c4   : > { %v2999_v9 = vadd.f32 %v2987_v42, %v2945_v24 }
 0x5c5   : > { %v2889_v15 = vadd.f32 %v2873_v18, %v2804_v7  ;;  %v3133_v18 = vadd.f32 %v3111_v62, %v3079_v30  ;;  %v3081_v45 = vadd.f32 %v3063_v6, %v2996_v23  ;;  %v2892_v31 = vadd.f32 %v5921_v38, %v2807_v17 }
 0x5c6   : > { %v3084_v20 = vadd.f32 %v3072_v53, %v2999_v9 }
 0x5c7   : > { %v2943_v29 = vadd.f32 %v2927_v57, %v2889_v15  ;;  %v3135_v2 = vadd.f32 %v5925_v51, %v3081_v45 }
 0x5c8   : > { %v5563_v10 = vpop.f32.mrf.mxu3  ;;  %v5923_v44 = vld [vmem:[#allocation24_spill] sm:$0xff] }
 0x5c9   : > { %5917 = vst [vmem:[#allocation25_spill] sm:$0xff] %v5563_v10  ;;  %v3120_v10 = vpop.f32.mrf.mxu2  ;;  %v2997_v21 = vadd.f32 %v2981_v54, %v2943_v29  ;;  %v2946_v16 = vadd.f32 %v5923_v44, %v2892_v31 }
 0x5cb   : > { %v3082_v40 = vadd.f32 %v3066_v1, %v2997_v21  ;;  %v2990_v59 = vpop.f32.mrf.mxu0 }
 0x5cc   : > { %v3000_v56 = vadd.f32 %v2990_v59, %v2946_v16 }
 0x5cd   : > { %v3136_v43 = vadd.f32 %v3120_v10, %v3082_v40 }
 0x5ce   : > { %v3085_v8 = vadd.f32 %v3075_v33, %v3000_v56  ;;  %v4478_v33 = vld [vmem:[%s5815_s5 + $0xf0] sm:$0xff] }
 0x5cf   : > { %3400 = vmatpush.msrb.mxu0 %v4478_v33 }
 0x5d0   : > { %v3165_v60 = vpop.f32.mrf.mxu3  ;;  %v5924_v41 = vld [vmem:[#allocation25_spill] sm:$0xff] }
 0x5d1   : > { %v3123_v19 = vpop.f32.mrf.mxu2  ;;  %v3187_v52 = vadd.f32 %v3165_v60, %v3133_v18  ;;  %v3186_v54 = vadd.f32 %v5924_v41, %v3132_v13 }
 0x5d2   : > { %v3137_v7 = vadd.f32 %v3123_v19, %v3083_v0 }
 0x5d3   : > { %v3195_v6 = vsel %vm1044_vm2, %v3187_v52, 0.0  ;;  %v3194_v60 = vsel %vm1044_vm2, %v3186_v54, 0.0 }
 0x5d4   : > { %v3196_v37 = vadd.f32 %v3195_v6, %v3194_v60 }
 0x5d8   : > { %v3168_v32 = vpop.f32.mrf.mxu3 }
 0x5d9   : > { %v3188_v36 = vadd.f32 %v3168_v32, %v3134_v55  ;;  %v3126_v58 = vpop.f32.mrf.mxu2 }
 0x5da   : > { %v3138_v12 = vadd.f32 %v3126_v58, %v3084_v20 }
 0x5db   : > { %v3197_v1 = vsel %vm1044_vm2, %v3188_v36, 0.0 }
 0x5dc   : > { %v3198_v49 = vadd.f32 %v3197_v1, %v3196_v37 }
 0x5e0   : > { %v3171_v22 = vpop.f32.mrf.mxu3 }
 0x5e1   : > { %v3189_v62 = vadd.f32 %v3171_v22, %v3135_v2  ;;  %v3129_v35 = vpop.f32.mrf.mxu2 }
 0x5e2   : > { %v3139_v27 = vadd.f32 %v3129_v35, %v3085_v8 }
 0x5e3   : > { %v3199_v32 = vsel %vm1044_vm2, %v3189_v62, 0.0 }
 0x5e4   : > { %v3200_v11 = vadd.f32 %v3199_v32, %v3198_v49  ;;  %v4495_v49 = vld [vmem:[%s5815_s5 + $0x108] sm:$0xff] }
 0x5e5   : > { %3490 = vmatpush.msra.mxu2 %v4495_v49 }
 0x5e8   : > { %v3174_v5 = vpop.f32.mrf.mxu3 }
 0x5e9   : > { %v3190_v4 = vadd.f32 %v3174_v5, %v3136_v43 }
 0x5eb   : > { %v3201_v22 = vsel %vm1044_vm2, %v3190_v4, 0.0 }
 0x5ec   : > { %v3202_v15 = vadd.f32 %v3201_v22, %v3200_v11  ;;  %v4504_v22 = vld [vmem:[%s5815_s5 + $0xe0] sm:$0xff] }
 0x5ed   : > { %3575 = vmatpush.msra.mxu3 %v4504_v22  ;;  %v4531_v22 = vld [vmem:[%s5815_s5 + $0xe8] sm:$0xff] }
 0x5ee   : > { %3768 = vmatpush.msrb.mxu2 %v4531_v22 }
 0x5f0   : > { %v3177_v57 = vpop.f32.mrf.mxu3 }
 0x5f1   : > { %v3191_v3 = vadd.f32 %v3177_v57, %v3137_v7 }
 0x5f3   : > { %v3203_v61 = vsel %vm1044_vm2, %v3191_v3, 0.0 }
 0x5f4   : > { %v3204_v50 = vadd.f32 %v3203_v61, %v3202_v15  ;;  %v4477_v61 = vld [vmem:[%s5815_s5 + $0xd8] sm:$0xff] }
 0x5f5   : > { %3444 = vmatpush.msra.mxu1 %v4477_v61  ;;  %v4522_v61 = vld [vmem:[%s5815_s5 + $0x110] sm:$0xff] }
 0x5f7   : > { %3683 = vmatpush.msrb.mxu1 %v4522_v61 }
 0x5f8   : > { %v3180_v39 = vpop.f32.mrf.mxu3 }
 0x5f9   : > { %v3192_v10 = vadd.f32 %v3180_v39, %v3138_v12 }
 0x5fb   : > { %v3205_v14 = vsel %vm1044_vm2, %v3192_v10, 0.0 }
 0x5fc   : > { %v3206_v48 = vadd.f32 %v3205_v14, %v3204_v50  ;;  %v4513_v50 = vld [vmem:[%s5815_s5 + $0xf8] sm:$0xff] }
 0x5fd   : > { %3629 = vmatpush.msra.mxu0 %v4513_v50 }
 0x600   : > { %v3183_v47 = vpop.f32.mrf.mxu3 }
 0x601   : > { %v3193_v5 = vadd.f32 %v3183_v47, %v3139_v27 }
 0x603   : > { %v3207_v29 = vsel %vm1044_vm2, %v3193_v5, 0.0 }
 0x604   : > { %v3208_v19 = vadd.f32 %v3207_v29, %v3206_v48 }
 0x606   : > { %v3209_v28 = vrot.slane %v3208_v19, 4 }
 0x608   : > { %v3210_v23 = vadd.f32 %v3209_v28, %v3208_v19 }
 0x60a   : > { %v3211_v34 = vrot.slane %v3210_v23, 2 }
 0x60c   : > { %v3212_v30 = vadd.f32 %v3211_v34, %v3210_v23 }
 0x60e   : > { %v3213_v17 = vrot.slane %v3212_v30, 1 }
 0x610   : > { %v3214_v42 = vadd.f32 %v3213_v17, %v3212_v30 }
 0x612   : > { %v3215_v21 = vmul.f32 %v3214_v42, %v5926_v26 }
 0x614   : > { %v3216_v24 = vsub.f32 %v3186_v54, %v3215_v21  ;;  %v3217_v46 = vsub.f32 %v3187_v52, %v3215_v21  ;;  %v3218_v25 = vsub.f32 %v3188_v36, %v3215_v21  ;;  %v3219_v18 = vsub.f32 %v3189_v62, %v3215_v21 }
 0x615   : > { %v3220_v45 = vsub.f32 %v3190_v4, %v3215_v21  ;;  %v3221_v63 = vsub.f32 %v3191_v3, %v3215_v21  ;;  %v3222_v40 = vsub.f32 %v3192_v10, %v3215_v21  ;;  %v3223_v41 = vsub.f32 %v3193_v5, %v3215_v21 }
 0x616   : > { %v3224_v53 = vmul.f32 %v3216_v24, %v3216_v24  ;;  %v3225_v38 = vmul.f32 %v3217_v46, %v3217_v46  ;;  %v3226_v31 = vmul.f32 %v3218_v25, %v3218_v25  ;;  %v3227_v13 = vmul.f32 %v3219_v18, %v3219_v18 }
 0x617   : > { %v3228_v0 = vmul.f32 %v3220_v45, %v3220_v45  ;;  %v3229_v52 = vmul.f32 %v3221_v63, %v3221_v63  ;;  %v3230_v51 = vmul.f32 %v3222_v40, %v3222_v40  ;;  %v3231_v6 = vmul.f32 %v3223_v41, %v3223_v41 }
 0x618   : > { %v3232_v57 = vsel %vm1044_vm2, %v3224_v53, 0.0  ;;  %v3233_v9 = vsel %vm1044_vm2, %v3225_v38, 0.0  ;;  %v3235_v44 = vsel %vm1044_vm2, %v3226_v31, 0.0  ;;  %v3237_v54 = vsel %vm1044_vm2, %v3227_v13, 0.0 }
 0x619   : > { %v3234_v55 = vadd.f32 %v3233_v9, %v3232_v57  ;;  %v3239_v2 = vsel %vm1044_vm2, %v3228_v0, 0.0  ;;  %v3241_v62 = vsel %vm1044_vm2, %v3229_v52, 0.0  ;;  %v3243_v20 = vsel %vm1044_vm2, %v3230_v51, 0.0 }
 0x61a   : > { %v3245_v7 = vsel %vm1044_vm2, %v3231_v6, 0.0 }
 0x61b   : > { %v3236_v16 = vadd.f32 %v3235_v44, %v3234_v55 }
 0x61d   : > { %v3238_v36 = vadd.f32 %v3237_v54, %v3236_v16 }
 0x61f   : > { %v3240_v58 = vadd.f32 %v3239_v2, %v3238_v36 }
 0x621   : > { %v3242_v43 = vadd.f32 %v3241_v62, %v3240_v58 }
 0x623   : > { %v3244_v59 = vadd.f32 %v3243_v20, %v3242_v43 }
 0x625   : > { %v3246_v56 = vadd.f32 %v3245_v7, %v3244_v59 }
 0x627   : > { %v3247_v60 = vrot.slane %v3246_v56, 4 }
 0x629   : > { %v3248_v1 = vadd.f32 %v3247_v60, %v3246_v56 }
 0x62b   : > { %v3249_v4 = vrot.slane %v3248_v1, 2 }
 0x62d   : > { %v3250_v37 = vadd.f32 %v3249_v4, %v3248_v1 }
 0x62f   : > { %v3251_v39 = vrot.slane %v3250_v37, 1 }
 0x631   : > { %v3252_v32 = vadd.f32 %v3251_v39, %v3250_v37 }
 0x633   : > { %v3253_v3 = vmul.f32 %v3252_v32, %v5926_v26 }
 0x635   : > { %v3254_v12 = vadd.f32 1e-05, %v3253_v3 }
 0x637   : > { %4585 = vrsqrt.f32 %v3254_v12  ;;  %vm3261_vm9 = vweird.f32 %v3254_v12 }
 0x63d   : > { %v4586_v10 = vpop.eup %4585 }
 0x63e   : > { %v3256_v8 = vmul.f32 %v4586_v10, %v3254_v12  ;;  %vm3262_vm8 = vweird.f32 %v4586_v10 }
 0x63f   : > { %vm3263_vm10 = vmor %vm3261_vm9, %vm3262_vm8 }
 0x640   : > { %v3257_v11 = vmul.f32 %v4586_v10, %v3256_v8 }
 0x642   : > { %v3258_v35 = vmul.f32 0.5, %v3257_v11 }
 0x644   : > { %v3259_v15 = vsub.f32 1.5, %v3258_v35 }
 0x646   : > { %v3260_v14 = vmul.f32 %v4586_v10, %v3259_v15 }
 0x648   : > { %v3264_v27 = vsel %vm3263_vm10, %v4586_v10, %v3260_v14  ;;  %v4540_v10 = vld [vmem:[%s5815_s5 + $0x100] sm:$0xff]  ;;  %v4549_v14 = vld [vmem:[%s5815_s5 + $0x118] sm:$0xff] }
 0x649   : > { %v3265_v47 = vmul.f32 %v3264_v27, %v3216_v24  ;;  %v3266_v5 = vmul.f32 %v3264_v27, %v3217_v46  ;;  %v3267_v48 = vmul.f32 %v3264_v27, %v3218_v25  ;;  %v3268_v29 = vmul.f32 %v3264_v27, %v3219_v18  ;;  %3822 = vmatpush.msrb.mxu3 %v4540_v10 }
 0x64a   : > { %v3269_v19 = vmul.f32 %v3264_v27, %v3220_v45  ;;  %v3270_v28 = vmul.f32 %v3264_v27, %v3221_v63  ;;  %v3271_v23 = vmul.f32 %v3264_v27, %v3222_v40  ;;  %v3272_v34 = vmul.f32 %v3264_v27, %v3223_v41 }
 0x64b   : > { %vm3273_vm11 = vcmp.ge.f32.partialorder %v3265_v47, 0.0  ;;  %vm3274_vm12 = vcmp.ge.f32.partialorder %v3266_v5, 0.0  ;;  %vm3275_vm13 = vcmp.ge.f32.partialorder %v3267_v48, 0.0  ;;  %vm3276_vm14 = vcmp.ge.f32.partialorder %v3268_v29, 0.0 }
 0x64c   : > { %vm3277_vm15 = vcmp.ge.f32.partialorder %v3269_v19, 0.0  ;;  %v3281_v30 = vmul.f32 0.01, %v3265_v47  ;;  %v3282_v17 = vmul.f32 0.01, %v3266_v5  ;;  %vm3278_vm0 = vcmp.ge.f32.partialorder %v3270_v28, 0.0 }
 0x64d   : > { %v3283_v42 = vmul.f32 0.01, %v3267_v48  ;;  %v3284_v21 = vmul.f32 0.01, %v3268_v29  ;;  %v3285_v53 = vmul.f32 0.01, %v3269_v19 }
 0x64e   : > { %v3286_v38 = vmul.f32 0.01, %v3270_v28  ;;  %v3287_v24 = vmul.f32 0.01, %v3271_v23  ;;  %v3289_v46 = vsel %vm3273_vm11, %v3265_v47, %v3281_v30  ;;  %v3290_v25 = vsel %vm3274_vm12, %v3266_v5, %v3282_v17 }
 0x64f   : > { %vm3279_vm1 = vcmp.ge.f32.partialorder %v3271_v23, 0.0  ;;  %v3288_v18 = vmul.f32 0.01, %v3272_v34  ;;  %v3291_v45 = vsel %vm3275_vm13, %v3267_v48, %v3283_v42  ;;  %v3292_v31 = vsel %vm3276_vm14, %v3268_v29, %v3284_v21  ;;  %3297 = vst.msk [vmem:[#allocation2 + $0x11] sm:$0xff] %vm1044_vm2, %v3289_v46 }
 0x650   : > { %vm3280_vm3 = vcmp.ge.f32.partialorder %v3272_v34, 0.0  ;;  %v3293_v63 = vsel %vm3277_vm15, %v3269_v19, %v3285_v53  ;;  %3298 = vst.msk [vmem:[#allocation2 + $0x21] sm:$0xff] %vm1044_vm2, %v3290_v25  ;;  %v3294_v13 = vsel %vm3278_vm0, %v3270_v28, %v3286_v38  ;;  %v3295_v57 = vsel %vm3279_vm1, %v3271_v23, %v3287_v24 }
 0x651   : > { %3299 = vst.msk [vmem:[#allocation2 + $0x31] sm:$0xff] %vm1044_vm2, %v3291_v45  ;;  %v3296_v9 = vsel %vm3280_vm3, %v3272_v34, %v3288_v18 }
 0x652   : > { %3300 = vst.msk [vmem:[#allocation2 + $0x41] sm:$0xff] %vm1044_vm2, %v3292_v31 }
 0x653   : > { %3301 = vst.msk [vmem:[#allocation2 + $0x51] sm:$0xff] %vm1044_vm2, %v3293_v63 }
 0x654   : > { %3302 = vst.msk [vmem:[#allocation2 + $0x61] sm:$0xff] %vm1044_vm2, %v3294_v13 }
 0x655   : > { %3303 = vst.msk [vmem:[#allocation2 + $0x71] sm:$0xff] %vm1044_vm2, %v3295_v57 }
 0x656   : > { %3304 = vst.msk [vmem:[#allocation2 + $0x81] sm:$0xff] %vm1044_vm2, %v3296_v9  ;;  %v3308_v55 = vld [vmem:[#allocation2 + $0x12] sm:$0x1]  ;;  %v3328_v6 = vld [vmem:[#allocation2 + $0x17] sm:$0x1] }
 0x657   : > { %3305 = vst.msk [vmem:[#allocation2 + $0x1] sm:$0xff] %vm1044_vm2, %v3290_v25  ;;  %v3309_v40 = vld [vmem:[#allocation2 + $0x22] sm:$0x1]  ;;  %v3329_v20 = vld [vmem:[#allocation2 + $0x27] sm:$0x1]  ;;  %v5635_v1 = vld [vmem:[#allocation2 + $0x11] sm:$0xff] }
 0x658   : > { %3306 = vst.msk [vmem:[#allocation2 + $0x91] sm:$0xff] %vm1044_vm2, %v3295_v57  ;;  %v3310_v0 = vld [vmem:[#allocation2 + $0x32] sm:$0x1]  ;;  %v3330_v59 = vld [vmem:[#allocation2 + $0x37] sm:$0x1]  ;;  %v3526_v12 = vld [vmem:[#allocation2 + $0x21] sm:$0xff] }
 0x659   : > { %3318 = vst.msk [vmem:[#allocation2 + $0x10] sm:$0x1] %vm1185_vm7, %v3308_v55  ;;  %v3311_v44 = vld [vmem:[#allocation2 + $0x42] sm:$0x1]  ;;  %v3331_v7 = vld [vmem:[#allocation2 + $0x47] sm:$0x1] }
 0x65a   : > { %3319 = vst.msk [vmem:[#allocation2 + $0x20] sm:$0x1] %vm1185_vm7, %v3309_v40  ;;  %v3312_v16 = vld [vmem:[#allocation2 + $0x52] sm:$0x1]  ;;  %v3332_v56 = vld [vmem:[#allocation2 + $0x57] sm:$0x1] }
 0x65b   : > { %3320 = vst.msk [vmem:[#allocation2 + $0x30] sm:$0x1] %vm1185_vm7, %v3310_v0  ;;  %v3313_v41 = vld [vmem:[#allocation2 + $0x62] sm:$0x1]  ;;  %v3333_v4 = vld [vmem:[#allocation2 + $0x67] sm:$0x1] }
 0x65c   : > { %3321 = vst.msk [vmem:[#allocation2 + $0x40] sm:$0x1] %vm1185_vm7, %v3311_v44  ;;  %v3314_v52 = vld [vmem:[#allocation2 + $0x72] sm:$0x1]  ;;  %v3334_v37 = vld [vmem:[#allocation2 + $0x77] sm:$0x1] }
 0x65d   : > { %3322 = vst.msk [vmem:[#allocation2 + $0x50] sm:$0x1] %vm1185_vm7, %v3312_v16  ;;  %v3315_v54 = vld [vmem:[#allocation2 + $0x82] sm:$0x1]  ;;  %v3335_v39 = vld [vmem:[#allocation2 + $0x87] sm:$0x1] }
 0x65e   : > { %v3524_v36 = vld [vmem:[#allocation2 + $0x1] sm:$0xff]  ;;  %3323 = vst.msk [vmem:[#allocation2 + $0x60] sm:$0x1] %vm1185_vm7, %v3313_v41  ;;  %v3527_v49 = vld [vmem:[#allocation2 + $0x31] sm:$0xff] }
 0x65f   : > { %v3307_v51 = vld [vmem:[#allocation2 + $0x2] sm:$0x1]  ;;  %4505 = vmatmul.msk.f32.vlgmr.msra.gmra.mxu3 %vm1044_vm2, %v3524_v36  ;;  %v3316_v2 = vld [vmem:[#allocation2 + $0x92] sm:$0x1]  ;;  %3324 = vst.msk [vmem:[#allocation2 + $0x70] sm:$0x1] %vm1185_vm7, %v3314_v52 }
 0x660   : > { %3317 = vst.msk [vmem:[#allocation2] sm:$0x1] %vm1185_vm7, %v3307_v51  ;;  %v3348_v58 = vld [vmem:[#allocation2 + $0x10] sm:$0xff]  ;;  %v3327_v43 = vld [vmem:[#allocation2 + $0x7] sm:$0x1] }
 0x661   : > { %4479 = vmatmul.msk.f32.vlgmr.msrb.gmra.mxu0 %vm1044_vm2, %v3348_v58  ;;  %v3349_v62 = vld [vmem:[#allocation2 + $0x20] sm:$0xff]  ;;  %3325 = vst.msk [vmem:[#allocation2 + $0x80] sm:$0x1] %vm1185_vm7, %v3315_v54  ;;  %v3336_v3 = vld [vmem:[#allocation2 + $0x97] sm:$0x1] }
 0x662   : > { %4496 = vmatmul.msk.f32.vlgmr.msra.gmra.mxu2 %vm1044_vm2, %v3349_v62  ;;  %3326 = vst.msk [vmem:[#allocation2 + $0x90] sm:$0x1] %vm1185_vm7, %v3316_v2  ;;  %v3350_v32 = vld [vmem:[#allocation2 + $0x30] sm:$0xff]  ;;  %v3528_v11 = vld [vmem:[#allocation2 + $0x41] sm:$0xff]  ;;  %3876 = vmatpush.msrb.mxu0 %v4549_v14 }
 0x663   : > { %3338 = vst.msk [vmem:[#allocation2 + $0x19] sm:$0x1] %vm1185_vm7, %v3328_v6  ;;  %v3351_v33 = vld [vmem:[#allocation2 + $0x40] sm:$0xff]  ;;  %v3529_v15 = vld [vmem:[#allocation2 + $0x51] sm:$0xff] }
 0x664   : > { %3337 = vst.msk [vmem:[#allocation2 + $0x9] sm:$0x1] %vm1185_vm7, %v3327_v43  ;;  %v3352_v8 = vld [vmem:[#allocation2 + $0x50] sm:$0xff]  ;;  %v3530_v50 = vld [vmem:[#allocation2 + $0x61] sm:$0xff] }
 0x665   : > { %3339 = vst.msk [vmem:[#allocation2 + $0x29] sm:$0x1] %vm1185_vm7, %v3329_v20  ;;  %v3353_v35 = vld [vmem:[#allocation2 + $0x60] sm:$0xff]  ;;  %v3531_v5 = vld [vmem:[#allocation2 + $0x71] sm:$0xff] }
 0x666   : > { %3340 = vst.msk [vmem:[#allocation2 + $0x39] sm:$0x1] %vm1185_vm7, %v3330_v59  ;;  %v3354_v27 = vld [vmem:[#allocation2 + $0x70] sm:$0xff]  ;;  %v3532_v21 = vld [vmem:[#allocation2 + $0x81] sm:$0xff] }
 0x667   : > { %v3347_v60 = vld [vmem:[#allocation2] sm:$0xff]  ;;  %4506 = vmatmul.msk.f32.gmra.mxu3 %vm1044_vm2, %v5635_v1  ;;  %3341 = vst.msk [vmem:[#allocation2 + $0x49] sm:$0x1] %vm1185_vm7, %v3331_v7  ;;  %v3533_v38 = vld [vmem:[#allocation2 + $0x91] sm:$0xff] }
 0x668   : > { %4487 = vmatmul.msk.f32.vlgmr.msra.gmra.mxu1 %vm1044_vm2, %v3347_v60  ;;  %3342 = vst.msk [vmem:[#allocation2 + $0x59] sm:$0x1] %vm1185_vm7, %v3332_v56  ;;  %v3355_v47 = vld [vmem:[#allocation2 + $0x80] sm:$0xff] }
 0x669   : > { %4480 = vmatmul.msk.f32.gmra.mxu0 %vm1044_vm2, %v3349_v62  ;;  %3343 = vst.msk [vmem:[#allocation2 + $0x69] sm:$0x1] %vm1185_vm7, %v3333_v4  ;;  %v3356_v48 = vld [vmem:[#allocation2 + $0x90] sm:$0xff] }
 0x66a   : > { %4497 = vmatmul.msk.f32.gmra.mxu2 %vm1044_vm2, %v3350_v32  ;;  %3344 = vst.msk [vmem:[#allocation2 + $0x79] sm:$0x1] %vm1185_vm7, %v3334_v37  ;;  %v3718_v29 = vld [vmem:[#allocation2 + $0x12] sm:$0xff] }
 0x66b   : > { %3345 = vst.msk [vmem:[#allocation2 + $0x89] sm:$0x1] %vm1185_vm7, %v3335_v39  ;;  %v3717_v19 = vld [vmem:[#allocation2 + $0x2] sm:$0xff] }
 0x66c   : > { %3346 = vst.msk [vmem:[#allocation2 + $0x99] sm:$0x1] %vm1185_vm7, %v3336_v3  ;;  %v3719_v28 = vld [vmem:[#allocation2 + $0x22] sm:$0xff] }
 0x66d   : > { %v3720_v23 = vld [vmem:[#allocation2 + $0x32] sm:$0xff] }
 0x66e   : > { %v3721_v34 = vld [vmem:[#allocation2 + $0x42] sm:$0xff] }
 0x66f   : > { %4507 = vmatmul.msk.f32.gmra.mxu3 %vm1044_vm2, %v3526_v12  ;;  %v3722_v30 = vld [vmem:[#allocation2 + $0x52] sm:$0xff] }
 0x670   : > { %4488 = vmatmul.msk.f32.gmra.mxu1 %vm1044_vm2, %v3348_v58  ;;  %v3723_v17 = vld [vmem:[#allocation2 + $0x62] sm:$0xff] }
 0x671   : > { %4481 = vmatmul.msk.f32.gmra.mxu0 %vm1044_vm2, %v3350_v32  ;;  %v3724_v42 = vld [vmem:[#allocation2 + $0x72] sm:$0xff] }
 0x672   : > { %4498 = vmatmul.msk.f32.gmra.mxu2 %vm1044_vm2, %v3351_v33  ;;  %v3725_v53 = vld [vmem:[#allocation2 + $0x82] sm:$0xff] }
 0x677   : > { %4508 = vmatmul.msk.f32.gmra.mxu3 %vm1044_vm2, %v3527_v49 }
 0x678   : > { %4489 = vmatmul.msk.f32.gmra.mxu1 %vm1044_vm2, %v3349_v62 }
 0x679   : > { %4482 = vmatmul.msk.f32.gmra.mxu0 %vm1044_vm2, %v3351_v33 }
 0x67a   : > { %4499 = vmatmul.msk.f32.gmra.mxu2 %vm1044_vm2, %v3352_v8 }
 0x67f   : > { %4509 = vmatmul.msk.f32.gmra.mxu3 %vm1044_vm2, %v3528_v11 }
 0x680   : > { %4490 = vmatmul.msk.f32.gmra.mxu1 %vm1044_vm2, %v3350_v32 }
 0x681   : > { %4483 = vmatmul.msk.f32.gmra.mxu0 %vm1044_vm2, %v3352_v8 }
 0x682   : > { %4500 = vmatmul.msk.f32.gmra.mxu2 %vm1044_vm2, %v3353_v35 }
 0x687   : > { %4510 = vmatmul.msk.f32.gmra.mxu3 %vm1044_vm2, %v3529_v15 }
 0x688   : > { %4491 = vmatmul.msk.f32.gmra.mxu1 %vm1044_vm2, %v3351_v33 }
 0x689   : > { %4484 = vmatmul.msk.f32.gmra.mxu0 %vm1044_vm2, %v3353_v35 }
 0x68a   : > { %4501 = vmatmul.msk.f32.gmra.mxu2 %vm1044_vm2, %v3354_v27 }
 0x68f   : > { %4511 = vmatmul.msk.f32.gmra.mxu3 %vm1044_vm2, %v3530_v50 }
 0x690   : > { %4492 = vmatmul.msk.f32.gmra.mxu1 %vm1044_vm2, %v3352_v8 }
 0x691   : > { %4485 = vmatmul.msk.f32.gmra.mxu0 %vm1044_vm2, %v3354_v27 }
 0x692   : > { %4502 = vmatmul.msk.f32.gmra.mxu2 %vm1044_vm2, %v3355_v47 }
 0x697   : > { %4512 = vmatmul.msk.f32.gmra.mxu3 %vm1044_vm2, %v3531_v5 }
 0x698   : > { %4493 = vmatmul.msk.f32.gmra.mxu1 %vm1044_vm2, %v3353_v35  ;;  %v3726_v35 = vld [vmem:[#allocation2 + $0x92] sm:$0xff] }
 0x699   : > { %4486 = vmatmul.msk.f32.gmra.mxu0 %vm1044_vm2, %v3355_v47 }
 0x69a   : > { %4503 = vmatmul.msk.f32.gmra.mxu2 %vm1044_vm2, %v3356_v48 }
 0x69f   : > { %4541 = vmatmul.msk.f32.vlgmr.msrb.gmra.mxu3 %vm1044_vm2, %v3718_v29 }
 0x6a0   : > { %4494 = vmatmul.msk.f32.gmra.mxu1 %vm1044_vm2, %v3354_v27 }
 0x6a1   : > { %4514 = vmatmul.msk.f32.vlgmr.msra.gmra.mxu0 %vm1044_vm2, %v5635_v1 }
 0x6a2   : > { %4532 = vmatmul.msk.f32.vlgmr.msrb.gmra.mxu2 %vm1044_vm2, %v3717_v19 }
 0x6a7   : > { %4542 = vmatmul.msk.f32.gmra.mxu3 %vm1044_vm2, %v3719_v28 }
 0x6a8   : > { %4523 = vmatmul.msk.f32.vlgmr.msrb.gmra.mxu1 %vm1044_vm2, %v3526_v12 }
 0x6a9   : > { %4515 = vmatmul.msk.f32.gmra.mxu0 %vm1044_vm2, %v3526_v12 }
 0x6aa   : > { %4533 = vmatmul.msk.f32.gmra.mxu2 %vm1044_vm2, %v3718_v29 }
 0x6af   : > { %4543 = vmatmul.msk.f32.gmra.mxu3 %vm1044_vm2, %v3720_v23 }
 0x6b0   : > { %4524 = vmatmul.msk.f32.gmra.mxu1 %vm1044_vm2, %v3527_v49 }
 0x6b1   : > { %4516 = vmatmul.msk.f32.gmra.mxu0 %vm1044_vm2, %v3527_v49 }
 0x6b2   : > { %4534 = vmatmul.msk.f32.gmra.mxu2 %vm1044_vm2, %v3719_v28 }
 0x6b7   : > { %4544 = vmatmul.msk.f32.gmra.mxu3 %vm1044_vm2, %v3721_v34 }
 0x6b8   : > { %4525 = vmatmul.msk.f32.gmra.mxu1 %vm1044_vm2, %v3528_v11 }
 0x6b9   : > { %4517 = vmatmul.msk.f32.gmra.mxu0 %vm1044_vm2, %v3528_v11 }
 0x6ba   : > { %4535 = vmatmul.msk.f32.gmra.mxu2 %vm1044_vm2, %v3720_v23 }
 0x6bf   : > { %4545 = vmatmul.msk.f32.gmra.mxu3 %vm1044_vm2, %v3722_v30 }
 0x6c0   : > { %4526 = vmatmul.msk.f32.gmra.mxu1 %vm1044_vm2, %v3529_v15 }
 0x6c1   : > { %4518 = vmatmul.msk.f32.gmra.mxu0 %vm1044_vm2, %v3529_v15 }
 0x6c2   : > { %4536 = vmatmul.msk.f32.gmra.mxu2 %vm1044_vm2, %v3721_v34 }
 0x6c7   : > { %4546 = vmatmul.msk.f32.gmra.mxu3 %vm1044_vm2, %v3723_v17 }
 0x6c8   : > { %4527 = vmatmul.msk.f32.gmra.mxu1 %vm1044_vm2, %v3530_v50 }
 0x6c9   : > { %4519 = vmatmul.msk.f32.gmra.mxu0 %vm1044_vm2, %v3530_v50 }
 0x6ca   : > { %4537 = vmatmul.msk.f32.gmra.mxu2 %vm1044_vm2, %v3722_v30 }
 0x6cf   : > { %4547 = vmatmul.msk.f32.gmra.mxu3 %vm1044_vm2, %v3724_v42 }
 0x6d0   : > { %4528 = vmatmul.msk.f32.gmra.mxu1 %vm1044_vm2, %v3531_v5 }
 0x6d1   : > { %4520 = vmatmul.msk.f32.gmra.mxu0 %vm1044_vm2, %v3531_v5 }
 0x6d2   : > { %4538 = vmatmul.msk.f32.gmra.mxu2 %vm1044_vm2, %v3723_v17 }
 0x6d7   : > { %4548 = vmatmul.msk.f32.gmra.mxu3 %vm1044_vm2, %v3725_v53 }
 0x6d8   : > { %4529 = vmatmul.msk.f32.gmra.mxu1 %vm1044_vm2, %v3532_v21 }
 0x6d9   : > { %4521 = vmatmul.msk.f32.gmra.mxu0 %vm1044_vm2, %v3532_v21 }
 0x6da   : > { %4539 = vmatmul.msk.f32.gmra.mxu2 %vm1044_vm2, %v3724_v42 }
 0x6de   : > { %v3402_v24 = vpop.f32.mrf.mxu0 }
 0x6e0   : > { %4530 = vmatmul.msk.f32.gmra.mxu1 %vm1044_vm2, %v3533_v38 }
 0x6e1   : > { %4550 = vmatmul.msk.f32.vlgmr.msrb.gmra.mxu0 %vm1044_vm2, %v3719_v28 }
 0x6e2   : > { %v3577_v46 = vpop.f32.mrf.mxu3 }
 0x6e5   : > { %v3446_v25 = vpop.f32.mrf.mxu1  ;;  %v3492_v45 = vpop.f32.mrf.mxu2 }
 0x6e6   : > { %v3447_v18 = vadd.f32 %v3446_v25, %v3402_v24  ;;  %v3405_v31 = vpop.f32.mrf.mxu0 }
 0x6e8   : > { %v3516_v63 = vadd.f32 %v3492_v45, %v3447_v18 }
 0x6e9   : > { %4551 = vmatmul.msk.f32.gmra.mxu0 %vm1044_vm2, %v3720_v23 }
 0x6ea   : > { %v3601_v13 = vadd.f32 %v3577_v46, %v3516_v63  ;;  %v3580_v57 = vpop.f32.mrf.mxu3 }
 0x6ed   : > { %v3449_v9 = vpop.f32.mrf.mxu1  ;;  %v3495_v40 = vpop.f32.mrf.mxu2 }
 0x6ee   : > { %v3450_v55 = vadd.f32 %v3449_v9, %v3405_v31  ;;  %v3408_v0 = vpop.f32.mrf.mxu0 }
 0x6f0   : > { %v3517_v44 = vadd.f32 %v3495_v40, %v3450_v55 }
 0x6f1   : > { %4552 = vmatmul.msk.f32.gmra.mxu0 %vm1044_vm2, %v3721_v34 }
 0x6f2   : > { %v3602_v16 = vadd.f32 %v3580_v57, %v3517_v44  ;;  %v3583_v41 = vpop.f32.mrf.mxu3 }
 0x6f5   : > { %v3452_v52 = vpop.f32.mrf.mxu1  ;;  %v3498_v36 = vpop.f32.mrf.mxu2 }
 0x6f6   : > { %v3453_v54 = vadd.f32 %v3452_v52, %v3408_v0  ;;  %v3411_v51 = vpop.f32.mrf.mxu0 }
 0x6f8   : > { %v3518_v2 = vadd.f32 %v3498_v36, %v3453_v54 }
 0x6f9   : > { %4553 = vmatmul.msk.f32.gmra.mxu0 %vm1044_vm2, %v3722_v30 }
 0x6fa   : > { %v3603_v58 = vadd.f32 %v3583_v41, %v3518_v2  ;;  %v3586_v6 = vpop.f32.mrf.mxu3 }
 0x6fd   : > { %v3455_v62 = vpop.f32.mrf.mxu1  ;;  %v3501_v20 = vpop.f32.mrf.mxu2 }
 0x6fe   : > { %v3456_v43 = vadd.f32 %v3455_v62, %v3411_v51  ;;  %v3414_v59 = vpop.f32.mrf.mxu0 }
 0x700   : > { %v3519_v7 = vadd.f32 %v3501_v20, %v3456_v43 }
 0x701   : > { %4554 = vmatmul.msk.f32.gmra.mxu0 %vm1044_vm2, %v3723_v17 }
 0x702   : > { %v3604_v56 = vadd.f32 %v3586_v6, %v3519_v7  ;;  %v3589_v37 = vpop.f32.mrf.mxu3 }
 0x705   : > { %v3458_v60 = vpop.f32.mrf.mxu1  ;;  %v3504_v4 = vpop.f32.mrf.mxu2 }
 0x706   : > { %v3459_v1 = vadd.f32 %v3458_v60, %v3414_v59  ;;  %v3417_v39 = vpop.f32.mrf.mxu0 }
 0x708   : > { %v3520_v32 = vadd.f32 %v3504_v4, %v3459_v1 }
 0x709   : > { %4555 = vmatmul.msk.f32.gmra.mxu0 %vm1044_vm2, %v3724_v42 }
 0x70a   : > { %v3605_v3 = vadd.f32 %v3589_v37, %v3520_v32  ;;  %v3592_v8 = vpop.f32.mrf.mxu3 }
 0x70d   : > { %v3461_v12 = vpop.f32.mrf.mxu1  ;;  %v3507_v49 = vpop.f32.mrf.mxu2 }
 0x70e   : > { %v3462_v33 = vadd.f32 %v3461_v12, %v3417_v39  ;;  %v5725_v22 = vpop.f32.mrf.mxu0 }
 0x710   : > { %v3521_v10 = vadd.f32 %v3507_v49, %v3462_v33 }
 0x711   : > { %4556 = vmatmul.msk.f32.gmra.mxu0 %vm1044_vm2, %v3725_v53 }
 0x712   : > { %v3606_v11 = vadd.f32 %v3592_v8, %v3521_v10  ;;  %v5731_v23 = vpop.f32.mrf.mxu3 }
 0x715   : > { %v3464_v48 = vpop.f32.mrf.mxu1  ;;  %v3510_v29 = vpop.f32.mrf.mxu2 }
 0x716   : > { %v5728_v61 = vpop.f32.mrf.mxu0 }
 0x719   : > { %4557 = vmatmul.msk.f32.gmra.mxu0 %vm1044_vm2, %v3726_v35 }
 0x71a   : > { %v5737_v21 = vpop.f32.mrf.mxu3 }
 0x71d   : > { %v5733_v34 = vpop.f32.mrf.mxu1  ;;  %v5735_v30 = vpop.f32.mrf.mxu2 }
 0x71e   : > { %v3631_v15 = vpop.f32.mrf.mxu0 }
 0x71f   : > { %v3655_v14 = vadd.f32 %v3631_v15, %v3601_v13 }
 0x722   : > { %v3824_v25 = vpop.f32.mrf.mxu3 }
 0x725   : > { %v3685_v38 = vpop.f32.mrf.mxu1  ;;  %v3770_v46 = vpop.f32.mrf.mxu2 }
 0x726   : > { %v3634_v27 = vpop.f32.mrf.mxu0  ;;  %v3709_v55 = vadd.f32 %v3685_v38, %v3655_v14 }
 0x727   : > { %v3656_v50 = vadd.f32 %v3634_v27, %v3602_v16 }
 0x728   : > { %v3794_v0 = vadd.f32 %v3770_v46, %v3709_v55 }
 0x72a   : > { %v3827_v13 = vpop.f32.mrf.mxu3  ;;  %v3848_v52 = vadd.f32 %v3824_v25, %v3794_v0 }
 0x72d   : > { %v3688_v45 = vpop.f32.mrf.mxu1  ;;  %v3773_v31 = vpop.f32.mrf.mxu2 }
 0x72e   : > { %v3637_v47 = vpop.f32.mrf.mxu0  ;;  %v3710_v44 = vadd.f32 %v3688_v45, %v3656_v50 }
 0x72f   : > { %v3657_v5 = vadd.f32 %v3637_v47, %v3603_v58 }
 0x730   : > { %v3795_v16 = vadd.f32 %v3773_v31, %v3710_v44 }
 0x732   : > { %v3830_v41 = vpop.f32.mrf.mxu3  ;;  %v3849_v51 = vadd.f32 %v3827_v13, %v3795_v16  ;;  %v3468_v13 = vadd.f32 %v5733_v34, %v5728_v61 }
 0x735   : > { %v3691_v57 = vpop.f32.mrf.mxu1  ;;  %v3776_v9 = vpop.f32.mrf.mxu2 }
 0x736   : > { %v3640_v19 = vpop.f32.mrf.mxu0  ;;  %v3711_v6 = vadd.f32 %v3691_v57, %v3657_v5  ;;  %v3465_v5 = vadd.f32 %v3464_v48, %v5725_v22  ;;  %v3523_v22 = vadd.f32 %v5735_v30, %v3468_v13 }
 0x737   : > { %v3658_v28 = vadd.f32 %v3640_v19, %v3604_v56 }
 0x738   : > { %v3796_v43 = vadd.f32 %v3776_v9, %v3711_v6  ;;  %v3522_v19 = vadd.f32 %v3510_v29, %v3465_v5  ;;  %v3608_v44 = vadd.f32 %v5737_v21, %v3523_v22 }
 0x73a   : > { %v3833_v56 = vpop.f32.mrf.mxu3  ;;  %v3850_v60 = vadd.f32 %v3830_v41, %v3796_v43  ;;  %v3607_v45 = vadd.f32 %v5731_v23, %v3522_v19 }
 0x73d   : > { %v3694_v54 = vpop.f32.mrf.mxu1  ;;  %v3779_v2 = vpop.f32.mrf.mxu2 }
 0x73e   : > { %v3643_v17 = vpop.f32.mrf.mxu0  ;;  %v3712_v4 = vadd.f32 %v3694_v54, %v3658_v28 }
 0x73f   : > { %v3659_v42 = vadd.f32 %v3643_v17, %v3605_v3 }
 0x740   : > { %v3797_v3 = vadd.f32 %v3779_v2, %v3712_v4 }
 0x742   : > { %v3851_v49 = vadd.f32 %v3833_v56, %v3797_v3  ;;  %v3836_v10 = vpop.f32.mrf.mxu3 }
 0x745   : > { %v3697_v37 = vpop.f32.mrf.mxu1  ;;  %v3782_v32 = vpop.f32.mrf.mxu2 }
 0x746   : > { %v3646_v53 = vpop.f32.mrf.mxu0 }
 0x747   : > { %v3660_v24 = vadd.f32 %v3646_v53, %v3606_v11  ;;  %v3713_v11 = vadd.f32 %v3697_v37, %v3659_v42 }
 0x749   : > { %v3798_v15 = vadd.f32 %v3782_v32, %v3713_v11 }
 0x74a   : > { %v3839_v46 = vpop.f32.mrf.mxu3 }
 0x74b   : > { %v3852_v28 = vadd.f32 %v3836_v10, %v3798_v15 }
 0x74d   : > { %v3700_v14 = vpop.f32.mrf.mxu1  ;;  %v3785_v50 = vpop.f32.mrf.mxu2 }
 0x74e   : > { %v3649_v18 = vpop.f32.mrf.mxu0  ;;  %v3714_v53 = vadd.f32 %v3700_v14, %v3660_v24 }
 0x74f   : > { %v3661_v57 = vadd.f32 %v3649_v18, %v3607_v45 }
 0x750   : > { %v3799_v25 = vadd.f32 %v3785_v50, %v3714_v53 }
 0x752   : > { %v3853_v48 = vadd.f32 %v3839_v46, %v3799_v25  ;;  %v3842_v16 = vpop.f32.mrf.mxu3 }
 0x755   : > { %v3703_v9 = vpop.f32.mrf.mxu1  ;;  %v3788_v55 = vpop.f32.mrf.mxu2 }
 0x756   : > { %v5739_v63 = vpop.f32.mrf.mxu0 }
 0x75a   : > { %v3845_v43 = vpop.f32.mrf.mxu3 }
 0x75d   : > { %v3706_v54 = vpop.f32.mrf.mxu1  ;;  %v3791_v34 = vpop.f32.mrf.mxu2 }
 0x75e   : > { %v3878_v40 = vpop.f32.mrf.mxu0 }
 0x75f   : > { %v5741_v36 = vadd.f32 %v3878_v40, %v3848_v52  ;;  %v3715_v40 = vadd.f32 %v3703_v9, %v3661_v57  ;;  %v3662_v52 = vadd.f32 %v5739_v63, %v3608_v44 }
 0x761   : > { %v3910_v20 = vsel %vm1044_vm2, %v5741_v36, 0.0  ;;  %v3800_v0 = vadd.f32 %v3788_v55, %v3715_v40 }
 0x763   : > { %v3854_v61 = vadd.f32 %v3842_v16, %v3800_v0 }
 0x766   : > { %v3881_v58 = vpop.f32.mrf.mxu0 }
 0x767   : > { %v5743_v62 = vadd.f32 %v3881_v58, %v3849_v51  ;;  %v3716_v51 = vadd.f32 %v3706_v54, %v3662_v52 }
 0x769   : > { %v3911_v59 = vsel %vm1044_vm2, %v5743_v62, 0.0  ;;  %v3801_v30 = vadd.f32 %v3791_v34, %v3716_v51 }
 0x76a   : > { %v3912_v7 = vadd.f32 %v3911_v59, %v3910_v20 }
 0x76b   : > { %v3855_v20 = vadd.f32 %v3845_v43, %v3801_v30 }
 0x76e   : > { %v3884_v1 = vpop.f32.mrf.mxu0 }
 0x76f   : > { %v5749_v39 = vadd.f32 %v3884_v1, %v3850_v60 }
 0x771   : > { %v3913_v12 = vsel %vm1044_vm2, %v5749_v39, 0.0 }
 0x772   : > { %v3914_v33 = vadd.f32 %v3913_v12, %v3912_v7 }
 0x776   : > { %v3887_v8 = vpop.f32.mrf.mxu0 }
 0x777   : > { %v3905_v35 = vadd.f32 %v3887_v8, %v3851_v49 }
 0x779   : > { %v3915_v27 = vsel %vm1044_vm2, %v3905_v35, 0.0 }
 0x77a   : > { %v3916_v47 = vadd.f32 %v3915_v27, %v3914_v33 }
 0x77e   : > { %v3890_v17 = vpop.f32.mrf.mxu0 }
 0x77f   : > { %v3906_v38 = vadd.f32 %v3890_v17, %v3852_v28 }
 0x781   : > { %v3917_v42 = vsel %vm1044_vm2, %v3906_v38, 0.0 }
 0x782   : > { %v3918_v31 = vadd.f32 %v3917_v42, %v3916_v47 }
 0x786   : > { %v3893_v29 = vpop.f32.mrf.mxu0 }
 0x787   : > { %v3907_v24 = vadd.f32 %v3893_v29, %v3853_v48 }
 0x789   : > { %v3919_v23 = vsel %vm1044_vm2, %v3907_v24, 0.0 }
 0x78a   : > { %v3920_v41 = vadd.f32 %v3919_v23, %v3918_v31 }
 0x78e   : > { %v3896_v18 = vpop.f32.mrf.mxu0 }
 0x78f   : > { %v3908_v2 = vadd.f32 %v3896_v18, %v3854_v61 }
 0x791   : > { %v3921_v58 = vsel %vm1044_vm2, %v3908_v2, 0.0 }
 0x792   : > { %v3922_v6 = vadd.f32 %v3921_v58, %v3920_v41 }
 0x796   : > { %v3899_v59 = vpop.f32.mrf.mxu0 }
 0x797   : > { %v3909_v21 = vadd.f32 %v3899_v59, %v3855_v20 }
 0x799   : > { %v3923_v7 = vsel %vm1044_vm2, %v3909_v21, 0.0 }
 0x79a   : > { %v3924_v56 = vadd.f32 %v3923_v7, %v3922_v6 }
 0x79c   : > { %v3925_v60 = vrot.slane %v3924_v56, 4 }
 0x79e   : > { %v3926_v1 = vadd.f32 %v3925_v60, %v3924_v56  ;;  %v5928_v56 = vld [vmem:[#allocation13_spill] sm:$0xff] }
 0x7a0   : > { %v3927_v63 = vrot.slane %v3926_v1, 2 }
 0x7a2   : > { %v3928_v4 = vadd.f32 %v3927_v63, %v3926_v1  ;;  %v5929_v1 = vld [vmem:[#allocation15_spill] sm:$0xff] }
 0x7a4   : > { %v3929_v37 = vrot.slane %v3928_v4, 1 }
 0x7a6   : > { %v3930_v32 = vadd.f32 %v3929_v37, %v3928_v4  ;;  %v5930_v4 = vld [vmem:[#allocation14_spill] sm:$0xff] }
 0x7a8   : > { %v3931_v3 = vmul.f32 %v3930_v32, %v5926_v26  ;;  %v5931_v32 = vld [vmem:[#allocation16_spill] sm:$0xff] }
 0x7aa   : > { %v3932_v12 = vsub.f32 %v5741_v36, %v3931_v3  ;;  %v3933_v33 = vsub.f32 %v5743_v62, %v3931_v3  ;;  %v3934_v49 = vsub.f32 %v5749_v39, %v3931_v3  ;;  %v3935_v10 = vsub.f32 %v3905_v35, %v3931_v3 }
 0x7ab   : > { %v3936_v8 = vsub.f32 %v3906_v38, %v3931_v3  ;;  %v3937_v11 = vsub.f32 %v3907_v24, %v3931_v3  ;;  %v3938_v15 = vsub.f32 %v3908_v2, %v3931_v3  ;;  %v3939_v14 = vsub.f32 %v3909_v21, %v3931_v3  ;;  %v5927_v21 = vld [vmem:[#allocation12_spill] sm:$0xff] }
 0x7ac   : > { %v3940_v27 = vmul.f32 %v3932_v12, %v3932_v12  ;;  %v3941_v50 = vmul.f32 %v3933_v33, %v3933_v33  ;;  %v3942_v47 = vmul.f32 %v3934_v49, %v3934_v49  ;;  %v3943_v5 = vmul.f32 %v3935_v10, %v3935_v10 }
 0x7ad   : > { %v3944_v53 = vmul.f32 %v3936_v8, %v3936_v8  ;;  %v3945_v46 = vmul.f32 %v3937_v11, %v3937_v11  ;;  %v3946_v38 = vmul.f32 %v3938_v15, %v3938_v15  ;;  %v3947_v42 = vmul.f32 %v3939_v14, %v3939_v14 }
 0x7ae   : > { %v3948_v19 = vsel %vm1044_vm2, %v3940_v27, 0.0  ;;  %v3949_v28 = vsel %vm1044_vm2, %v3941_v50, 0.0  ;;  %v3951_v36 = vsel %vm1044_vm2, %v3942_v47, 0.0  ;;  %v3953_v39 = vsel %vm1044_vm2, %v3943_v5, 0.0  ;;  %v5936_v27 = vld [vmem:[#allocation7_spill] sm:$0xff] }
 0x7af   : > { %v3950_v17 = vadd.f32 %v3949_v28, %v3948_v19  ;;  %v3955_v25 = vsel %vm1044_vm2, %v3944_v53, 0.0  ;;  %v3957_v31 = vsel %vm1044_vm2, %v3945_v46, 0.0  ;;  %v3959_v57 = vsel %vm1044_vm2, %v3946_v38, 0.0  ;;  %v5937_v47 = vld [vmem:[#allocation19_spill] sm:$0xff]  ;;  %v5941_v46 = vld [vmem:[#allocation10_spill] sm:$0xff] }
 0x7b0   : > { %v3961_v55 = vsel %vm1044_vm2, %v3947_v42, 0.0  ;;  %v5938_v19 = vld [vmem:[#allocation3_spill] sm:$0xff] }
 0x7b1   : > { %v3952_v62 = vadd.f32 %v3951_v36, %v3950_v17  ;;  %v5939_v17 = vld [vmem:[#allocation8_spill] sm:$0xff]  ;;  %v5940_v36 = vld [vmem:[#allocation9_spill] sm:$0xff] }
 0x7b3   : > { %v3954_v35 = vadd.f32 %v3953_v39, %v3952_v62 }
 0x7b5   : > { %v3956_v45 = vadd.f32 %v3955_v25, %v3954_v35  ;;  %v5942_v35 = vld [vmem:[#allocation11_spill] sm:$0xff] }
 0x7b7   : > { %v3958_v13 = vadd.f32 %v3957_v31, %v3956_v45 }
 0x7b9   : > { %v3960_v9 = vadd.f32 %v3959_v57, %v3958_v13 }
 0x7bb   : > { %v3962_v22 = vadd.f32 %v3961_v55, %v3960_v9 }
 0x7bd   : > { %v3963_v48 = vrot.slane %v3962_v22, 4 }
 0x7bf   : > { %v3964_v29 = vadd.f32 %v3963_v48, %v3962_v22 }
 0x7c1   : > { %v3965_v40 = vrot.slane %v3964_v29, 2 }
 0x7c3   : > { %v3966_v24 = vadd.f32 %v3965_v40, %v3964_v29 }
 0x7c5   : > { %v3967_v0 = vrot.slane %v3966_v24, 1 }
 0x7c7   : > { %v3968_v44 = vadd.f32 %v3967_v0, %v3966_v24 }
 0x7c9   : > { %v3969_v23 = vmul.f32 %v3968_v44, %v5926_v26 }
 0x7cb   : > { %v3970_v16 = vadd.f32 1e-05, %v3969_v23 }
 0x7cd   : > { %4587 = vrsqrt.f32 %v3970_v16  ;;  %vm3977_vm4 = vweird.f32 %v3970_v16 }
 0x7d3   : > { %v4588_v41 = vpop.eup %4587 }
 0x7d4   : > { %v3972_v52 = vmul.f32 %v4588_v41, %v3970_v16  ;;  %vm3978_vm7 = vweird.f32 %v4588_v41 }
 0x7d5   : > { %vm3979_vm5 = vmor %vm3977_vm4, %vm3978_vm7 }
 0x7d6   : > { %v3973_v54 = vmul.f32 %v4588_v41, %v3972_v52 }
 0x7d8   : > { %v3974_v61 = vmul.f32 0.5, %v3973_v54 }
 0x7da   : > { %v3975_v34 = vsub.f32 1.5, %v3974_v61 }
 0x7dc   : > { %v3976_v18 = vmul.f32 %v4588_v41, %v3975_v34 }
 0x7de   : > { %v3980_v51 = vsel %vm3979_vm5, %v4588_v41, %v3976_v18 }
 0x7df   : > { %v3981_v2 = vmul.f32 %v3980_v51, %v3932_v12  ;;  %v3982_v30 = vmul.f32 %v3980_v51, %v3933_v33  ;;  %v3983_v58 = vmul.f32 %v3980_v51, %v3934_v49  ;;  %v3984_v6 = vmul.f32 %v3980_v51, %v3935_v10  ;;  %v5932_v12 = vld [vmem:[#allocation17_spill] sm:$0xff]  ;;  %v5933_v49 = vld [vmem:[#allocation18_spill] sm:$0xff] }
 0x7e0   : > { %v3985_v43 = vmul.f32 %v3980_v51, %v3936_v8  ;;  %v3986_v20 = vmul.f32 %v3980_v51, %v3937_v11  ;;  %v3987_v26 = vmul.f32 %v3980_v51, %v3938_v15  ;;  %v3988_v59 = vmul.f32 %v3980_v51, %v3939_v14  ;;  %v5934_v8 = vld [vmem:[#allocation6_spill] sm:$0xff]  ;;  %v5935_v15 = vld [vmem:[#allocation4_spill] sm:$0xff] }
 0x7e1   : > { %v3989_v7 = vadd.f32 %v3981_v2, %v5927_v21  ;;  %v3990_v60 = vadd.f32 %v3982_v30, %v5928_v56  ;;  %v3991_v63 = vadd.f32 %v3983_v58, %v5929_v1  ;;  %v3992_v37 = vadd.f32 %v3984_v6, %v5930_v4 }
 0x7e2   : > { %v3993_v3 = vadd.f32 %v3985_v43, %v5931_v32  ;;  %v3994_v33 = vadd.f32 %v3986_v20, %v5932_v12  ;;  %v3995_v10 = vadd.f32 %v3987_v26, %v5933_v49  ;;  %v3996_v5 = vadd.f32 %v3988_v59, %v5937_v47 }
 0x7e3   : > { %v3997_v11 = vadd.f32 %v3989_v7, %v5934_v8  ;;  %v3998_v14 = vadd.f32 %v3990_v60, %v5935_v15  ;;  %v3999_v50 = vadd.f32 %v3991_v63, %v5936_v27  ;;  %v4000_v28 = vadd.f32 %v3992_v37, %v5938_v19 }
 0x7e4   : > { %v4001_v53 = vadd.f32 %v3993_v3, %v5939_v17  ;;  %v4002_v62 = vadd.f32 %v3994_v33, %v5940_v36  ;;  %v4003_v39 = vadd.f32 %v3995_v10, %v5941_v46  ;;  %v4004_v38 = vadd.f32 %v3996_v5, %v5942_v35 }
 0x7e5   : > { %4005 = vst.msk [vmem:[%s271_s18] sm:$0xff] %vm1044_vm2, %v3997_v11 }
 0x7e6   : > { %4006 = vst.msk [vmem:[%s271_s18 + $0x8] sm:$0xff] %vm1044_vm2, %v3998_v14 }
 0x7e7   : > { %4007 = vst.msk [vmem:[%s271_s18 + $0x10] sm:$0xff] %vm1044_vm2, %v3999_v50 }
 0x7e8   : > { %4008 = vst.msk [vmem:[%s271_s18 + $0x18] sm:$0xff] %vm1044_vm2, %v4000_v28 }
 0x7e9   : > { %4009 = vst.msk [vmem:[%s271_s18 + $0x20] sm:$0xff] %vm1044_vm2, %v4001_v53 }
 0x7ea   : > { %4010 = vst.msk [vmem:[%s271_s18 + $0x28] sm:$0xff] %vm1044_vm2, %v4002_v62 }
 0x7eb   : > { %4011 = vst.msk [vmem:[%s271_s18 + $0x30] sm:$0xff] %vm1044_vm2, %v4003_v39 }
 0x7ec   : > { %4012 = vst.msk [vmem:[%s271_s18 + $0x38] sm:$0xff] %vm1044_vm2, %v4004_v38 }
 0x7ed PF: > { %s16_s21 = sadd.s32 1, %s4595_s21  }
 0x7ee   : > { %p13_p4 = scmp.ge.s32.totalorder %s16_s21, 4  }
 0x7f0   :  { %15 = sbr.rel (!%p13_p4) target bundleno = 1 (0x1), region = 127 }

</bundles_post_ra>
